<compile_context>
chip_gen: v5e
topology: v5e:2x2
jax: 0.10.0
libtpu: 0.0.40
codegen_flags: <defaults>
</compile_context>

<pallas_src>
import jax
import jax.numpy as jnp
from jax.experimental import pallas as pl
from jax.experimental.pallas import tpu as pltpu


def lstm_kernel(x_ref, w_ih_ref, w_hh_ref, b_ref, h_out_ref, gx_ref):
    """Fused LSTM: input projection prologue + serial recurrence, all in VMEM.

    x_ref:    (T*B, D)  bf16   time-major, flattened input (row = t*B + b)
    w_ih_ref: (D, G)    bf16   G = 4*Hp; gate blocks [i, f, o, g], each zero-padded H->Hp
    w_hh_ref: (Hp, G)   bf16   same gate layout; padded h rows/cols are zero
    b_ref:    (1, G)    f32    b_ih + b_hh, same layout, zero-padded
    h_out_ref:(B, H)    f32    hn[-1]
    gx_ref:   (T*B, G)  f32    scratch: hoisted x @ W_ih^T + b for all timesteps
    """
    TB, _ = x_ref.shape
    Hp, G = w_hh_ref.shape
    B, H = h_out_ref.shape
    T = TB // B

    # ---- Prologue (off the serial chain): one big MXU matmul for all timesteps ----
    gx_ref[...] = (
        jnp.dot(x_ref[...], w_ih_ref[...], preferred_element_type=jnp.float32)
        + b_ref[...]
    )

    w_hh = w_hh_ref[...]  # bf16, resident for the whole recurrence

    def step(t, carry):
        h, c = carry  # (B, Hp) f32 each; padded units provably stay exactly 0
        gx_t = gx_ref[pl.ds(t * B, B), :]  # (B, G), sublane-aligned (B == 8)
        # Only this recurrent matmul sits on the serial critical path (bf16 in, f32 acc).
        gates = gx_t + jnp.dot(
            h.astype(w_hh.dtype), w_hh, preferred_element_type=jnp.float32
        )  # (B, G) f32
        # Gate order [i, f, o, g]: one contiguous sigmoid region, one tanh region,
        # and every slice below is a full-vreg (Hp = 128 lanes) slice.
        sig = jax.nn.sigmoid(gates[:, : 3 * Hp])
        i_g = sig[:, 0 * Hp:1 * Hp]
        f_g = sig[:, 1 * Hp:2 * Hp]
        o_g = sig[:, 2 * Hp:3 * Hp]
        g_g = jnp.tanh(gates[:, 3 * Hp:])
        c_new = f_g * c + i_g * g_g
        h_new = o_g * jnp.tanh(c_new)
        return h_new, c_new

    h0 = jnp.zeros((B, Hp), jnp.float32)
    c0 = jnp.zeros((B, Hp), jnp.float32)
    unroll = True if T <= 32 else 8
    h_last, _ = jax.lax.fori_loop(0, T, step, (h0, c0), unroll=unroll)
    h_out_ref[...] = h_last[:, :H].astype(h_out_ref.dtype)


def lstm_feature_extractor(x, w_ih, w_hh, b_ih, b_hh, *, matmul_dtype=jnp.bfloat16):
    """Pallas equivalent of LSTMFeatureExtractor.forward: returns hn[-1], shape (B, H).

    Weights are given in PyTorch nn.LSTM layout: w_ih (4H, D), w_hh (4H, H),
    b_ih/b_hh (4H,), gate row order [i, f, g, o], zero initial state.
    """
    B, T, D = x.shape
    H = w_hh.shape[1]
    Hp = ((H + 127) // 128) * 128   # pad each gate to a full 128-lane vreg
    G = 4 * Hp

    # --- parameter prep (constant per model; tiny, fused/const-folded by XLA) ---
    gate_perm = jnp.array([0, 1, 3, 2])  # [i, f, g, o] -> [i, f, o, g]

    def prep_w(w, in_dim, in_pad):
        w4 = w.reshape(4, H, in_dim)[gate_perm]                       # reorder gates
        w4 = jnp.pad(w4, ((0, 0), (0, Hp - H), (0, in_pad - in_dim)))  # zero-pad
        return jnp.transpose(w4.reshape(G, in_pad)).astype(matmul_dtype)  # (in_pad, G)

    w_ih_p = prep_w(w_ih, D, D)       # (D, G)
    w_hh_p = prep_w(w_hh, H, Hp)      # (Hp, G)
    b4 = (b_ih + b_hh).astype(jnp.float32).reshape(4, H)[gate_perm]
    b_p = jnp.pad(b4, ((0, 0), (0, Hp - H))).reshape(1, G)            # (1, G)

    # Time-major, flattened, bf16 input: one fused XLA transpose+cast (~x-sized), so the
    # kernel's prologue is a single (T*B, D) @ (D, G) matmul with no in-kernel transpose.
    x_tb = jnp.transpose(x, (1, 0, 2)).reshape(T * B, D).astype(matmul_dtype)

    return pl.pallas_call(
        lstm_kernel,
        out_shape=jax.ShapeDtypeStruct((B, H), jnp.float32),
        in_specs=[
            pl.BlockSpec(memory_space=pltpu.MemorySpace.VMEM),  # x (time-major)
            pl.BlockSpec(memory_space=pltpu.MemorySpace.VMEM),  # W_ih^T (padded)
            pl.BlockSpec(memory_space=pltpu.MemorySpace.VMEM),  # W_hh^T (padded)
            pl.BlockSpec(memory_space=pltpu.MemorySpace.VMEM),  # bias
        ],
        out_specs=pl.BlockSpec(memory_space=pltpu.MemorySpace.VMEM),
        scratch_shapes=[pltpu.VMEM((T * B, G), jnp.float32)],   # hoisted input projection
    )(x_tb, w_ih_p, w_hh_p, b_p)


def lstm_ref(x, w_ih, w_hh, b_ih, b_hh, matmul_dtype=jnp.float32):
    """Pure-JAX reference matching torch.nn.LSTM semantics (zero initial state)."""
    B, T, D = x.shape
    H = w_hh.shape[1]
    b = (b_ih + b_hh).astype(jnp.float32)
    w_ih_t = jnp.transpose(w_ih).astype(matmul_dtype)
    w_hh_t = jnp.transpose(w_hh).astype(matmul_dtype)

    def step(carry, x_t):
        h, c = carry
        gates = (
            jnp.dot(x_t.astype(matmul_dtype), w_ih_t, preferred_element_type=jnp.float32)
            + jnp.dot(h.astype(matmul_dtype), w_hh_t, preferred_element_type=jnp.float32)
            + b
        )
        i, f, g, o = jnp.split(gates, 4, axis=-1)
        c = jax.nn.sigmoid(f) * c + jax.nn.sigmoid(i) * jnp.tanh(g)
        h = jax.nn.sigmoid(o) * jnp.tanh(c)
        return (h, c), None

    h0 = jnp.zeros((B, H), jnp.float32)
    c0 = jnp.zeros((B, H), jnp.float32)
    (h, _), _ = jax.lax.scan(step, (h0, c0), jnp.transpose(x, (1, 0, 2)))
    return h


if __name__ == "__main__":
    # Small shapes consistent with the module: input_dim=300, hidden_dim=64.
    B, T, D, H = 8, 16, 300, 64

    key = jax.random.PRNGKey(0)
    kx, k1, k2, k3, k4 = jax.random.split(key, 5)

    # Deterministic init matching nn.LSTM's U(-1/sqrt(H), 1/sqrt(H)).
    bound = 1.0 / float(jnp.sqrt(jnp.float32(H)))
    x = jax.random.normal(kx, (B, T, D), dtype=jnp.float32)
    w_ih = jax.random.uniform(k1, (4 * H, D), jnp.float32, -bound, bound)
    w_hh = jax.random.uniform(k2, (4 * H, H), jnp.float32, -bound, bound)
    b_ih = jax.random.uniform(k3, (4 * H,), jnp.float32, -bound, bound)
    b_hh = jax.random.uniform(k4, (4 * H,), jnp.float32, -bound, bound)

    fwd = jax.jit(lstm_feature_extractor)
    out = jax.block_until_ready(fwd(x, w_ih, w_hh, b_ih, b_hh))
    assert out.shape == (B, H)

    # Check 1: tight, against a reference with identical bf16 matmul inputs / f32 accumulation.
    ref_match = jax.block_until_ready(
        jax.jit(lambda *a: lstm_ref(*a, matmul_dtype=jnp.bfloat16))(x, w_ih, w_hh, b_ih, b_hh)
    )
    err_match = float(jnp.max(jnp.abs(out - ref_match)))
    assert jnp.allclose(out, ref_match, rtol=5e-3, atol=5e-3), err_match

    # Check 2: loose sanity check against the full-f32 LSTM (bf16 rounding accumulates over T).
    ref_f32 = jax.block_until_ready(
        jax.jit(lambda *a: lstm_ref(*a, matmul_dtype=jnp.float32))(x, w_ih, w_hh, b_ih, b_hh)
    )
    err_f32 = float(jnp.max(jnp.abs(out - ref_f32)))
    assert jnp.allclose(out, ref_f32, rtol=1e-1, atol=1e-1), err_f32

    print("KERNEL_OK")
</pallas_src>

<mosaic_0001>
module attributes {stable_mosaic.version = 11 : i64} {
  func.func @lstm_kernel(%arg0: memref<128x300xbf16, #tpu.memory_space<vmem>>, %arg1: memref<300x512xbf16, #tpu.memory_space<vmem>>, %arg2: memref<128x512xbf16, #tpu.memory_space<vmem>>, %arg3: memref<1x512xf32, #tpu.memory_space<vmem>>, %arg4: memref<8x64xf32, #tpu.memory_space<vmem>>, %arg5: memref<128x512xf32, #tpu.memory_space<vmem>>) attributes {dimension_semantics = [], scalar_prefetch = 0 : i64, scratch_operands = 1 : i64, tpu.core_type = #tpu.core_type<tc>} {
    %c0 = arith.constant 0 : index
    %c0_0 = arith.constant 0 : index
    %0 = vector.load %arg0[%c0, %c0_0] : memref<128x300xbf16, #tpu.memory_space<vmem>>, vector<128x300xbf16>
    %c0_1 = arith.constant 0 : index
    %c0_2 = arith.constant 0 : index
    %1 = vector.load %arg1[%c0_1, %c0_2] : memref<300x512xbf16, #tpu.memory_space<vmem>>, vector<300x512xbf16>
    %cst = arith.constant dense<0.000000e+00> : vector<128x512xf32>
    %2 = tpu.matmul %0, %1, %cst {dimension_numbers = #tpu.dot_dimension_numbers<[1], [0], [0], [1], [0, 0, 1, 1], [], []>} : vector<128x300xbf16>, vector<300x512xbf16>, vector<128x512xf32> -> vector<128x512xf32>
    %c0_3 = arith.constant 0 : index
    %c0_4 = arith.constant 0 : index
    %3 = vector.load %arg3[%c0_3, %c0_4] : memref<1x512xf32, #tpu.memory_space<vmem>>, vector<1x512xf32>
    %4 = vector.broadcast %3 : vector<1x512xf32> to vector<128x512xf32>
    %5 = arith.addf %2, %4 : vector<128x512xf32>
    %c0_5 = arith.constant 0 : index
    %c0_6 = arith.constant 0 : index
    %6 = vector.load %arg5[%c0_5, %c0_6] : memref<128x512xf32, #tpu.memory_space<vmem>>, vector<128x512xf32>
    tpu.vector_store %arg5[%c0_5, %c0_6], %5 {strides = array<i32>} : memref<128x512xf32, #tpu.memory_space<vmem>>, vector<128x512xf32>,
    %c0_7 = arith.constant 0 : index
    %c0_8 = arith.constant 0 : index
    %7 = vector.load %arg2[%c0_7, %c0_8] : memref<128x512xbf16, #tpu.memory_space<vmem>>, vector<128x512xbf16>
    %cst_9 = arith.constant 0.000000e+00 : f32
    %8 = vector.broadcast %cst_9 : f32 to vector<8x128xf32>
    %cst_10 = arith.constant 0.000000e+00 : f32
    %9 = vector.broadcast %cst_10 : f32 to vector<8x128xf32>
    %c0_i32 = arith.constant 0 : i32
    %c8_i32 = arith.constant 8 : i32
    %10 = arith.muli %c0_i32, %c8_i32 : i32
    %11 = arith.index_cast %10 : i32 to index
    %c0_11 = arith.constant 0 : index
    %12 = vector.load %arg5[%11, %c0_11] : memref<128x512xf32, #tpu.memory_space<vmem>>, vector<8x512xf32>
    %13 = arith.truncf %8 : vector<8x128xf32> to vector<8x128xbf16>
    %cst_12 = arith.constant dense<0.000000e+00> : vector<8x512xf32>
    %14 = tpu.matmul %13, %7, %cst_12 {dimension_numbers = #tpu.dot_dimension_numbers<[1], [0], [0], [1], [0, 0, 1, 1], [], []>} : vector<8x128xbf16>, vector<128x512xbf16>, vector<8x512xf32> -> vector<8x512xf32>
    %15 = arith.addf %12, %14 : vector<8x512xf32>
    %16 = vector.extract_strided_slice %15 {offsets = [0, 0], sizes = [8, 384], strides = [1, 1]} : vector<8x512xf32> to vector<8x384xf32>
    %17 = arith.negf %16 : vector<8x384xf32>
    %18 = math.exp %17 : vector<8x384xf32>
    %cst_13 = arith.constant 1.000000e+00 : f32
    %19 = vector.broadcast %cst_13 : f32 to vector<8x384xf32>
    %20 = arith.addf %19, %18 : vector<8x384xf32>
    %21 = arith.divf %19, %20 : vector<8x384xf32>
    %22 = vector.extract_strided_slice %21 {offsets = [0, 0], sizes = [8, 128], strides = [1, 1]} : vector<8x384xf32> to vector<8x128xf32>
    %23 = vector.extract_strided_slice %21 {offsets = [0, 128], sizes = [8, 128], strides = [1, 1]} : vector<8x384xf32> to vector<8x128xf32>
    %24 = vector.extract_strided_slice %21 {offsets = [0, 256], sizes = [8, 128], strides = [1, 1]} : vector<8x384xf32> to vector<8x128xf32>
    %25 = vector.extract_strided_slice %15 {offsets = [0, 384], sizes = [8, 128], strides = [1, 1]} : vector<8x512xf32> to vector<8x128xf32>
    %26 = math.tanh %25 : vector<8x128xf32>
    %27 = arith.mulf %23, %9 : vector<8x128xf32>
    %28 = arith.mulf %22, %26 : vector<8x128xf32>
    %29 = arith.addf %27, %28 : vector<8x128xf32>
    %30 = math.tanh %29 : vector<8x128xf32>
    %31 = arith.mulf %24, %30 : vector<8x128xf32>
    %c1_i32 = arith.constant 1 : i32
    %c8_i32_14 = arith.constant 8 : i32
    %32 = arith.muli %c1_i32, %c8_i32_14 : i32
    %33 = arith.index_cast %32 : i32 to index
    %c0_15 = arith.constant 0 : index
    %34 = vector.load %arg5[%33, %c0_15] : memref<128x512xf32, #tpu.memory_space<vmem>>, vector<8x512xf32>
    %35 = arith.truncf %31 : vector<8x128xf32> to vector<8x128xbf16>
    %cst_16 = arith.constant dense<0.000000e+00> : vector<8x512xf32>
    %36 = tpu.matmul %35, %7, %cst_16 {dimension_numbers = #tpu.dot_dimension_numbers<[1], [0], [0], [1], [0, 0, 1, 1], [], []>} : vector<8x128xbf16>, vector<128x512xbf16>, vector<8x512xf32> -> vector<8x512xf32>
    %37 = arith.addf %34, %36 : vector<8x512xf32>
    %38 = vector.extract_strided_slice %37 {offsets = [0, 0], sizes = [8, 384], strides = [1, 1]} : vector<8x512xf32> to vector<8x384xf32>
    %39 = arith.negf %38 : vector<8x384xf32>
    %40 = math.exp %39 : vector<8x384xf32>
    %cst_17 = arith.constant 1.000000e+00 : f32
    %41 = vector.broadcast %cst_17 : f32 to vector<8x384xf32>
    %42 = arith.addf %41, %40 : vector<8x384xf32>
    %43 = arith.divf %41, %42 : vector<8x384xf32>
    %44 = vector.extract_strided_slice %43 {offsets = [0, 0], sizes = [8, 128], strides = [1, 1]} : vector<8x384xf32> to vector<8x128xf32>
    %45 = vector.extract_strided_slice %43 {offsets = [0, 128], sizes = [8, 128], strides = [1, 1]} : vector<8x384xf32> to vector<8x128xf32>
    %46 = vector.extract_strided_slice %43 {offsets = [0, 256], sizes = [8, 128], strides = [1, 1]} : vector<8x384xf32> to vector<8x128xf32>
    %47 = vector.extract_strided_slice %37 {offsets = [0, 384], sizes = [8, 128], strides = [1, 1]} : vector<8x512xf32> to vector<8x128xf32>
    %48 = math.tanh %47 : vector<8x128xf32>
    %49 = arith.mulf %45, %29 : vector<8x128xf32>
    %50 = arith.mulf %44, %48 : vector<8x128xf32>
    %51 = arith.addf %49, %50 : vector<8x128xf32>
    %52 = math.tanh %51 : vector<8x128xf32>
    %53 = arith.mulf %46, %52 : vector<8x128xf32>
    %c2_i32 = arith.constant 2 : i32
    %c8_i32_18 = arith.constant 8 : i32
    %54 = arith.muli %c2_i32, %c8_i32_18 : i32
    %55 = arith.index_cast %54 : i32 to index
    %c0_19 = arith.constant 0 : index
    %56 = vector.load %arg5[%55, %c0_19] : memref<128x512xf32, #tpu.memory_space<vmem>>, vector<8x512xf32>
    %57 = arith.truncf %53 : vector<8x128xf32> to vector<8x128xbf16>
    %cst_20 = arith.constant dense<0.000000e+00> : vector<8x512xf32>
    %58 = tpu.matmul %57, %7, %cst_20 {dimension_numbers = #tpu.dot_dimension_numbers<[1], [0], [0], [1], [0, 0, 1, 1], [], []>} : vector<8x128xbf16>, vector<128x512xbf16>, vector<8x512xf32> -> vector<8x512xf32>
    %59 = arith.addf %56, %58 : vector<8x512xf32>
    %60 = vector.extract_strided_slice %59 {offsets = [0, 0], sizes = [8, 384], strides = [1, 1]} : vector<8x512xf32> to vector<8x384xf32>
    %61 = arith.negf %60 : vector<8x384xf32>
    %62 = math.exp %61 : vector<8x384xf32>
    %cst_21 = arith.constant 1.000000e+00 : f32
    %63 = vector.broadcast %cst_21 : f32 to vector<8x384xf32>
    %64 = arith.addf %63, %62 : vector<8x384xf32>
    %65 = arith.divf %63, %64 : vector<8x384xf32>
    %66 = vector.extract_strided_slice %65 {offsets = [0, 0], sizes = [8, 128], strides = [1, 1]} : vector<8x384xf32> to vector<8x128xf32>
    %67 = vector.extract_strided_slice %65 {offsets = [0, 128], sizes = [8, 128], strides = [1, 1]} : vector<8x384xf32> to vector<8x128xf32>
    %68 = vector.extract_strided_slice %65 {offsets = [0, 256], sizes = [8, 128], strides = [1, 1]} : vector<8x384xf32> to vector<8x128xf32>
    %69 = vector.extract_strided_slice %59 {offsets = [0, 384], sizes = [8, 128], strides = [1, 1]} : vector<8x512xf32> to vector<8x128xf32>
    %70 = math.tanh %69 : vector<8x128xf32>
    %71 = arith.mulf %67, %51 : vector<8x128xf32>
    %72 = arith.mulf %66, %70 : vector<8x128xf32>
    %73 = arith.addf %71, %72 : vector<8x128xf32>
    %74 = math.tanh %73 : vector<8x128xf32>
    %75 = arith.mulf %68, %74 : vector<8x128xf32>
    %c3_i32 = arith.constant 3 : i32
    %c8_i32_22 = arith.constant 8 : i32
    %76 = arith.muli %c3_i32, %c8_i32_22 : i32
    %77 = arith.index_cast %76 : i32 to index
    %c0_23 = arith.constant 0 : index
    %78 = vector.load %arg5[%77, %c0_23] : memref<128x512xf32, #tpu.memory_space<vmem>>, vector<8x512xf32>
    %79 = arith.truncf %75 : vector<8x128xf32> to vector<8x128xbf16>
    %cst_24 = arith.constant dense<0.000000e+00> : vector<8x512xf32>
    %80 = tpu.matmul %79, %7, %cst_24 {dimension_numbers = #tpu.dot_dimension_numbers<[1], [0], [0], [1], [0, 0, 1, 1], [], []>} : vector<8x128xbf16>, vector<128x512xbf16>, vector<8x512xf32> -> vector<8x512xf32>
    %81 = arith.addf %78, %80 : vector<8x512xf32>
    %82 = vector.extract_strided_slice %81 {offsets = [0, 0], sizes = [8, 384], strides = [1, 1]} : vector<8x512xf32> to vector<8x384xf32>
    %83 = arith.negf %82 : vector<8x384xf32>
    %84 = math.exp %83 : vector<8x384xf32>
    %cst_25 = arith.constant 1.000000e+00 : f32
    %85 = vector.broadcast %cst_25 : f32 to vector<8x384xf32>
    %86 = arith.addf %85, %84 : vector<8x384xf32>
    %87 = arith.divf %85, %86 : vector<8x384xf32>
    %88 = vector.extract_strided_slice %87 {offsets = [0, 0], sizes = [8, 128], strides = [1, 1]} : vector<8x384xf32> to vector<8x128xf32>
    %89 = vector.extract_strided_slice %87 {offsets = [0, 128], sizes = [8, 128], strides = [1, 1]} : vector<8x384xf32> to vector<8x128xf32>
    %90 = vector.extract_strided_slice %87 {offsets = [0, 256], sizes = [8, 128], strides = [1, 1]} : vector<8x384xf32> to vector<8x128xf32>
    %91 = vector.extract_strided_slice %81 {offsets = [0, 384], sizes = [8, 128], strides = [1, 1]} : vector<8x512xf32> to vector<8x128xf32>
    %92 = math.tanh %91 : vector<8x128xf32>
    %93 = arith.mulf %89, %73 : vector<8x128xf32>
    %94 = arith.mulf %88, %92 : vector<8x128xf32>
    %95 = arith.addf %93, %94 : vector<8x128xf32>
    %96 = math.tanh %95 : vector<8x128xf32>
    %97 = arith.mulf %90, %96 : vector<8x128xf32>
    %c4_i32 = arith.constant 4 : i32
    %c8_i32_26 = arith.constant 8 : i32
    %98 = arith.muli %c4_i32, %c8_i32_26 : i32
    %99 = arith.index_cast %98 : i32 to index
    %c0_27 = arith.constant 0 : index
    %100 = vector.load %arg5[%99, %c0_27] : memref<128x512xf32, #tpu.memory_space<vmem>>, vector<8x512xf32>
    %101 = arith.truncf %97 : vector<8x128xf32> to vector<8x128xbf16>
    %cst_28 = arith.constant dense<0.000000e+00> : vector<8x512xf32>
    %102 = tpu.matmul %101, %7, %cst_28 {dimension_numbers = #tpu.dot_dimension_numbers<[1], [0], [0], [1], [0, 0, 1, 1], [], []>} : vector<8x128xbf16>, vector<128x512xbf16>, vector<8x512xf32> -> vector<8x512xf32>
    %103 = arith.addf %100, %102 : vector<8x512xf32>
    %104 = vector.extract_strided_slice %103 {offsets = [0, 0], sizes = [8, 384], strides = [1, 1]} : vector<8x512xf32> to vector<8x384xf32>
    %105 = arith.negf %104 : vector<8x384xf32>
    %106 = math.exp %105 : vector<8x384xf32>
    %cst_29 = arith.constant 1.000000e+00 : f32
    %107 = vector.broadcast %cst_29 : f32 to vector<8x384xf32>
    %108 = arith.addf %107, %106 : vector<8x384xf32>
    %109 = arith.divf %107, %108 : vector<8x384xf32>
    %110 = vector.extract_strided_slice %109 {offsets = [0, 0], sizes = [8, 128], strides = [1, 1]} : vector<8x384xf32> to vector<8x128xf32>
    %111 = vector.extract_strided_slice %109 {offsets = [0, 128], sizes = [8, 128], strides = [1, 1]} : vector<8x384xf32> to vector<8x128xf32>
    %112 = vector.extract_strided_slice %109 {offsets = [0, 256], sizes = [8, 128], strides = [1, 1]} : vector<8x384xf32> to vector<8x128xf32>
    %113 = vector.extract_strided_slice %103 {offsets = [0, 384], sizes = [8, 128], strides = [1, 1]} : vector<8x512xf32> to vector<8x128xf32>
    %114 = math.tanh %113 : vector<8x128xf32>
    %115 = arith.mulf %111, %95 : vector<8x128xf32>
    %116 = arith.mulf %110, %114 : vector<8x128xf32>
    %117 = arith.addf %115, %116 : vector<8x128xf32>
    %118 = math.tanh %117 : vector<8x128xf32>
    %119 = arith.mulf %112, %118 : vector<8x128xf32>
    %c5_i32 = arith.constant 5 : i32
    %c8_i32_30 = arith.constant 8 : i32
    %120 = arith.muli %c5_i32, %c8_i32_30 : i32
    %121 = arith.index_cast %120 : i32 to index
    %c0_31 = arith.constant 0 : index
    %122 = vector.load %arg5[%121, %c0_31] : memref<128x512xf32, #tpu.memory_space<vmem>>, vector<8x512xf32>
    %123 = arith.truncf %119 : vector<8x128xf32> to vector<8x128xbf16>
    %cst_32 = arith.constant dense<0.000000e+00> : vector<8x512xf32>
    %124 = tpu.matmul %123, %7, %cst_32 {dimension_numbers = #tpu.dot_dimension_numbers<[1], [0], [0], [1], [0, 0, 1, 1], [], []>} : vector<8x128xbf16>, vector<128x512xbf16>, vector<8x512xf32> -> vector<8x512xf32>
    %125 = arith.addf %122, %124 : vector<8x512xf32>
    %126 = vector.extract_strided_slice %125 {offsets = [0, 0], sizes = [8, 384], strides = [1, 1]} : vector<8x512xf32> to vector<8x384xf32>
    %127 = arith.negf %126 : vector<8x384xf32>
    %128 = math.exp %127 : vector<8x384xf32>
    %cst_33 = arith.constant 1.000000e+00 : f32
    %129 = vector.broadcast %cst_33 : f32 to vector<8x384xf32>
    %130 = arith.addf %129, %128 : vector<8x384xf32>
    %131 = arith.divf %129, %130 : vector<8x384xf32>
    %132 = vector.extract_strided_slice %131 {offsets = [0, 0], sizes = [8, 128], strides = [1, 1]} : vector<8x384xf32> to vector<8x128xf32>
    %133 = vector.extract_strided_slice %131 {offsets = [0, 128], sizes = [8, 128], strides = [1, 1]} : vector<8x384xf32> to vector<8x128xf32>
    %134 = vector.extract_strided_slice %131 {offsets = [0, 256], sizes = [8, 128], strides = [1, 1]} : vector<8x384xf32> to vector<8x128xf32>
    %135 = vector.extract_strided_slice %125 {offsets = [0, 384], sizes = [8, 128], strides = [1, 1]} : vector<8x512xf32> to vector<8x128xf32>
    %136 = math.tanh %135 : vector<8x128xf32>
    %137 = arith.mulf %133, %117 : vector<8x128xf32>
    %138 = arith.mulf %132, %136 : vector<8x128xf32>
    %139 = arith.addf %137, %138 : vector<8x128xf32>
    %140 = math.tanh %139 : vector<8x128xf32>
    %141 = arith.mulf %134, %140 : vector<8x128xf32>
    %c6_i32 = arith.constant 6 : i32
    %c8_i32_34 = arith.constant 8 : i32
    %142 = arith.muli %c6_i32, %c8_i32_34 : i32
    %143 = arith.index_cast %142 : i32 to index
    %c0_35 = arith.constant 0 : index
    %144 = vector.load %arg5[%143, %c0_35] : memref<128x512xf32, #tpu.memory_space<vmem>>, vector<8x512xf32>
    %145 = arith.truncf %141 : vector<8x128xf32> to vector<8x128xbf16>
    %cst_36 = arith.constant dense<0.000000e+00> : vector<8x512xf32>
    %146 = tpu.matmul %145, %7, %cst_36 {dimension_numbers = #tpu.dot_dimension_numbers<[1], [0], [0], [1], [0, 0, 1, 1], [], []>} : vector<8x128xbf16>, vector<128x512xbf16>, vector<8x512xf32> -> vector<8x512xf32>
    %147 = arith.addf %144, %146 : vector<8x512xf32>
    %148 = vector.extract_strided_slice %147 {offsets = [0, 0], sizes = [8, 384], strides = [1, 1]} : vector<8x512xf32> to vector<8x384xf32>
    %149 = arith.negf %148 : vector<8x384xf32>
    %150 = math.exp %149 : vector<8x384xf32>
    %cst_37 = arith.constant 1.000000e+00 : f32
    %151 = vector.broadcast %cst_37 : f32 to vector<8x384xf32>
    %152 = arith.addf %151, %150 : vector<8x384xf32>
    %153 = arith.divf %151, %152 : vector<8x384xf32>
    %154 = vector.extract_strided_slice %153 {offsets = [0, 0], sizes = [8, 128], strides = [1, 1]} : vector<8x384xf32> to vector<8x128xf32>
    %155 = vector.extract_strided_slice %153 {offsets = [0, 128], sizes = [8, 128], strides = [1, 1]} : vector<8x384xf32> to vector<8x128xf32>
    %156 = vector.extract_strided_slice %153 {offsets = [0, 256], sizes = [8, 128], strides = [1, 1]} : vector<8x384xf32> to vector<8x128xf32>
    %157 = vector.extract_strided_slice %147 {offsets = [0, 384], sizes = [8, 128], strides = [1, 1]} : vector<8x512xf32> to vector<8x128xf32>
    %158 = math.tanh %157 : vector<8x128xf32>
    %159 = arith.mulf %155, %139 : vector<8x128xf32>
    %160 = arith.mulf %154, %158 : vector<8x128xf32>
    %161 = arith.addf %159, %160 : vector<8x128xf32>
    %162 = math.tanh %161 : vector<8x128xf32>
    %163 = arith.mulf %156, %162 : vector<8x128xf32>
    %c7_i32 = arith.constant 7 : i32
    %c8_i32_38 = arith.constant 8 : i32
    %164 = arith.muli %c7_i32, %c8_i32_38 : i32
    %165 = arith.index_cast %164 : i32 to index
    %c0_39 = arith.constant 0 : index
    %166 = vector.load %arg5[%165, %c0_39] : memref<128x512xf32, #tpu.memory_space<vmem>>, vector<8x512xf32>
    %167 = arith.truncf %163 : vector<8x128xf32> to vector<8x128xbf16>
    %cst_40 = arith.constant dense<0.000000e+00> : vector<8x512xf32>
    %168 = tpu.matmul %167, %7, %cst_40 {dimension_numbers = #tpu.dot_dimension_numbers<[1], [0], [0], [1], [0, 0, 1, 1], [], []>} : vector<8x128xbf16>, vector<128x512xbf16>, vector<8x512xf32> -> vector<8x512xf32>
    %169 = arith.addf %166, %168 : vector<8x512xf32>
    %170 = vector.extract_strided_slice %169 {offsets = [0, 0], sizes = [8, 384], strides = [1, 1]} : vector<8x512xf32> to vector<8x384xf32>
    %171 = arith.negf %170 : vector<8x384xf32>
    %172 = math.exp %171 : vector<8x384xf32>
    %cst_41 = arith.constant 1.000000e+00 : f32
    %173 = vector.broadcast %cst_41 : f32 to vector<8x384xf32>
    %174 = arith.addf %173, %172 : vector<8x384xf32>
    %175 = arith.divf %173, %174 : vector<8x384xf32>
    %176 = vector.extract_strided_slice %175 {offsets = [0, 0], sizes = [8, 128], strides = [1, 1]} : vector<8x384xf32> to vector<8x128xf32>
    %177 = vector.extract_strided_slice %175 {offsets = [0, 128], sizes = [8, 128], strides = [1, 1]} : vector<8x384xf32> to vector<8x128xf32>
    %178 = vector.extract_strided_slice %175 {offsets = [0, 256], sizes = [8, 128], strides = [1, 1]} : vector<8x384xf32> to vector<8x128xf32>
    %179 = vector.extract_strided_slice %169 {offsets = [0, 384], sizes = [8, 128], strides = [1, 1]} : vector<8x512xf32> to vector<8x128xf32>
    %180 = math.tanh %179 : vector<8x128xf32>
    %181 = arith.mulf %177, %161 : vector<8x128xf32>
    %182 = arith.mulf %176, %180 : vector<8x128xf32>
    %183 = arith.addf %181, %182 : vector<8x128xf32>
    %184 = math.tanh %183 : vector<8x128xf32>
    %185 = arith.mulf %178, %184 : vector<8x128xf32>
    %c8_i32_42 = arith.constant 8 : i32
    %c8_i32_43 = arith.constant 8 : i32
    %186 = arith.muli %c8_i32_42, %c8_i32_43 : i32
    %187 = arith.index_cast %186 : i32 to index
    %c0_44 = arith.constant 0 : index
    %188 = vector.load %arg5[%187, %c0_44] : memref<128x512xf32, #tpu.memory_space<vmem>>, vector<8x512xf32>
    %189 = arith.truncf %185 : vector<8x128xf32> to vector<8x128xbf16>
    %cst_45 = arith.constant dense<0.000000e+00> : vector<8x512xf32>
    %190 = tpu.matmul %189, %7, %cst_45 {dimension_numbers = #tpu.dot_dimension_numbers<[1], [0], [0], [1], [0, 0, 1, 1], [], []>} : vector<8x128xbf16>, vector<128x512xbf16>, vector<8x512xf32> -> vector<8x512xf32>
    %191 = arith.addf %188, %190 : vector<8x512xf32>
    %192 = vector.extract_strided_slice %191 {offsets = [0, 0], sizes = [8, 384], strides = [1, 1]} : vector<8x512xf32> to vector<8x384xf32>
    %193 = arith.negf %192 : vector<8x384xf32>
    %194 = math.exp %193 : vector<8x384xf32>
    %cst_46 = arith.constant 1.000000e+00 : f32
    %195 = vector.broadcast %cst_46 : f32 to vector<8x384xf32>
    %196 = arith.addf %195, %194 : vector<8x384xf32>
    %197 = arith.divf %195, %196 : vector<8x384xf32>
    %198 = vector.extract_strided_slice %197 {offsets = [0, 0], sizes = [8, 128], strides = [1, 1]} : vector<8x384xf32> to vector<8x128xf32>
    %199 = vector.extract_strided_slice %197 {offsets = [0, 128], sizes = [8, 128], strides = [1, 1]} : vector<8x384xf32> to vector<8x128xf32>
    %200 = vector.extract_strided_slice %197 {offsets = [0, 256], sizes = [8, 128], strides = [1, 1]} : vector<8x384xf32> to vector<8x128xf32>
    %201 = vector.extract_strided_slice %191 {offsets = [0, 384], sizes = [8, 128], strides = [1, 1]} : vector<8x512xf32> to vector<8x128xf32>
    %202 = math.tanh %201 : vector<8x128xf32>
    %203 = arith.mulf %199, %183 : vector<8x128xf32>
    %204 = arith.mulf %198, %202 : vector<8x128xf32>
    %205 = arith.addf %203, %204 : vector<8x128xf32>
    %206 = math.tanh %205 : vector<8x128xf32>
    %207 = arith.mulf %200, %206 : vector<8x128xf32>
    %c9_i32 = arith.constant 9 : i32
    %c8_i32_47 = arith.constant 8 : i32
    %208 = arith.muli %c9_i32, %c8_i32_47 : i32
    %209 = arith.index_cast %208 : i32 to index
    %c0_48 = arith.constant 0 : index
    %210 = vector.load %arg5[%209, %c0_48] : memref<128x512xf32, #tpu.memory_space<vmem>>, vector<8x512xf32>
    %211 = arith.truncf %207 : vector<8x128xf32> to vector<8x128xbf16>
    %cst_49 = arith.constant dense<0.000000e+00> : vector<8x512xf32>
    %212 = tpu.matmul %211, %7, %cst_49 {dimension_numbers = #tpu.dot_dimension_numbers<[1], [0], [0], [1], [0, 0, 1, 1], [], []>} : vector<8x128xbf16>, vector<128x512xbf16>, vector<8x512xf32> -> vector<8x512xf32>
    %213 = arith.addf %210, %212 : vector<8x512xf32>
    %214 = vector.extract_strided_slice %213 {offsets = [0, 0], sizes = [8, 384], strides = [1, 1]} : vector<8x512xf32> to vector<8x384xf32>
    %215 = arith.negf %214 : vector<8x384xf32>
    %216 = math.exp %215 : vector<8x384xf32>
    %cst_50 = arith.constant 1.000000e+00 : f32
    %217 = vector.broadcast %cst_50 : f32 to vector<8x384xf32>
    %218 = arith.addf %217, %216 : vector<8x384xf32>
    %219 = arith.divf %217, %218 : vector<8x384xf32>
    %220 = vector.extract_strided_slice %219 {offsets = [0, 0], sizes = [8, 128], strides = [1, 1]} : vector<8x384xf32> to vector<8x128xf32>
    %221 = vector.extract_strided_slice %219 {offsets = [0, 128], sizes = [8, 128], strides = [1, 1]} : vector<8x384xf32> to vector<8x128xf32>
    %222 = vector.extract_strided_slice %219 {offsets = [0, 256], sizes = [8, 128], strides = [1, 1]} : vector<8x384xf32> to vector<8x128xf32>
    %223 = vector.extract_strided_slice %213 {offsets = [0, 384], sizes = [8, 128], strides = [1, 1]} : vector<8x512xf32> to vector<8x128xf32>
    %224 = math.tanh %223 : vector<8x128xf32>
    %225 = arith.mulf %221, %205 : vector<8x128xf32>
    %226 = arith.mulf %220, %224 : vector<8x128xf32>
    %227 = arith.addf %225, %226 : vector<8x128xf32>
    %228 = math.tanh %227 : vector<8x128xf32>
    %229 = arith.mulf %222, %228 : vector<8x128xf32>
    %c10_i32 = arith.constant 10 : i32
    %c8_i32_51 = arith.constant 8 : i32
    %230 = arith.muli %c10_i32, %c8_i32_51 : i32
    %231 = arith.index_cast %230 : i32 to index
    %c0_52 = arith.constant 0 : index
    %232 = vector.load %arg5[%231, %c0_52] : memref<128x512xf32, #tpu.memory_space<vmem>>, vector<8x512xf32>
    %233 = arith.truncf %229 : vector<8x128xf32> to vector<8x128xbf16>
    %cst_53 = arith.constant dense<0.000000e+00> : vector<8x512xf32>
    %234 = tpu.matmul %233, %7, %cst_53 {dimension_numbers = #tpu.dot_dimension_numbers<[1], [0], [0], [1], [0, 0, 1, 1], [], []>} : vector<8x128xbf16>, vector<128x512xbf16>, vector<8x512xf32> -> vector<8x512xf32>
    %235 = arith.addf %232, %234 : vector<8x512xf32>
    %236 = vector.extract_strided_slice %235 {offsets = [0, 0], sizes = [8, 384], strides = [1, 1]} : vector<8x512xf32> to vector<8x384xf32>
    %237 = arith.negf %236 : vector<8x384xf32>
    %238 = math.exp %237 : vector<8x384xf32>
    %cst_54 = arith.constant 1.000000e+00 : f32
    %239 = vector.broadcast %cst_54 : f32 to vector<8x384xf32>
    %240 = arith.addf %239, %238 : vector<8x384xf32>
    %241 = arith.divf %239, %240 : vector<8x384xf32>
    %242 = vector.extract_strided_slice %241 {offsets = [0, 0], sizes = [8, 128], strides = [1, 1]} : vector<8x384xf32> to vector<8x128xf32>
    %243 = vector.extract_strided_slice %241 {offsets = [0, 128], sizes = [8, 128], strides = [1, 1]} : vector<8x384xf32> to vector<8x128xf32>
    %244 = vector.extract_strided_slice %241 {offsets = [0, 256], sizes = [8, 128], strides = [1, 1]} : vector<8x384xf32> to vector<8x128xf32>
    %245 = vector.extract_strided_slice %235 {offsets = [0, 384], sizes = [8, 128], strides = [1, 1]} : vector<8x512xf32> to vector<8x128xf32>
    %246 = math.tanh %245 : vector<8x128xf32>
    %247 = arith.mulf %243, %227 : vector<8x128xf32>
    %248 = arith.mulf %242, %246 : vector<8x128xf32>
    %249 = arith.addf %247, %248 : vector<8x128xf32>
    %250 = math.tanh %249 : vector<8x128xf32>
    %251 = arith.mulf %244, %250 : vector<8x128xf32>
    %c11_i32 = arith.constant 11 : i32
    %c8_i32_55 = arith.constant 8 : i32
    %252 = arith.muli %c11_i32, %c8_i32_55 : i32
    %253 = arith.index_cast %252 : i32 to index
    %c0_56 = arith.constant 0 : index
    %254 = vector.load %arg5[%253, %c0_56] : memref<128x512xf32, #tpu.memory_space<vmem>>, vector<8x512xf32>
    %255 = arith.truncf %251 : vector<8x128xf32> to vector<8x128xbf16>
    %cst_57 = arith.constant dense<0.000000e+00> : vector<8x512xf32>
    %256 = tpu.matmul %255, %7, %cst_57 {dimension_numbers = #tpu.dot_dimension_numbers<[1], [0], [0], [1], [0, 0, 1, 1], [], []>} : vector<8x128xbf16>, vector<128x512xbf16>, vector<8x512xf32> -> vector<8x512xf32>
    %257 = arith.addf %254, %256 : vector<8x512xf32>
    %258 = vector.extract_strided_slice %257 {offsets = [0, 0], sizes = [8, 384], strides = [1, 1]} : vector<8x512xf32> to vector<8x384xf32>
    %259 = arith.negf %258 : vector<8x384xf32>
    %260 = math.exp %259 : vector<8x384xf32>
    %cst_58 = arith.constant 1.000000e+00 : f32
    %261 = vector.broadcast %cst_58 : f32 to vector<8x384xf32>
    %262 = arith.addf %261, %260 : vector<8x384xf32>
    %263 = arith.divf %261, %262 : vector<8x384xf32>
    %264 = vector.extract_strided_slice %263 {offsets = [0, 0], sizes = [8, 128], strides = [1, 1]} : vector<8x384xf32> to vector<8x128xf32>
    %265 = vector.extract_strided_slice %263 {offsets = [0, 128], sizes = [8, 128], strides = [1, 1]} : vector<8x384xf32> to vector<8x128xf32>
    %266 = vector.extract_strided_slice %263 {offsets = [0, 256], sizes = [8, 128], strides = [1, 1]} : vector<8x384xf32> to vector<8x128xf32>
    %267 = vector.extract_strided_slice %257 {offsets = [0, 384], sizes = [8, 128], strides = [1, 1]} : vector<8x512xf32> to vector<8x128xf32>
    %268 = math.tanh %267 : vector<8x128xf32>
    %269 = arith.mulf %265, %249 : vector<8x128xf32>
    %270 = arith.mulf %264, %268 : vector<8x128xf32>
    %271 = arith.addf %269, %270 : vector<8x128xf32>
    %272 = math.tanh %271 : vector<8x128xf32>
    %273 = arith.mulf %266, %272 : vector<8x128xf32>
    %c12_i32 = arith.constant 12 : i32
    %c8_i32_59 = arith.constant 8 : i32
    %274 = arith.muli %c12_i32, %c8_i32_59 : i32
    %275 = arith.index_cast %274 : i32 to index
    %c0_60 = arith.constant 0 : index
    %276 = vector.load %arg5[%275, %c0_60] : memref<128x512xf32, #tpu.memory_space<vmem>>, vector<8x512xf32>
    %277 = arith.truncf %273 : vector<8x128xf32> to vector<8x128xbf16>
    %cst_61 = arith.constant dense<0.000000e+00> : vector<8x512xf32>
    %278 = tpu.matmul %277, %7, %cst_61 {dimension_numbers = #tpu.dot_dimension_numbers<[1], [0], [0], [1], [0, 0, 1, 1], [], []>} : vector<8x128xbf16>, vector<128x512xbf16>, vector<8x512xf32> -> vector<8x512xf32>
    %279 = arith.addf %276, %278 : vector<8x512xf32>
    %280 = vector.extract_strided_slice %279 {offsets = [0, 0], sizes = [8, 384], strides = [1, 1]} : vector<8x512xf32> to vector<8x384xf32>
    %281 = arith.negf %280 : vector<8x384xf32>
    %282 = math.exp %281 : vector<8x384xf32>
    %cst_62 = arith.constant 1.000000e+00 : f32
    %283 = vector.broadcast %cst_62 : f32 to vector<8x384xf32>
    %284 = arith.addf %283, %282 : vector<8x384xf32>
    %285 = arith.divf %283, %284 : vector<8x384xf32>
    %286 = vector.extract_strided_slice %285 {offsets = [0, 0], sizes = [8, 128], strides = [1, 1]} : vector<8x384xf32> to vector<8x128xf32>
    %287 = vector.extract_strided_slice %285 {offsets = [0, 128], sizes = [8, 128], strides = [1, 1]} : vector<8x384xf32> to vector<8x128xf32>
    %288 = vector.extract_strided_slice %285 {offsets = [0, 256], sizes = [8, 128], strides = [1, 1]} : vector<8x384xf32> to vector<8x128xf32>
    %289 = vector.extract_strided_slice %279 {offsets = [0, 384], sizes = [8, 128], strides = [1, 1]} : vector<8x512xf32> to vector<8x128xf32>
    %290 = math.tanh %289 : vector<8x128xf32>
    %291 = arith.mulf %287, %271 : vector<8x128xf32>
    %292 = arith.mulf %286, %290 : vector<8x128xf32>
    %293 = arith.addf %291, %292 : vector<8x128xf32>
    %294 = math.tanh %293 : vector<8x128xf32>
    %295 = arith.mulf %288, %294 : vector<8x128xf32>
    %c13_i32 = arith.constant 13 : i32
    %c8_i32_63 = arith.constant 8 : i32
    %296 = arith.muli %c13_i32, %c8_i32_63 : i32
    %297 = arith.index_cast %296 : i32 to index
    %c0_64 = arith.constant 0 : index
    %298 = vector.load %arg5[%297, %c0_64] : memref<128x512xf32, #tpu.memory_space<vmem>>, vector<8x512xf32>
    %299 = arith.truncf %295 : vector<8x128xf32> to vector<8x128xbf16>
    %cst_65 = arith.constant dense<0.000000e+00> : vector<8x512xf32>
    %300 = tpu.matmul %299, %7, %cst_65 {dimension_numbers = #tpu.dot_dimension_numbers<[1], [0], [0], [1], [0, 0, 1, 1], [], []>} : vector<8x128xbf16>, vector<128x512xbf16>, vector<8x512xf32> -> vector<8x512xf32>
    %301 = arith.addf %298, %300 : vector<8x512xf32>
    %302 = vector.extract_strided_slice %301 {offsets = [0, 0], sizes = [8, 384], strides = [1, 1]} : vector<8x512xf32> to vector<8x384xf32>
    %303 = arith.negf %302 : vector<8x384xf32>
    %304 = math.exp %303 : vector<8x384xf32>
    %cst_66 = arith.constant 1.000000e+00 : f32
    %305 = vector.broadcast %cst_66 : f32 to vector<8x384xf32>
    %306 = arith.addf %305, %304 : vector<8x384xf32>
    %307 = arith.divf %305, %306 : vector<8x384xf32>
    %308 = vector.extract_strided_slice %307 {offsets = [0, 0], sizes = [8, 128], strides = [1, 1]} : vector<8x384xf32> to vector<8x128xf32>
    %309 = vector.extract_strided_slice %307 {offsets = [0, 128], sizes = [8, 128], strides = [1, 1]} : vector<8x384xf32> to vector<8x128xf32>
    %310 = vector.extract_strided_slice %307 {offsets = [0, 256], sizes = [8, 128], strides = [1, 1]} : vector<8x384xf32> to vector<8x128xf32>
    %311 = vector.extract_strided_slice %301 {offsets = [0, 384], sizes = [8, 128], strides = [1, 1]} : vector<8x512xf32> to vector<8x128xf32>
    %312 = math.tanh %311 : vector<8x128xf32>
    %313 = arith.mulf %309, %293 : vector<8x128xf32>
    %314 = arith.mulf %308, %312 : vector<8x128xf32>
    %315 = arith.addf %313, %314 : vector<8x128xf32>
    %316 = math.tanh %315 : vector<8x128xf32>
    %317 = arith.mulf %310, %316 : vector<8x128xf32>
    %c14_i32 = arith.constant 14 : i32
    %c8_i32_67 = arith.constant 8 : i32
    %318 = arith.muli %c14_i32, %c8_i32_67 : i32
    %319 = arith.index_cast %318 : i32 to index
    %c0_68 = arith.constant 0 : index
    %320 = vector.load %arg5[%319, %c0_68] : memref<128x512xf32, #tpu.memory_space<vmem>>, vector<8x512xf32>
    %321 = arith.truncf %317 : vector<8x128xf32> to vector<8x128xbf16>
    %cst_69 = arith.constant dense<0.000000e+00> : vector<8x512xf32>
    %322 = tpu.matmul %321, %7, %cst_69 {dimension_numbers = #tpu.dot_dimension_numbers<[1], [0], [0], [1], [0, 0, 1, 1], [], []>} : vector<8x128xbf16>, vector<128x512xbf16>, vector<8x512xf32> -> vector<8x512xf32>
    %323 = arith.addf %320, %322 : vector<8x512xf32>
    %324 = vector.extract_strided_slice %323 {offsets = [0, 0], sizes = [8, 384], strides = [1, 1]} : vector<8x512xf32> to vector<8x384xf32>
    %325 = arith.negf %324 : vector<8x384xf32>
    %326 = math.exp %325 : vector<8x384xf32>
    %cst_70 = arith.constant 1.000000e+00 : f32
    %327 = vector.broadcast %cst_70 : f32 to vector<8x384xf32>
    %328 = arith.addf %327, %326 : vector<8x384xf32>
    %329 = arith.divf %327, %328 : vector<8x384xf32>
    %330 = vector.extract_strided_slice %329 {offsets = [0, 0], sizes = [8, 128], strides = [1, 1]} : vector<8x384xf32> to vector<8x128xf32>
    %331 = vector.extract_strided_slice %329 {offsets = [0, 128], sizes = [8, 128], strides = [1, 1]} : vector<8x384xf32> to vector<8x128xf32>
    %332 = vector.extract_strided_slice %329 {offsets = [0, 256], sizes = [8, 128], strides = [1, 1]} : vector<8x384xf32> to vector<8x128xf32>
    %333 = vector.extract_strided_slice %323 {offsets = [0, 384], sizes = [8, 128], strides = [1, 1]} : vector<8x512xf32> to vector<8x128xf32>
    %334 = math.tanh %333 : vector<8x128xf32>
    %335 = arith.mulf %331, %315 : vector<8x128xf32>
    %336 = arith.mulf %330, %334 : vector<8x128xf32>
    %337 = arith.addf %335, %336 : vector<8x128xf32>
    %338 = math.tanh %337 : vector<8x128xf32>
    %339 = arith.mulf %332, %338 : vector<8x128xf32>
    %c15_i32 = arith.constant 15 : i32
    %c8_i32_71 = arith.constant 8 : i32
    %340 = arith.muli %c15_i32, %c8_i32_71 : i32
    %341 = arith.index_cast %340 : i32 to index
    %c0_72 = arith.constant 0 : index
    %342 = vector.load %arg5[%341, %c0_72] : memref<128x512xf32, #tpu.memory_space<vmem>>, vector<8x512xf32>
    %343 = arith.truncf %339 : vector<8x128xf32> to vector<8x128xbf16>
    %cst_73 = arith.constant dense<0.000000e+00> : vector<8x512xf32>
    %344 = tpu.matmul %343, %7, %cst_73 {dimension_numbers = #tpu.dot_dimension_numbers<[1], [0], [0], [1], [0, 0, 1, 1], [], []>} : vector<8x128xbf16>, vector<128x512xbf16>, vector<8x512xf32> -> vector<8x512xf32>
    %345 = arith.addf %342, %344 : vector<8x512xf32>
    %346 = vector.extract_strided_slice %345 {offsets = [0, 0], sizes = [8, 384], strides = [1, 1]} : vector<8x512xf32> to vector<8x384xf32>
    %347 = arith.negf %346 : vector<8x384xf32>
    %348 = math.exp %347 : vector<8x384xf32>
    %cst_74 = arith.constant 1.000000e+00 : f32
    %349 = vector.broadcast %cst_74 : f32 to vector<8x384xf32>
    %350 = arith.addf %349, %348 : vector<8x384xf32>
    %351 = arith.divf %349, %350 : vector<8x384xf32>
    %352 = vector.extract_strided_slice %351 {offsets = [0, 0], sizes = [8, 128], strides = [1, 1]} : vector<8x384xf32> to vector<8x128xf32>
    %353 = vector.extract_strided_slice %351 {offsets = [0, 128], sizes = [8, 128], strides = [1, 1]} : vector<8x384xf32> to vector<8x128xf32>
    %354 = vector.extract_strided_slice %351 {offsets = [0, 256], sizes = [8, 128], strides = [1, 1]} : vector<8x384xf32> to vector<8x128xf32>
    %355 = vector.extract_strided_slice %345 {offsets = [0, 384], sizes = [8, 128], strides = [1, 1]} : vector<8x512xf32> to vector<8x128xf32>
    %356 = math.tanh %355 : vector<8x128xf32>
    %357 = arith.mulf %353, %337 : vector<8x128xf32>
    %358 = arith.mulf %352, %356 : vector<8x128xf32>
    %359 = arith.addf %357, %358 : vector<8x128xf32>
    %360 = math.tanh %359 : vector<8x128xf32>
    %361 = arith.mulf %354, %360 : vector<8x128xf32>
    %c16_i32 = arith.constant 16 : i32
    %362 = vector.extract_strided_slice %361 {offsets = [0, 0], sizes = [8, 64], strides = [1, 1]} : vector<8x128xf32> to vector<8x64xf32>
    %c0_75 = arith.constant 0 : index
    %c0_76 = arith.constant 0 : index
    %363 = vector.load %arg4[%c0_75, %c0_76] : memref<8x64xf32, #tpu.memory_space<vmem>>, vector<8x64xf32>
    tpu.vector_store %arg4[%c0_75, %c0_76], %362 {strides = array<i32>} : memref<8x64xf32, #tpu.memory_space<vmem>>, vector<8x64xf32>,
    return
  }
}

</mosaic_0001>

<bundles_post_ra>
// kernel: lstm_feature_extractor.1
= control target key start
LH: loop header
LB: loop body
LE: loop exit
PB: predicated region body
PF: predicated region fallthrough
CT: control target
= control target key end

     0   :  { %vm658_vm0 = vcmask 1045504   ;;  %vm633_vm1 = vcmask 359424   ;;  %s6616_s0 = inlined_call_operand.vmem [shape: bf16[128,300], index: 0, kind: input, shape index: {}]   ;;  %s6617_s1 = inlined_call_operand.vmem [shape: bf16[300,512], index: 1, kind: input, shape index: {}]   ;;  %s6618_s2 = inlined_call_operand.vmem [shape: bf16[128,512], index: 2, kind: input, shape index: {}]   ;;  %s6619_s3 = inlined_call_operand.vmem [shape: f32[1,512], index: 3, kind: input, shape index: {}]   ;;  %s6620_s4 = inlined_call_operand.hbm [shape: f32[8,64], index: 4, kind: output, shape index: {}]  }
   0x1   :  { %v3726_v0 = vld [vmem:[%s6617_s1 + $0xe0] sm:$0xf]  ;;  %v4178_v1 = vld [vmem:[%s6617_s1 + $0xec] sm:$0xf0]  ;;  %v4176_v5 = vld [vmem:[%s6617_s1 + $0xe4] sm:$0xf] }
   0x2   :  { %v3854_v2 = vld [vmem:[%s6617_s1 + $0x1e0] sm:$0xf]  ;;  %v3727_v3 = vor.u32 %v4178_v1, %v3726_v0  ;;  %v4210_v4 = vld [vmem:[%s6617_s1 + $0x1ec] sm:$0xf0]  ;;  %v3728_v6 = vld [vmem:[%s6617_s1 + $0xf0] sm:$0xf0] }
   0x3   :  { %v3855_v7 = vor.u32 %v4210_v4, %v3854_v2  ;;  %v3731_v8 = vor.u32 %v4176_v5, %v3728_v6  ;;  %v3902_v9 = vld [vmem:[%s6617_s1 + $0x240] sm:$0xf]  ;;  %v4222_v10 = vld [vmem:[%s6617_s1 + $0x24c] sm:$0x30]  ;;  %v4172_v17 = vld [vmem:[%s6617_s1 + $0xc4] sm:$0xf] }
   0x4   :  { %671 = vmatpush.bf16.msra.mxu0 %v3727_v3  ;;  %v3903_v11 = vor.u32 %v4222_v10, %v3902_v9  ;;  %v3710_v12 = vld [vmem:[%s6617_s1 + $0xc0] sm:$0xf]  ;;  %v4174_v13 = vld [vmem:[%s6617_s1 + $0xcc] sm:$0xf0]  ;;  %v3712_v18 = vld [vmem:[%s6617_s1 + $0xd0] sm:$0xf0] }
   0x5   :  { %v3838_v14 = vld [vmem:[%s6617_s1 + $0x1c0] sm:$0xf]  ;;  %720 = vmatpush.bf16.msra.mxu1 %v3855_v7  ;;  %818 = vmatpush.bf16.msra.mxu3 %v3731_v8  ;;  %v3711_v15 = vor.u32 %v4174_v13, %v3710_v12  ;;  %v4206_v16 = vld [vmem:[%s6617_s1 + $0x1cc] sm:$0xf0]  ;;  %v3715_v21 = vor.u32 %v4172_v17, %v3712_v18  ;;  %v4168_v30 = vld [vmem:[%s6617_s1 + $0xa4] sm:$0xf] }
   0x6   :  { %v660_v19 = vsel %vm658_vm0, %v3903_v11, 0  ;;  %v3839_v20 = vor.u32 %v4206_v16, %v3838_v14  ;;  %v3886_v22 = vld [vmem:[%s6617_s1 + $0x220] sm:$0xf]  ;;  %v4218_v23 = vld [vmem:[%s6617_s1 + $0x22c] sm:$0xf0] }
   0x7   :  { %774 = vmatpush.bf16.msra.mxu2 %v660_v19  ;;  %v3887_v24 = vor.u32 %v4218_v23, %v3886_v22  ;;  %v3694_v25 = vld [vmem:[%s6617_s1 + $0xa0] sm:$0xf]  ;;  %v4170_v26 = vld [vmem:[%s6617_s1 + $0xac] sm:$0xf0]  ;;  %v3696_v31 = vld [vmem:[%s6617_s1 + $0xb0] sm:$0xf0] }
   0x8   :  { %v3822_v27 = vld [vmem:[%s6617_s1 + $0x1a0] sm:$0xf]  ;;  %672 = vmatpush.bf16.msra.mxu0 %v3711_v15  ;;  %v3695_v28 = vor.u32 %v4170_v26, %v3694_v25  ;;  %v4202_v29 = vld [vmem:[%s6617_s1 + $0x1ac] sm:$0xf0]  ;;  %v3699_v33 = vor.u32 %v4168_v30, %v3696_v31  ;;  %v3526_v41 = vld [vmem:[%s6616_s0 + $0x8] sm:$0xf] }
   0x9   :  { %721 = vmatpush.bf16.msra.mxu1 %v3839_v20  ;;  %819 = vmatpush.bf16.msra.mxu3 %v3715_v21  ;;  %v3823_v32 = vor.u32 %v4202_v29, %v3822_v27  ;;  %v3870_v34 = vld [vmem:[%s6617_s1 + $0x200] sm:$0xf]  ;;  %v4214_v35 = vld [vmem:[%s6617_s1 + $0x20c] sm:$0xf0]  ;;  %v4126_v42 = vld [vmem:[%s6616_s0 + $0x10] sm:$0xf0] }
   0xa   :  { %v3678_v36 = vld [vmem:[%s6617_s1 + $0x80] sm:$0xf]  ;;  %v4166_v37 = vld [vmem:[%s6617_s1 + $0x8c] sm:$0xf0]  ;;  %v3871_v40 = vor.u32 %v4214_v35, %v3870_v34  ;;  %v4164_v43 = vld [vmem:[%s6617_s1 + $0x84] sm:$0xf]  ;;  %v4674_v51 = vor.u32 %v4126_v42, %v3526_v41 }
   0xb   :  { %v3806_v38 = vld [vmem:[%s6617_s1 + $0x180] sm:$0xf]  ;;  %v4198_v39 = vld [vmem:[%s6617_s1 + $0x18c] sm:$0xf0]  ;;  %775 = vmatpush.bf16.msra.mxu2 %v3887_v24  ;;  %v3679_v44 = vor.u32 %v4166_v37, %v3678_v36  ;;  %v3680_v45 = vld [vmem:[%s6617_s1 + $0x90] sm:$0xf0] }
   0xc   :  { %673 = vmatpush.bf16.msra.mxu0 %v3695_v28  ;;  %v3807_v46 = vor.u32 %v4198_v39, %v3806_v38  ;;  %v3683_v47 = vor.u32 %v4164_v43, %v3680_v45  ;;  %v3662_v48 = vld [vmem:[%s6617_s1 + $0x60] sm:$0xf]  ;;  %v4162_v49 = vld [vmem:[%s6617_s1 + $0x6c] sm:$0xf0]  ;;  %v4160_v53 = vld [vmem:[%s6617_s1 + $0x64] sm:$0xf] }
   0xd   :  { %722 = vmatpush.bf16.msra.mxu1 %v3823_v32  ;;  %820 = vmatpush.bf16.msra.mxu3 %v3699_v33  ;;  %v3790_v50 = vld [vmem:[%s6617_s1 + $0x160] sm:$0xf]  ;;  %v4194_v52 = vld [vmem:[%s6617_s1 + $0x16c] sm:$0xf0]  ;;  %v3664_v54 = vld [vmem:[%s6617_s1 + $0x70] sm:$0xf0]  ;;  %v3663_v55 = vor.u32 %v4162_v49, %v3662_v48 }
   0xe   :  { %v3646_v56 = vld [vmem:[%s6617_s1 + $0x40] sm:$0xf]  ;;  %v4158_v57 = vld [vmem:[%s6617_s1 + $0x4c] sm:$0xf0]  ;;  %v3791_v58 = vor.u32 %v4194_v52, %v3790_v50  ;;  %v3667_v59 = vor.u32 %v4160_v53, %v3664_v54  ;;  %v4156_v62 = vld [vmem:[%s6617_s1 + $0x44] sm:$0xf] }
   0xf   :  { %776 = vmatpush.bf16.msra.mxu2 %v3871_v40  ;;  %v3774_v60 = vld [vmem:[%s6617_s1 + $0x140] sm:$0xf]  ;;  %v4190_v61 = vld [vmem:[%s6617_s1 + $0x14c] sm:$0xf0]  ;;  %v3648_v63 = vld [vmem:[%s6617_s1 + $0x50] sm:$0xf0]  ;;  %v3647_v3 = vor.u32 %v4158_v57, %v3646_v56 }
  0x10   :  { %674 = vmatpush.bf16.msra.mxu0 %v3679_v44  ;;  %v4208_v0 = vld [vmem:[%s6617_s1 + $0x1e4] sm:$0xf]  ;;  %v3856_v1 = vld [vmem:[%s6617_s1 + $0x1f0] sm:$0xf0]  ;;  %v3775_v4 = vor.u32 %v4190_v61, %v3774_v60  ;;  %v3651_v5 = vor.u32 %v4156_v62, %v3648_v63  ;;  %v3630_v6 = vld [vmem:[%s6617_s1 + $0x20] sm:$0xf] }
  0x11   :  { %723 = vmatpush.bf16.msra.mxu1 %v3807_v46  ;;  %821 = vmatpush.bf16.msra.mxu3 %v3683_v47  ;;  %v3859_v2 = vor.u32 %v4208_v0, %v3856_v1  ;;  %v4154_v7 = vld [vmem:[%s6617_s1 + $0x2c] sm:$0xf0]  ;;  %v3758_v8 = vld [vmem:[%s6617_s1 + $0x120] sm:$0xf]  ;;  %v4152_v10 = vld [vmem:[%s6617_s1 + $0x24] sm:$0xf] }
  0x12   :  { %3916 = vmatmul.msk.bf16.vlgmr.msra.gmra.mxu2 %vm633_vm1, %v4674_v51  ;;  %v4186_v9 = vld [vmem:[%s6617_s1 + $0x12c] sm:$0xf0]  ;;  %v3632_v11 = vld [vmem:[%s6617_s1 + $0x30] sm:$0xf0]  ;;  %v3614_v12 = vld [vmem:[%s6617_s1] sm:$0xf]  ;;  %v3631_v15 = vor.u32 %v4154_v7, %v3630_v6 }
  0x13   :  { %867 = vmatpush.bf16.msrb.mxu2 %v3859_v2  ;;  %v4150_v13 = vld [vmem:[%s6617_s1 + $0xc] sm:$0xf0]  ;;  %v4204_v14 = vld [vmem:[%s6617_s1 + $0x1c4] sm:$0xf]  ;;  %v3904_v17 = vld [vmem:[%s6617_s1 + $0x250] sm:$0x30]  ;;  %v3759_v19 = vor.u32 %v4186_v9, %v3758_v8  ;;  %v3635_v20 = vor.u32 %v4152_v10, %v3632_v11 }
  0x14   :  { %675 = vmatpush.bf16.msra.mxu0 %v3663_v55  ;;  %v4220_v16 = vld [vmem:[%s6617_s1 + $0x244] sm:$0xf]  ;;  %v3840_v18 = vld [vmem:[%s6617_s1 + $0x1d0] sm:$0xf0]  ;;  %v3742_v21 = vld [vmem:[%s6617_s1 + $0x100] sm:$0xf]  ;;  %v3615_v32 = vor.u32 %v4150_v13, %v3614_v12 }
  0x15   :  { %724 = vmatpush.bf16.msra.mxu1 %v3791_v58  ;;  %822 = vmatpush.bf16.msra.mxu3 %v3667_v59  ;;  %v4182_v22 = vld [vmem:[%s6617_s1 + $0x10c] sm:$0xf0]  ;;  %v3538_v23 = vld [vmem:[%s6616_s0 + $0x20] sm:$0xf]  ;;  %v3843_v24 = vor.u32 %v4204_v14, %v3840_v18  ;;  %v4129_v25 = vld [vmem:[%s6616_s0 + $0x28] sm:$0xf0]  ;;  %v3907_v30 = vor.u32 %v4220_v16, %v3904_v17 }
  0x16   :  { %v4148_v26 = vld [vmem:[%s6617_s1 + $0x4] sm:$0xf]  ;;  %v3616_v27 = vld [vmem:[%s6617_s1 + $0x10] sm:$0xf0]  ;;  %v3518_v28 = vld [vmem:[%s6616_s0] sm:$0xf]  ;;  %v3743_v36 = vor.u32 %v4182_v22, %v3742_v21  ;;  %v4789_v41 = vor.u32 %v4129_v25, %v3538_v23 }
  0x17   :  { %v4125_v29 = vld [vmem:[%s6616_s0 + $0x8] sm:$0xf0]  ;;  %868 = vmatpush.bf16.msrb.mxu2 %v3843_v24  ;;  %v3734_v31 = vld [vmem:[%s6617_s1 + $0xe8] sm:$0xf]  ;;  %v4179_v33 = vld [vmem:[%s6617_s1 + $0xf4] sm:$0xf0]  ;;  %v3619_v37 = vor.u32 %v4148_v26, %v3616_v27 }
  0x18   :  { %676 = vmatpush.bf16.msra.mxu0 %v3647_v3  ;;  %v4200_v34 = vld [vmem:[%s6617_s1 + $0x1a4] sm:$0xf]  ;;  %v3824_v35 = vld [vmem:[%s6617_s1 + $0x1b0] sm:$0xf0]  ;;  %v3520_v39 = vld [vmem:[%s6616_s0 + $0xc] sm:$0xf0] }
  0x19   :  { %725 = vmatpush.bf16.msra.mxu1 %v3775_v4  ;;  %823 = vmatpush.bf16.msra.mxu3 %v3651_v5  ;;  %v4124_v38 = vld [vmem:[%s6616_s0 + $0x4] sm:$0xf]  ;;  %v3827_v40 = vor.u32 %v4200_v34, %v3824_v35  ;;  %v3862_v42 = vld [vmem:[%s6617_s1 + $0x1e8] sm:$0xf]  ;;  %v4211_v43 = vld [vmem:[%s6617_s1 + $0x1f4] sm:$0xf0] }
  0x1c   :  { %677 = vmatpush.bf16.msra.mxu0 %v3631_v15 }
  0x1d   :  { %726 = vmatpush.bf16.msra.mxu1 %v3759_v19  ;;  %824 = vmatpush.bf16.msra.mxu3 %v3635_v20 }
  0x1e   :  { %9 = vsyncpa [#allocation4], 0  ;;  %v4797_v44 = vor.u32 %v4125_v29, %v3518_v28  ;;  %v663_v45 = vsel %vm658_vm0, %v3907_v30, 0  ;;  %v3735_v46 = vor.u32 %v4179_v33, %v3734_v31  ;;  %869 = vmatpush.bf16.msrb.mxu2 %v3827_v40  ;;  %v4800_v47 = vor.u32 %v4124_v38, %v3520_v39  ;;  %v3718_v48 = vld [vmem:[%s6617_s1 + $0xc8] sm:$0xf]  ;;  %s3507_s16 = sshll.u32 %s6620_s4, 4  ;;  %s3508_s16 = int_to_ptr.hbm [resolvable:$true] %s3507_s16 }
  0x1f   :  { %v4175_v49 = vld [vmem:[%s6617_s1 + $0xd4] sm:$0xf0]  ;;  %v3863_v50 = vor.u32 %v4211_v43, %v3862_v42  ;;  %v3846_v52 = vld [vmem:[%s6617_s1 + $0x1c8] sm:$0xf]  ;;  %v4196_v55 = vld [vmem:[%s6617_s1 + $0x184] sm:$0xf] }
  0x20   :  { %678 = vmatpush.bf16.msra.mxu0 %v3615_v32  ;;  %v4207_v53 = vld [vmem:[%s6617_s1 + $0x1d4] sm:$0xf0]  ;;  %v3719_v54 = vor.u32 %v4175_v49, %v3718_v48  ;;  %v3808_v56 = vld [vmem:[%s6617_s1 + $0x190] sm:$0xf0]  ;;  %v4216_v57 = vld [vmem:[%s6617_s1 + $0x224] sm:$0xf] }
  0x21   :  { %727 = vmatpush.bf16.msra.mxu1 %v3743_v36  ;;  %825 = vmatpush.bf16.msra.mxu3 %v3619_v37  ;;  %v3847_v58 = vor.u32 %v4207_v53, %v3846_v52  ;;  %v3811_v59 = vor.u32 %v4196_v55, %v3808_v56  ;;  %v3888_v60 = vld [vmem:[%s6617_s1 + $0x230] sm:$0xf0]  ;;  %v3702_v61 = vld [vmem:[%s6617_s1 + $0xa8] sm:$0xf]  ;;  %v4171_v62 = vld [vmem:[%s6617_s1 + $0xb4] sm:$0xf0] }
  0x22   :  { %3917 = vmatmul.msk.bf16.gmra.mxu2 %vm633_vm1, %v4789_v41  ;;  %v3891_v63 = vor.u32 %v4216_v57, %v3888_v60  ;;  %v3703_v0 = vor.u32 %v4171_v62, %v3702_v61  ;;  %v3550_v1 = vld [vmem:[%s6616_s0 + $0x38] sm:$0xf]  ;;  %v4132_v2 = vld [vmem:[%s6616_s0 + $0x40] sm:$0xf0]  ;;  %v4127_v5 = vld [vmem:[%s6616_s0 + $0x1c] sm:$0xf] }
  0x23   :  { %679 = vmatmul.bf16.vlgmr.msra.gmra.mxu0 %v4797_v44  ;;  %870 = vmatpush.bf16.msrb.mxu2 %v3811_v59  ;;  %v3530_v3 = vld [vmem:[%s6616_s0 + $0x18] sm:$0xf]  ;;  %v4128_v4 = vld [vmem:[%s6616_s0 + $0x20] sm:$0xf0]  ;;  %v3532_v6 = vld [vmem:[%s6616_s0 + $0x24] sm:$0xf0]  ;;  %v4855_v7 = vor.u32 %v4132_v2, %v3550_v1 }
  0x24   :  { %921 = vmatpush.bf16.msrb.mxu0 %v663_v45  ;;  %728 = vmatmul.bf16.vlgmr.msra.gmra.mxu1 %v4800_v47  ;;  %v4857_v8 = vor.u32 %v4128_v4, %v3530_v3  ;;  %v4859_v9 = vor.u32 %v4127_v5, %v3532_v6  ;;  %v3830_v10 = vld [vmem:[%s6617_s1 + $0x1a8] sm:$0xf]  ;;  %v4203_v11 = vld [vmem:[%s6617_s1 + $0x1b4] sm:$0xf0]  ;;  %v4192_v13 = vld [vmem:[%s6617_s1 + $0x164] sm:$0xf] }
  0x25   :  { %965 = vmatpush.bf16.msrb.mxu1 %v3735_v46  ;;  %826 = vmatmul.bf16.vlgmr.msra.gmra.mxu3 %v4797_v44  ;;  %v3831_v12 = vor.u32 %v4203_v11, %v3830_v10  ;;  %v3792_v14 = vld [vmem:[%s6617_s1 + $0x170] sm:$0xf0]  ;;  %v3686_v15 = vld [vmem:[%s6617_s1 + $0x88] sm:$0xf]  ;;  %v4167_v17 = vld [vmem:[%s6617_s1 + $0x94] sm:$0xf0] }
  0x26   :  { %1014 = vmatpush.bf16.msrb.mxu3 %v3863_v50  ;;  %v3795_v16 = vor.u32 %v4192_v13, %v3792_v14  ;;  %v3687_v18 = vor.u32 %v4167_v17, %v3686_v15  ;;  %v3562_v19 = vld [vmem:[%s6616_s0 + $0x50] sm:$0xf]  ;;  %v4135_v20 = vld [vmem:[%s6616_s0 + $0x58] sm:$0xf0]  ;;  %v4130_v23 = vld [vmem:[%s6616_s0 + $0x34] sm:$0xf] }
  0x27   :  { %v3542_v21 = vld [vmem:[%s6616_s0 + $0x30] sm:$0xf]  ;;  %v4131_v22 = vld [vmem:[%s6616_s0 + $0x38] sm:$0xf0]  ;;  %v3544_v24 = vld [vmem:[%s6616_s0 + $0x3c] sm:$0xf0]  ;;  %v4902_v25 = vor.u32 %v4135_v20, %v3562_v19 }
  0x28   :  { %922 = vmatpush.bf16.msrb.mxu0 %v3891_v63  ;;  %871 = vmatpush.bf16.msrb.mxu2 %v3795_v16  ;;  %v4904_v26 = vor.u32 %v4131_v22, %v3542_v21  ;;  %v4906_v27 = vor.u32 %v4130_v23, %v3544_v24  ;;  %v3814_v28 = vld [vmem:[%s6617_s1 + $0x188] sm:$0xf]  ;;  %v4199_v29 = vld [vmem:[%s6617_s1 + $0x194] sm:$0xf0]  ;;  %v4188_v31 = vld [vmem:[%s6617_s1 + $0x144] sm:$0xf] }
  0x29   :  { %966 = vmatpush.bf16.msrb.mxu1 %v3719_v54  ;;  %v3815_v30 = vor.u32 %v4199_v29, %v3814_v28  ;;  %v3776_v32 = vld [vmem:[%s6617_s1 + $0x150] sm:$0xf0]  ;;  %v3670_v33 = vld [vmem:[%s6617_s1 + $0x68] sm:$0xf]  ;;  %v4163_v35 = vld [vmem:[%s6617_s1 + $0x74] sm:$0xf0] }
  0x2a   :  { %1015 = vmatpush.bf16.msrb.mxu3 %v3847_v58  ;;  %v3779_v34 = vor.u32 %v4188_v31, %v3776_v32  ;;  %v3671_v36 = vor.u32 %v4163_v35, %v3670_v33  ;;  %v3574_v37 = vld [vmem:[%s6616_s0 + $0x68] sm:$0xf]  ;;  %v4138_v38 = vld [vmem:[%s6616_s0 + $0x70] sm:$0xf0]  ;;  %v4133_v42 = vld [vmem:[%s6616_s0 + $0x4c] sm:$0xf] }
  0x2b   :  { %v3554_v39 = vld [vmem:[%s6616_s0 + $0x48] sm:$0xf]  ;;  %v4134_v40 = vld [vmem:[%s6616_s0 + $0x50] sm:$0xf0]  ;;  %v3556_v43 = vld [vmem:[%s6616_s0 + $0x54] sm:$0xf0]  ;;  %v4949_v45 = vor.u32 %v4138_v38, %v3574_v37 }
  0x2c   :  { %872 = vmatpush.bf16.msrb.mxu2 %v3779_v34  ;;  %v4951_v46 = vor.u32 %v4134_v40, %v3554_v39  ;;  %v4953_v48 = vor.u32 %v4133_v42, %v3556_v43  ;;  %v3798_v49 = vld [vmem:[%s6617_s1 + $0x168] sm:$0xf]  ;;  %v4195_v50 = vld [vmem:[%s6617_s1 + $0x174] sm:$0xf0]  ;;  %v4212_v53 = vld [vmem:[%s6617_s1 + $0x204] sm:$0xf] }
  0x2d   :  { %967 = vmatpush.bf16.msrb.mxu1 %v3703_v0  ;;  %v3799_v52 = vor.u32 %v4195_v50, %v3798_v49  ;;  %v3872_v54 = vld [vmem:[%s6617_s1 + $0x210] sm:$0xf0]  ;;  %v4184_v55 = vld [vmem:[%s6617_s1 + $0x124] sm:$0xf]  ;;  %v3654_v58 = vld [vmem:[%s6617_s1 + $0x48] sm:$0xf] }
  0x2e   :  { %1016 = vmatpush.bf16.msrb.mxu3 %v3831_v12  ;;  %v3875_v56 = vor.u32 %v4212_v53, %v3872_v54  ;;  %v3760_v57 = vld [vmem:[%s6617_s1 + $0x130] sm:$0xf0]  ;;  %v4159_v59 = vld [vmem:[%s6617_s1 + $0x54] sm:$0xf0]  ;;  %v3586_v62 = vld [vmem:[%s6616_s0 + $0x80] sm:$0xf] }
  0x2f   :  { %v3763_v60 = vor.u32 %v4184_v55, %v3760_v57  ;;  %v3655_v61 = vor.u32 %v4159_v59, %v3654_v58  ;;  %v4141_v63 = vld [vmem:[%s6616_s0 + $0x88] sm:$0xf0]  ;;  %v3566_v0 = vld [vmem:[%s6616_s0 + $0x60] sm:$0xf]  ;;  %v4136_v2 = vld [vmem:[%s6616_s0 + $0x64] sm:$0xf] }
  0x30   :  { %923 = vmatpush.bf16.msrb.mxu0 %v3875_v56  ;;  %v4137_v1 = vld [vmem:[%s6616_s0 + $0x68] sm:$0xf0]  ;;  %v3568_v3 = vld [vmem:[%s6616_s0 + $0x6c] sm:$0xf0]  ;;  %v5002_v4 = vor.u32 %v4141_v63, %v3586_v62  ;;  %v3782_v10 = vld [vmem:[%s6617_s1 + $0x148] sm:$0xf] }
  0x31   :  { %968 = vmatpush.bf16.msrb.mxu1 %v3687_v18  ;;  %873 = vmatpush.bf16.msrb.mxu2 %v3763_v60  ;;  %v5004_v5 = vor.u32 %v4137_v1, %v3566_v0  ;;  %v5006_v6 = vor.u32 %v4136_v2, %v3568_v3  ;;  %v4191_v11 = vld [vmem:[%s6617_s1 + $0x154] sm:$0xf0]  ;;  %v4180_v13 = vld [vmem:[%s6617_s1 + $0x104] sm:$0xf]  ;;  %v3744_v14 = vld [vmem:[%s6617_s1 + $0x110] sm:$0xf0] }
  0x32   :  { %3918 = vmatmul.msk.bf16.gmra.mxu2 %vm633_vm1, %v4855_v7  ;;  %1017 = vmatpush.bf16.msrb.mxu3 %v3815_v30  ;;  %v3783_v12 = vor.u32 %v4191_v11, %v3782_v10  ;;  %v3638_v15 = vld [vmem:[%s6617_s1 + $0x28] sm:$0xf]  ;;  %v3747_v16 = vor.u32 %v4180_v13, %v3744_v14  ;;  %v4155_v17 = vld [vmem:[%s6617_s1 + $0x34] sm:$0xf0]  ;;  %v4144_v20 = vld [vmem:[%s6616_s0 + $0xa0] sm:$0xf0] }
  0x33   :  { %684 = vmatmul.bf16.gmra.mxu0 %v4857_v8  ;;  %v3639_v18 = vor.u32 %v4155_v17, %v3638_v15  ;;  %v3598_v19 = vld [vmem:[%s6616_s0 + $0x98] sm:$0xf]  ;;  %v4140_v22 = vld [vmem:[%s6616_s0 + $0x80] sm:$0xf0]  ;;  %v4139_v23 = vld [vmem:[%s6616_s0 + $0x7c] sm:$0xf] }
  0x34   :  { %733 = vmatmul.bf16.gmra.mxu1 %v4859_v9  ;;  %v3578_v21 = vld [vmem:[%s6616_s0 + $0x78] sm:$0xf]  ;;  %v3580_v24 = vld [vmem:[%s6616_s0 + $0x84] sm:$0xf0]  ;;  %v5049_v28 = vor.u32 %v4144_v20, %v3598_v19  ;;  %v3610_v34 = vld [vmem:[%s6616_s0 + $0xb0] sm:$0xf] }
  0x35   :  { %831 = vmatmul.bf16.gmra.mxu3 %v4857_v8  ;;  %969 = vmatpush.bf16.msrb.mxu1 %v3671_v36  ;;  %v5051_v29 = vor.u32 %v4140_v22, %v3578_v21  ;;  %v5053_v30 = vor.u32 %v4139_v23, %v3580_v24  ;;  %v3766_v31 = vld [vmem:[%s6617_s1 + $0x128] sm:$0xf]  ;;  %v4187_v32 = vld [vmem:[%s6617_s1 + $0x134] sm:$0xf0]  ;;  %v4147_v35 = vld [vmem:[%s6616_s0 + $0xb8] sm:$0xf0] }
  0x36   :  { %1018 = vmatpush.bf16.msrb.mxu3 %v3799_v52  ;;  %874 = vmatpush.bf16.msrb.mxu2 %v3747_v16  ;;  %v3767_v33 = vor.u32 %v4187_v32, %v3766_v31  ;;  %v3590_v36 = vld [vmem:[%s6616_s0 + $0x90] sm:$0xf]  ;;  %v4143_v37 = vld [vmem:[%s6616_s0 + $0x98] sm:$0xf0]  ;;  %v4142_v38 = vld [vmem:[%s6616_s0 + $0x94] sm:$0xf]  ;;  %v5093_v49 = vor.u32 %v4147_v35, %v3610_v34 }
  0x37   :  { %v3592_v39 = vld [vmem:[%s6616_s0 + $0x9c] sm:$0xf0]  ;;  %v3910_v40 = vld [vmem:[%s6617_s1 + $0x248] sm:$0xf]  ;;  %v4223_v42 = vld [vmem:[%s6617_s1 + $0x254] sm:$0x30]  ;;  %v5098_v53 = vor.u32 %v4143_v37, %v3590_v36 }
  0x38   :  { %v3622_v43 = vld [vmem:[%s6617_s1 + $0x8] sm:$0xf]  ;;  %v3911_v50 = vor.u32 %v4223_v42, %v3910_v40  ;;  %v4151_v52 = vld [vmem:[%s6617_s1 + $0x14] sm:$0xf0]  ;;  %v5106_v57 = vor.u32 %v4142_v38, %v3592_v39  ;;  %v4177_v60 = vld [vmem:[%s6617_s1 + $0xec] sm:$0xf] }
  0x39   :  { %970 = vmatpush.bf16.msrb.mxu1 %v3655_v61  ;;  %v3623_v54 = vor.u32 %v4151_v52, %v3622_v43  ;;  %v3750_v55 = vld [vmem:[%s6617_s1 + $0x108] sm:$0xf]  ;;  %v4183_v56 = vld [vmem:[%s6617_s1 + $0x114] sm:$0xf0]  ;;  %v3736_v61 = vld [vmem:[%s6617_s1 + $0xf8] sm:$0xf0] }
  0x3a   :  { %1019 = vmatpush.bf16.msrb.mxu3 %v3783_v12  ;;  %v666_v58 = vsel %vm658_vm0, %v3911_v50, 0  ;;  %v3751_v59 = vor.u32 %v4183_v56, %v3750_v55  ;;  %v3739_v62 = vor.u32 %v4177_v60, %v3736_v61  ;;  %v3602_v63 = vld [vmem:[%s6616_s0 + $0xa8] sm:$0xf]  ;;  %v4146_v0 = vld [vmem:[%s6616_s0 + $0xb0] sm:$0xf0] }
  0x3b   :  { %1068 = vmatpush.bf16.msra.mxu2 %v666_v58  ;;  %v4145_v1 = vld [vmem:[%s6616_s0 + $0xac] sm:$0xf]  ;;  %v3604_v2 = vld [vmem:[%s6616_s0 + $0xb4] sm:$0xf0]  ;;  %v5132_v3 = vor.u32 %v4146_v0, %v3602_v63  ;;  %v3864_v12 = vld [vmem:[%s6617_s1 + $0x1f8] sm:$0xf0] }
  0x3c   :  { %1112 = vmatpush.bf16.msra.mxu0 %v3739_v62  ;;  %v5134_v10 = vor.u32 %v4145_v1, %v3604_v2  ;;  %v4209_v11 = vld [vmem:[%s6617_s1 + $0x1ec] sm:$0xf]  ;;  %v3912_v15 = vld [vmem:[%s6617_s1 + $0x258] sm:$0x30]  ;;  %v5162_v22 = vld [vmem:[%s6619_s3] sm:$0xf] }
  0x3d   :  { %971 = vmatpush.bf16.msrb.mxu1 %v3639_v18  ;;  %v3867_v13 = vor.u32 %v4209_v11, %v3864_v12  ;;  %v4221_v14 = vld [vmem:[%s6617_s1 + $0x24c] sm:$0xf]  ;;  %v3720_v19 = vld [vmem:[%s6617_s1 + $0xd8] sm:$0xf0]  ;;  %v5165_v24 = vperm.slane %v5162_v22, 0 }
  0x3e   :  { %1020 = vmatpush.bf16.msrb.mxu3 %v3767_v33  ;;  %v3915_v16 = vor.u32 %v4221_v14, %v3912_v15  ;;  %v4173_v18 = vld [vmem:[%s6617_s1 + $0xcc] sm:$0xf]  ;;  %v3848_v33 = vld [vmem:[%s6617_s1 + $0x1d8] sm:$0xf0]  ;;  %v3894_v58 = vld [vmem:[%s6617_s1 + $0x228] sm:$0xf] }
  0x3f   :  { %v3723_v21 = vor.u32 %v4173_v18, %v3720_v19  ;;  %v4205_v32 = vld [vmem:[%s6617_s1 + $0x1cc] sm:$0xf]  ;;  %v3704_v40 = vld [vmem:[%s6617_s1 + $0xb8] sm:$0xf0] }
  0x40   :  { %v669_v20 = vsel %vm658_vm0, %v3915_v16, 0  ;;  %v3851_v36 = vor.u32 %v4205_v32, %v3848_v33  ;;  %v4169_v39 = vld [vmem:[%s6617_s1 + $0xac] sm:$0xf]  ;;  %v3832_v2 = vld [vmem:[%s6617_s1 + $0x1b8] sm:$0xf0] }
  0x41   :  { %972 = vmatpush.bf16.msrb.mxu1 %v3623_v54  ;;  %1113 = vmatpush.bf16.msra.mxu0 %v3723_v21  ;;  %v3707_v43 = vor.u32 %v4169_v39, %v3704_v40  ;;  %v4201_v1 = vld [vmem:[%s6617_s1 + $0x1ac] sm:$0xf] }
  0x42   :  { %3919 = vmatmul.msk.bf16.gmra.mxu2 %vm633_vm1, %v4902_v25  ;;  %1021 = vmatpush.bf16.msrb.mxu3 %v3751_v59  ;;  %v4219_v59 = vld [vmem:[%s6617_s1 + $0x234] sm:$0xf0]  ;;  %v4165_v16 = vld [vmem:[%s6617_s1 + $0x8c] sm:$0xf] }
  0x43   :  { %689 = vmatmul.bf16.gmra.mxu0 %v4904_v26  ;;  %v3895_v60 = vor.u32 %v4219_v59, %v3894_v58  ;;  %v4197_v40 = vld [vmem:[%s6617_s1 + $0x18c] sm:$0xf] }
  0x44   :  { %738 = vmatmul.bf16.gmra.mxu1 %v4906_v27  ;;  %v4161_v59 = vld [vmem:[%s6617_s1 + $0x6c] sm:$0xf] }
  0x45   :  { %836 = vmatmul.bf16.gmra.mxu3 %v4904_v26  ;;  %1161 = vmatpush.bf16.msra.mxu1 %v3867_v13  ;;  %v3835_v13 = vor.u32 %v4201_v1, %v3832_v2 }
  0x46   :  { %1215 = vmatpush.bf16.msra.mxu3 %v669_v20  ;;  %1114 = vmatpush.bf16.msra.mxu0 %v3707_v43  ;;  %v3816_v43 = vld [vmem:[%s6617_s1 + $0x198] sm:$0xf0] }
  0x47   :  { %1069 = vmatpush.bf16.msra.mxu2 %v3895_v60  ;;  %v3672_v60 = vld [vmem:[%s6617_s1 + $0x78] sm:$0xf0] }
  0x49   :  { %1162 = vmatpush.bf16.msra.mxu1 %v3851_v36 }
  0x4d   :  { %1163 = vmatpush.bf16.msra.mxu1 %v3835_v13 }
  0x52   :  { %3920 = vmatmul.msk.bf16.gmra.mxu2 %vm633_vm1, %v4949_v45 }
  0x53   :  { %694 = vmatmul.bf16.gmra.mxu0 %v4951_v46 }
  0x54   :  { %743 = vmatmul.bf16.gmra.mxu1 %v4953_v48 }
  0x55   :  { %841 = vmatmul.bf16.gmra.mxu3 %v4951_v46 }
  0x62   :  { %3921 = vmatmul.msk.bf16.gmra.mxu2 %vm633_vm1, %v5002_v4 }
  0x63   :  { %699 = vmatmul.bf16.gmra.mxu0 %v5004_v5 }
  0x64   :  { %748 = vmatmul.bf16.gmra.mxu1 %v5006_v6 }
  0x65   :  { %846 = vmatmul.bf16.gmra.mxu3 %v5004_v5 }
  0x72   :  { %3922 = vmatmul.msk.bf16.gmra.mxu2 %vm633_vm1, %v5049_v28 }
  0x73   :  { %704 = vmatmul.bf16.gmra.mxu0 %v5051_v29 }
  0x74   :  { %753 = vmatmul.bf16.gmra.mxu1 %v5053_v30 }
  0x75   :  { %851 = vmatmul.bf16.gmra.mxu3 %v5051_v29 }
  0x82   :  { %3923 = vmatmul.msk.bf16.gmra.mxu2 %vm633_vm1, %v5093_v49 }
  0x83   :  { %709 = vmatmul.bf16.gmra.mxu0 %v5098_v53 }
  0x84   :  { %758 = vmatmul.bf16.gmra.mxu1 %v5106_v57 }
  0x85   :  { %856 = vmatmul.bf16.gmra.mxu3 %v5098_v53 }
  0x92   :  { %875 = vmatmul.bf16.vlgmr.msrb.gmra.mxu2 %v4800_v47 }
  0x93   :  { %714 = vmatmul.bf16.gmra.mxu0 %v5132_v3 }
  0x94   :  { %763 = vmatmul.bf16.gmra.mxu1 %v5134_v10 }
  0x95   :  { %861 = vmatmul.bf16.gmra.mxu3 %v5132_v3  ;;  %v778_v17 = vpop.f32.mrf.mxu2 }
  0x9d   :  { %v780_v23 = vpop.f32.mrf.mxu2 }
  0xa0   :  { %v680_v31 = vpop.f32.mrf.mxu0 }
  0xa1   :  { %v681_v34 = vadd.f32 %v680_v31, %v5165_v24  ;;  %v729_v35 = vpop.f32.mrf.mxu1 }
  0xa2   :  { %880 = vmatmul.bf16.gmra.mxu2 %v4859_v9 }
  0xa3   :  { %v730_v37 = vadd.f32 %v729_v35, %v681_v34  ;;  %3924 = vmatmul.msk.bf16.vlgmr.msrb.gmra.mxu0 %vm633_vm1, %v4674_v51  ;;  %v4217_v34 = vld [vmem:[%s6617_s1 + $0x22c] sm:$0xf]  ;;  %v3896_v35 = vld [vmem:[%s6617_s1 + $0x238] sm:$0xf0] }
  0xa4   :  { %973 = vmatmul.bf16.vlgmr.msrb.gmra.mxu1 %v4797_v44 }
  0xa5   :  { %1022 = vmatmul.bf16.vlgmr.msrb.gmra.mxu3 %v4800_v47  ;;  %v783_v38 = vpop.f32.mrf.mxu2  ;;  %v5185_v42 = vadd.f32 %v778_v17, %v730_v37  ;;  %v3688_v17 = vld [vmem:[%s6617_s1 + $0x98] sm:$0xf0]  ;;  %v3899_v37 = vor.u32 %v4217_v34, %v3896_v35  ;;  %v3878_v35 = vld [vmem:[%s6617_s1 + $0x208] sm:$0xf] }
  0xa6   :  { %v3691_v19 = vor.u32 %v4165_v16, %v3688_v17 }
  0xa7   :  { %1216 = vmatpush.bf16.msra.mxu3 %v3899_v37  ;;  %v4215_v37 = vld [vmem:[%s6617_s1 + $0x214] sm:$0xf0] }
  0xa8   :  { %v5187_v50 = vpop.f32.mrf.mxu3  ;;  %v682_v52 = vpop.f32.mrf.mxu0  ;;  %1115 = vmatpush.bf16.msra.mxu0 %v3691_v19 }
  0xa9   :  { %v683_v54 = vadd.f32 %v682_v52, %v5165_v24  ;;  %v731_v55 = vpop.f32.mrf.mxu1 }
  0xab   :  { %v732_v56 = vadd.f32 %v731_v55, %v683_v54  ;;  %v3819_v55 = vor.u32 %v4197_v40, %v3816_v43  ;;  %v3879_v43 = vor.u32 %v4215_v37, %v3878_v35 }
  0xad   :  { %v785_v61 = vpop.f32.mrf.mxu2  ;;  %v5196_v62 = vadd.f32 %v780_v23, %v732_v56  ;;  %1164 = vmatpush.bf16.msra.mxu1 %v3819_v55  ;;  %1070 = vmatpush.bf16.msra.mxu2 %v3879_v43 }
  0xb0   :  { %v5198_v63 = vpop.f32.mrf.mxu3  ;;  %v685_v0 = vpop.f32.mrf.mxu0 }
  0xb1   :  { %v686_v11 = vadd.f32 %v685_v0, %v5165_v24  ;;  %v734_v12 = vpop.f32.mrf.mxu1  ;;  %v3675_v0 = vor.u32 %v4161_v59, %v3672_v60 }
  0xb2   :  { %885 = vmatmul.bf16.gmra.mxu2 %v4906_v27 }
  0xb3   :  { %v735_v14 = vadd.f32 %v734_v12, %v686_v11  ;;  %3925 = vmatmul.msk.bf16.gmra.mxu0 %vm633_vm1, %v4789_v41 }
  0xb4   :  { %978 = vmatmul.bf16.gmra.mxu1 %v4857_v8  ;;  %1116 = vmatpush.bf16.msra.mxu0 %v3675_v0 }
  0xb5   :  { %1027 = vmatmul.bf16.gmra.mxu3 %v4859_v9  ;;  %v788_v15 = vpop.f32.mrf.mxu2  ;;  %v5218_v18 = vadd.f32 %v783_v38, %v735_v14 }
  0xb7   :  { %6625 = vst [vmem:[#allocation6_spill] sm:$0xff] %v5218_v18 }
  0xb8   :  { %v5220_v20 = vpop.f32.mrf.mxu3  ;;  %v687_v21 = vpop.f32.mrf.mxu0 }
  0xb9   :  { %v688_v23 = vadd.f32 %v687_v21, %v5165_v24  ;;  %v736_v31 = vpop.f32.mrf.mxu1  ;;  %v3800_v21 = vld [vmem:[%s6617_s1 + $0x178] sm:$0xf0] }
  0xbb   :  { %v737_v32 = vadd.f32 %v736_v31, %v688_v23 }
  0xbd   :  { %v790_v33 = vpop.f32.mrf.mxu2  ;;  %v5229_v36 = vadd.f32 %v785_v61, %v737_v32 }
  0xbf   :  { %6626 = vst [vmem:[#allocation7_spill] sm:$0xff] %v5229_v36 }
  0xc0   :  { %v5231_v38 = vpop.f32.mrf.mxu3  ;;  %v690_v39 = vpop.f32.mrf.mxu0 }
  0xc1   :  { %v691_v52 = vadd.f32 %v690_v39, %v5165_v24  ;;  %v739_v54 = vpop.f32.mrf.mxu1  ;;  %v4157_v39 = vld [vmem:[%s6617_s1 + $0x4c] sm:$0xf] }
  0xc2   :  { %890 = vmatmul.bf16.gmra.mxu2 %v4953_v48 }
  0xc3   :  { %v740_v56 = vadd.f32 %v739_v54, %v691_v52  ;;  %3926 = vmatmul.msk.bf16.gmra.mxu0 %vm633_vm1, %v4855_v7  ;;  %v3656_v52 = vld [vmem:[%s6617_s1 + $0x58] sm:$0xf0] }
  0xc4   :  { %983 = vmatmul.bf16.gmra.mxu1 %v4904_v26  ;;  %v3659_v55 = vor.u32 %v4157_v39, %v3656_v52 }
  0xc5   :  { %1032 = vmatmul.bf16.gmra.mxu3 %v4906_v27  ;;  %v793_v58 = vpop.f32.mrf.mxu2  ;;  %v5251_v61 = vadd.f32 %v788_v15, %v740_v56  ;;  %v4193_v15 = vld [vmem:[%s6617_s1 + $0x16c] sm:$0xf] }
  0xc6   :  { %v3803_v32 = vor.u32 %v4193_v15, %v3800_v21  ;;  %1117 = vmatpush.bf16.msra.mxu0 %v3659_v55 }
  0xc7   :  { %6627 = vst [vmem:[#allocation8_spill] sm:$0xff] %v5251_v61 }
  0xc8   :  { %v5253_v1 = vpop.f32.mrf.mxu3  ;;  %v692_v2 = vpop.f32.mrf.mxu0  ;;  %1165 = vmatpush.bf16.msra.mxu1 %v3803_v32  ;;  %v4153_v32 = vld [vmem:[%s6617_s1 + $0x2c] sm:$0xf] }
  0xc9   :  { %v693_v11 = vadd.f32 %v692_v2, %v5165_v24  ;;  %v741_v12 = vpop.f32.mrf.mxu1 }
  0xcb   :  { %v742_v13 = vadd.f32 %v741_v12, %v693_v11 }
  0xcd   :  { %v795_v14 = vpop.f32.mrf.mxu2  ;;  %v5256_v16 = vadd.f32 %v790_v33, %v742_v13  ;;  %v4189_v13 = vld [vmem:[%s6617_s1 + $0x14c] sm:$0xf] }
  0xcf   :  { %6628 = vst [vmem:[#allocation9_spill] sm:$0xff] %v5256_v16 }
  0xd0   :  { %v5258_v17 = vpop.f32.mrf.mxu3  ;;  %v695_v19 = vpop.f32.mrf.mxu0 }
  0xd1   :  { %v696_v23 = vadd.f32 %v695_v19, %v5165_v24  ;;  %v744_v31 = vpop.f32.mrf.mxu1  ;;  %v3784_v19 = vld [vmem:[%s6617_s1 + $0x158] sm:$0xf0] }
  0xd2   :  { %895 = vmatmul.bf16.gmra.mxu2 %v5006_v6 }
  0xd3   :  { %v745_v34 = vadd.f32 %v744_v31, %v696_v23  ;;  %3927 = vmatmul.msk.bf16.gmra.mxu0 %vm633_vm1, %v4902_v25  ;;  %v3787_v23 = vor.u32 %v4189_v13, %v3784_v19 }
  0xd4   :  { %988 = vmatmul.bf16.gmra.mxu1 %v4951_v46 }
  0xd5   :  { %1037 = vmatmul.bf16.gmra.mxu3 %v4953_v48  ;;  %v798_v33 = vpop.f32.mrf.mxu2  ;;  %v5281_v40 = vadd.f32 %v793_v58, %v745_v34  ;;  %1166 = vmatpush.bf16.msra.mxu1 %v3787_v23  ;;  %v3640_v34 = vld [vmem:[%s6617_s1 + $0x38] sm:$0xf0] }
  0xd6   :  { %v3643_v37 = vor.u32 %v4153_v32, %v3640_v34 }
  0xd7   :  { %6629 = vst [vmem:[#allocation10_spill] sm:$0xff] %v5281_v40  ;;  %v4030_v40 = vld [vmem:[%s6618_s2 + $0xa0] sm:$0xf] }
  0xd8   :  { %v5286_v54 = vpop.f32.mrf.mxu3  ;;  %v697_v56 = vpop.f32.mrf.mxu0  ;;  %1118 = vmatpush.bf16.msra.mxu0 %v3643_v37 }
  0xd9   :  { %v698_v59 = vadd.f32 %v697_v56, %v5165_v24  ;;  %v746_v60 = vpop.f32.mrf.mxu1 }
  0xdb   :  { %v747_v0 = vadd.f32 %v746_v60, %v698_v59  ;;  %v4213_v59 = vld [vmem:[%s6617_s1 + $0x20c] sm:$0xf]  ;;  %v3880_v60 = vld [vmem:[%s6617_s1 + $0x218] sm:$0xf0] }
  0xdd   :  { %v800_v2 = vpop.f32.mrf.mxu2  ;;  %v5289_v11 = vadd.f32 %v795_v14, %v747_v0  ;;  %v3883_v0 = vor.u32 %v4213_v59, %v3880_v60 }
  0xdf   :  { %6630 = vst [vmem:[#allocation11_spill] sm:$0xff] %v5289_v11  ;;  %1217 = vmatpush.bf16.msra.mxu3 %v3883_v0 }
  0xe0   :  { %v5291_v58 = vpop.f32.mrf.mxu3  ;;  %v700_v12 = vpop.f32.mrf.mxu0 }
  0xe1   :  { %v701_v15 = vadd.f32 %v700_v12, %v5165_v24  ;;  %v749_v21 = vpop.f32.mrf.mxu1 }
  0xe2   :  { %900 = vmatmul.bf16.gmra.mxu2 %v5053_v30 }
  0xe3   :  { %v750_v31 = vadd.f32 %v749_v21, %v701_v15  ;;  %3928 = vmatmul.msk.bf16.gmra.mxu0 %vm633_vm1, %v4949_v45  ;;  %v4185_v15 = vld [vmem:[%s6617_s1 + $0x12c] sm:$0xf]  ;;  %v3768_v21 = vld [vmem:[%s6617_s1 + $0x138] sm:$0xf0] }
  0xe4   :  { %993 = vmatmul.bf16.gmra.mxu1 %v5004_v5  ;;  %v3771_v32 = vor.u32 %v4185_v15, %v3768_v21  ;;  %v4062_v21 = vld [vmem:[%s6618_s2 + $0xe0] sm:$0xf] }
  0xe5   :  { %1042 = vmatmul.bf16.gmra.mxu3 %v5006_v6  ;;  %v803_v14 = vpop.f32.mrf.mxu2  ;;  %v5311_v35 = vadd.f32 %v798_v33, %v750_v31 }
  0xe6   :  { %1167 = vmatpush.bf16.msra.mxu1 %v3771_v32 }
  0xe7   :  { %6631 = vst [vmem:[#allocation12_spill] sm:$0xff] %v5311_v35 }
  0xe8   :  { %v5313_v39 = vpop.f32.mrf.mxu3  ;;  %v702_v43 = vpop.f32.mrf.mxu0 }
  0xe9   :  { %v703_v52 = vadd.f32 %v702_v43, %v5165_v24  ;;  %v751_v55 = vpop.f32.mrf.mxu1  ;;  %v4149_v43 = vld [vmem:[%s6617_s1 + $0xc] sm:$0xf] }
  0xeb   :  { %v752_v56 = vadd.f32 %v751_v55, %v703_v52  ;;  %v3624_v52 = vld [vmem:[%s6617_s1 + $0x18] sm:$0xf0] }
  0xed   :  { %v805_v33 = vpop.f32.mrf.mxu2  ;;  %v5322_v12 = vadd.f32 %v800_v2, %v752_v56  ;;  %v3627_v56 = vor.u32 %v4149_v43, %v3624_v52 }
  0xef   :  { %6632 = vst [vmem:[#allocation13_spill] sm:$0xff] %v5322_v12  ;;  %1119 = vmatpush.bf16.msra.mxu0 %v3627_v56 }
  0xf0   :  { %v5324_v13 = vpop.f32.mrf.mxu3  ;;  %v705_v19 = vpop.f32.mrf.mxu0 }
  0xf1   :  { %v706_v23 = vadd.f32 %v705_v19, %v5165_v24  ;;  %v754_v31 = vpop.f32.mrf.mxu1 }
  0xf2   :  { %905 = vmatmul.bf16.gmra.mxu2 %v5106_v57 }
  0xf3   :  { %v755_v2 = vadd.f32 %v754_v31, %v706_v23  ;;  %3929 = vmatmul.msk.bf16.gmra.mxu0 %vm633_vm1, %v5002_v4  ;;  %v4254_v23 = vld [vmem:[%s6618_s2 + $0xec] sm:$0xf0] }
  0xf4   :  { %998 = vmatmul.bf16.gmra.mxu1 %v5051_v29  ;;  %v5359_v32 = vor.u32 %v4254_v23, %v4062_v21  ;;  %v4252_v21 = vld [vmem:[%s6618_s2 + $0xe4] sm:$0xf]  ;;  %v4064_v23 = vld [vmem:[%s6618_s2 + $0xf0] sm:$0xf0] }
  0xf5   :  { %1047 = vmatmul.bf16.gmra.mxu3 %v5053_v30  ;;  %v808_v34 = vpop.f32.mrf.mxu2  ;;  %v5338_v37 = vadd.f32 %v803_v14, %v755_v2  ;;  %v4181_v2 = vld [vmem:[%s6617_s1 + $0x10c] sm:$0xf] }
  0xf6   :  { %1519 = vmatpush.bf16.msrb.mxu2 %v5359_v32 }
  0xf7   :  { %6633 = vst [vmem:[#allocation14_spill] sm:$0xff] %v5338_v37 }
  0xf8   :  { %v5346_v55 = vpop.f32.mrf.mxu3  ;;  %v707_v59 = vpop.f32.mrf.mxu0 }
  0xf9   :  { %v708_v60 = vadd.f32 %v707_v59, %v5165_v24  ;;  %v756_v0 = vpop.f32.mrf.mxu1 }
  0xfb   :  { %v757_v19 = vadd.f32 %v756_v0, %v708_v60 }
  0xfd   :  { %v810_v15 = vpop.f32.mrf.mxu2  ;;  %v5349_v14 = vadd.f32 %v805_v33, %v757_v19  ;;  %v3752_v33 = vld [vmem:[%s6617_s1 + $0x118] sm:$0xf0] }
  0xfe   :  { %v3755_v52 = vor.u32 %v4181_v2, %v3752_v33  ;;  %v5384_v33 = vor.u32 %v4252_v21, %v4064_v23 }
  0xff   :  { %6634 = vst [vmem:[#allocation15_spill] sm:$0xff] %v5349_v14  ;;  %v4250_v14 = vld [vmem:[%s6618_s2 + $0xcc] sm:$0xf0] }
 0x100   :  { %v5357_v31 = vpop.f32.mrf.mxu3  ;;  %v710_v43 = vpop.f32.mrf.mxu0  ;;  %1168 = vmatpush.bf16.msra.mxu1 %v3755_v52  ;;  %1532 = vmatpush.bf16.msrb.mxu0 %v5384_v33 }
 0x101   :  { %6635 = vst [vmem:[#allocation16_spill] sm:$0xff] %v5357_v31  ;;  %v711_v56 = vadd.f32 %v710_v43, %v5165_v24  ;;  %v759_v59 = vpop.f32.mrf.mxu1 }
 0x102   :  { %910 = vmatmul.bf16.gmra.mxu2 %v5134_v10 }
 0x103   :  { %v760_v60 = vadd.f32 %v759_v59, %v711_v56  ;;  %3930 = vmatmul.msk.bf16.gmra.mxu0 %vm633_vm1, %v5049_v28 }
 0x104   :  { %1003 = vmatmul.bf16.gmra.mxu1 %v5098_v53 }
 0x105   :  { %1052 = vmatmul.bf16.gmra.mxu3 %v5106_v57  ;;  %v813_v0 = vpop.f32.mrf.mxu2  ;;  %v5374_v19 = vadd.f32 %v808_v34, %v760_v60 }
 0x107   :  { %6636 = vst [vmem:[#allocation17_spill] sm:$0xff] %v5374_v19  ;;  %v4046_v19 = vld [vmem:[%s6618_s2 + $0xc0] sm:$0xf] }
 0x108   :  { %v5382_v2 = vpop.f32.mrf.mxu3  ;;  %v712_v43 = vpop.f32.mrf.mxu0  ;;  %v5398_v23 = vor.u32 %v4250_v14, %v4046_v19  ;;  %v4253_v14 = vld [vmem:[%s6618_s2 + $0xec] sm:$0xf]  ;;  %v4072_v19 = vld [vmem:[%s6618_s2 + $0xf8] sm:$0xf0] }
 0x109   :  { %v713_v52 = vadd.f32 %v712_v43, %v5165_v24  ;;  %v761_v56 = vpop.f32.mrf.mxu1  ;;  %v5401_v43 = vperm.slane %v5162_v22, 1 }
 0x10a   :  { %1520 = vmatpush.bf16.msrb.mxu2 %v5398_v23 }
 0x10b   :  { %v762_v34 = vadd.f32 %v761_v56, %v713_v52  ;;  %6639 = vst [vmem:[#allocation20_spill] sm:$0xff] %v5401_v43  ;;  %v4255_v52 = vld [vmem:[%s6618_s2 + $0xf4] sm:$0xf0] }
 0x10d   :  { %v815_v59 = vpop.f32.mrf.mxu2  ;;  %v5388_v60 = vadd.f32 %v810_v15, %v762_v34  ;;  %v4070_v15 = vld [vmem:[%s6618_s2 + $0xe8] sm:$0xf] }
 0x10f   :  { %6637 = vst [vmem:[#allocation18_spill] sm:$0xff] %v5388_v60  ;;  %v5411_v60 = vor.u32 %v4255_v52, %v4070_v15  ;;  %v828_v15 = vadd.f32 %v5187_v50, %v5401_v43 }
 0x110   :  { %v5396_v21 = vpop.f32.mrf.mxu3  ;;  %v715_v31 = vpop.f32.mrf.mxu0 }
 0x111   :  { %6638 = vst [vmem:[#allocation19_spill] sm:$0xff] %v5396_v21  ;;  %v716_v56 = vadd.f32 %v715_v31, %v5165_v24  ;;  %v764_v34 = vpop.f32.mrf.mxu1  ;;  %1545 = vmatpush.bf16.msrb.mxu1 %v5411_v60  ;;  %v5424_v31 = vor.u32 %v4253_v14, %v4072_v19  ;;  %v4048_v14 = vld [vmem:[%s6618_s2 + $0xd0] sm:$0xf0] }
 0x112   :  { %3932 = vmatmul.msk.bf16.vlgmr.msra.gmra.mxu2 %vm633_vm1, %v4674_v51 }
 0x113   :  { %v765_v21 = vadd.f32 %v764_v34, %v716_v56  ;;  %3931 = vmatmul.msk.bf16.gmra.mxu0 %vm633_vm1, %v5093_v49  ;;  %1558 = vmatpush.bf16.msrb.mxu3 %v5424_v31  ;;  %v4248_v34 = vld [vmem:[%s6618_s2 + $0xc4] sm:$0xf] }
 0x114   :  { %1008 = vmatmul.bf16.gmra.mxu1 %v5132_v3  ;;  %v5441_v50 = vor.u32 %v4248_v34, %v4048_v14  ;;  %v4246_v34 = vld [vmem:[%s6618_s2 + $0xac] sm:$0xf0] }
 0x115   :  { %1057 = vmatmul.bf16.gmra.mxu3 %v5134_v10  ;;  %v876_v52 = vpop.f32.mrf.mxu2  ;;  %v5431_v37 = vadd.f32 %v813_v0, %v765_v21  ;;  %v830_v21 = vadd.f32 %v5198_v63, %v5401_v43  ;;  %v4054_v63 = vld [vmem:[%s6618_s2 + $0xc8] sm:$0xf] }
 0x116   :  { %v877_v56 = vadd.f32 %v876_v52, %v828_v15  ;;  %1533 = vmatpush.bf16.msrb.mxu0 %v5441_v50 }
 0x117   :  { %6640 = vst [vmem:[#allocation21_spill] sm:$0xff] %v5431_v37 }
 0x118   :  { %v5439_v19 = vpop.f32.mrf.mxu3  ;;  %v717_v12 = vpop.f32.mrf.mxu0 }
 0x119   :  { %v718_v35 = vadd.f32 %v717_v12, %v5165_v24  ;;  %v766_v11 = vpop.f32.mrf.mxu1  ;;  %v5457_v12 = vor.u32 %v4246_v34, %v4030_v40  ;;  %v4056_v40 = vld [vmem:[%s6618_s2 + $0xd8] sm:$0xf0] }
 0x11b   :  { %v767_v0 = vadd.f32 %v766_v11, %v718_v35  ;;  %v5460_v35 = vperm.slane %v5162_v22, 2  ;;  %1521 = vmatpush.bf16.msrb.mxu2 %v5457_v12  ;;  %v4249_v22 = vld [vmem:[%s6618_s2 + $0xcc] sm:$0xf] }
 0x11d   :  { %v878_v15 = vpop.f32.mrf.mxu2  ;;  %v5447_v52 = vadd.f32 %v815_v59, %v767_v0  ;;  %6643 = vst [vmem:[#allocation24_spill] sm:$0xff] %v5460_v35  ;;  %v4251_v59 = vld [vmem:[%s6618_s2 + $0xd4] sm:$0xf0] }
 0x11e   :  { %v879_v37 = vadd.f32 %v878_v15, %v830_v21  ;;  %v5471_v21 = vor.u32 %v4251_v59, %v4054_v63  ;;  %v833_v15 = vadd.f32 %v5220_v20, %v5401_v43  ;;  %v4032_v59 = vld [vmem:[%s6618_s2 + $0xb0] sm:$0xf0] }
 0x11f   :  { %6641 = vst [vmem:[#allocation22_spill] sm:$0xff] %v5447_v52 }
 0x120   :  { %v5455_v24 = vpop.f32.mrf.mxu3  ;;  %v925_v11 = vpop.f32.mrf.mxu0  ;;  %1546 = vmatpush.bf16.msrb.mxu1 %v5471_v21 }
 0x121   :  { %6642 = vst [vmem:[#allocation23_spill] sm:$0xff] %v5455_v24  ;;  %v5468_v14 = vadd.f32 %v925_v11, %v877_v56  ;;  %v974_v0 = vpop.f32.mrf.mxu1  ;;  %v5483_v56 = vor.u32 %v4249_v22, %v4056_v40 }
 0x122   :  { %3933 = vmatmul.msk.bf16.gmra.mxu2 %vm633_vm1, %v4789_v41  ;;  %v975_v34 = vadd.f32 %v974_v0, %v5460_v35 }
 0x123   :  { %1120 = vmatmul.bf16.vlgmr.msra.gmra.mxu0 %v4797_v44  ;;  %1559 = vmatpush.bf16.msrb.mxu3 %v5483_v56  ;;  %v4244_v44 = vld [vmem:[%s6618_s2 + $0xa4] sm:$0xf] }
 0x124   :  { %1169 = vmatmul.bf16.vlgmr.msra.gmra.mxu1 %v4800_v47  ;;  %v5498_v22 = vor.u32 %v4244_v44, %v4032_v59  ;;  %v4014_v44 = vld [vmem:[%s6618_s2 + $0x80] sm:$0xf] }
 0x125   :  { %3940 = vmatmul.msk.bf16.vlgmr.msra.gmra.mxu3 %vm633_vm1, %v4674_v51  ;;  %v881_v11 = vpop.f32.mrf.mxu2 }
 0x126   :  { %v882_v63 = vadd.f32 %v881_v11, %v833_v15  ;;  %1534 = vmatpush.bf16.msrb.mxu0 %v5498_v22  ;;  %v835_v15 = vadd.f32 %v5231_v38, %v5401_v43  ;;  %v4038_v38 = vld [vmem:[%s6618_s2 + $0xa8] sm:$0xf] }
 0x128   :  { %v1023_v20 = vpop.f32.mrf.mxu3  ;;  %v927_v47 = vpop.f32.mrf.mxu0 }
 0x129   :  { %v5500_v0 = vadd.f32 %v1023_v20, %v975_v34  ;;  %v5502_v40 = vadd.f32 %v927_v47, %v879_v37  ;;  %v976_v51 = vpop.f32.mrf.mxu1  ;;  %v4242_v34 = vld [vmem:[%s6618_s2 + $0x8c] sm:$0xf0] }
 0x12a   :  { %v977_v11 = vadd.f32 %v976_v51, %v5460_v35  ;;  %v5514_v59 = vor.u32 %v4242_v34, %v4014_v44  ;;  %v4040_v44 = vld [vmem:[%s6618_s2 + $0xb8] sm:$0xf0]  ;;  %v838_v34 = vadd.f32 %v5253_v1, %v5401_v43 }
 0x12c   :  { %1522 = vmatpush.bf16.msrb.mxu2 %v5514_v59 }
 0x12d   :  { %v883_v52 = vpop.f32.mrf.mxu2 }
 0x12e   :  { %v884_v24 = vadd.f32 %v883_v52, %v835_v15  ;;  %v4247_v52 = vld [vmem:[%s6618_s2 + $0xb4] sm:$0xf0] }
 0x12f   :  { %v5527_v16 = vor.u32 %v4247_v52, %v4038_v38  ;;  %v4016_v52 = vld [vmem:[%s6618_s2 + $0x90] sm:$0xf0] }
 0x130   :  { %v1025_v37 = vpop.f32.mrf.mxu3  ;;  %v930_v47 = vpop.f32.mrf.mxu0 }
 0x131   :  { %v5516_v20 = vadd.f32 %v1025_v37, %v977_v11  ;;  %v5524_v51 = vadd.f32 %v930_v47, %v882_v63  ;;  %v979_v15 = vpop.f32.mrf.mxu1  ;;  %v4245_v11 = vld [vmem:[%s6618_s2 + $0xac] sm:$0xf]  ;;  %1547 = vmatpush.bf16.msrb.mxu1 %v5527_v16 }
 0x132   :  { %3934 = vmatmul.msk.bf16.gmra.mxu2 %vm633_vm1, %v4855_v7  ;;  %v5539_v63 = vor.u32 %v4245_v11, %v4040_v44  ;;  %v980_v37 = vadd.f32 %v979_v15, %v5460_v35 }
 0x133   :  { %1125 = vmatmul.bf16.gmra.mxu0 %v4857_v8  ;;  %v4240_v8 = vld [vmem:[%s6618_s2 + $0x84] sm:$0xf] }
 0x134   :  { %1174 = vmatmul.bf16.gmra.mxu1 %v4859_v9  ;;  %1560 = vmatpush.bf16.msrb.mxu3 %v5539_v63  ;;  %v5554_v11 = vor.u32 %v4240_v8, %v4016_v52  ;;  %v3998_v8 = vld [vmem:[%s6618_s2 + $0x60] sm:$0xf] }
 0x135   :  { %3941 = vmatmul.msk.bf16.gmra.mxu3 %vm633_vm1, %v4789_v41  ;;  %v886_v47 = vpop.f32.mrf.mxu2 }
 0x136   :  { %v887_v38 = vadd.f32 %v886_v47, %v838_v34  ;;  %1535 = vmatpush.bf16.msrb.mxu0 %v5554_v11  ;;  %v840_v34 = vadd.f32 %v5258_v17, %v5401_v43  ;;  %v4022_v17 = vld [vmem:[%s6618_s2 + $0x88] sm:$0xf] }
 0x138   :  { %v1028_v1 = vpop.f32.mrf.mxu3  ;;  %v932_v9 = vpop.f32.mrf.mxu0 }
 0x139   :  { %v5556_v15 = vadd.f32 %v1028_v1, %v980_v37  ;;  %v5558_v44 = vadd.f32 %v932_v9, %v884_v24  ;;  %v981_v41 = vpop.f32.mrf.mxu1  ;;  %v4238_v37 = vld [vmem:[%s6618_s2 + $0x6c] sm:$0xf0] }
 0x13a   :  { %v982_v47 = vadd.f32 %v981_v41, %v5460_v35  ;;  %v5570_v52 = vor.u32 %v4238_v37, %v3998_v8  ;;  %v4024_v8 = vld [vmem:[%s6618_s2 + $0x98] sm:$0xf0]  ;;  %v843_v37 = vadd.f32 %v5286_v54, %v5401_v43 }
 0x13b   :  { %6644 = vst [vmem:[#allocation25_spill] sm:$0xff] %v5558_v44 }
 0x13c   :  { %1523 = vmatpush.bf16.msrb.mxu2 %v5570_v52 }
 0x13d   :  { %v888_v61 = vpop.f32.mrf.mxu2 }
 0x13e   :  { %v889_v36 = vadd.f32 %v888_v61, %v840_v34  ;;  %v4243_v61 = vld [vmem:[%s6618_s2 + $0x94] sm:$0xf0] }
 0x13f   :  { %v5583_v44 = vor.u32 %v4243_v61, %v4022_v17  ;;  %v4000_v61 = vld [vmem:[%s6618_s2 + $0x70] sm:$0xf0] }
 0x140   :  { %v1030_v24 = vpop.f32.mrf.mxu3  ;;  %v935_v9 = vpop.f32.mrf.mxu0 }
 0x141   :  { %v5572_v1 = vadd.f32 %v1030_v24, %v982_v47  ;;  %v5580_v41 = vadd.f32 %v935_v9, %v887_v38  ;;  %v984_v34 = vpop.f32.mrf.mxu1  ;;  %v4241_v47 = vld [vmem:[%s6618_s2 + $0x8c] sm:$0xf]  ;;  %1548 = vmatpush.bf16.msrb.mxu1 %v5583_v44 }
 0x142   :  { %3935 = vmatmul.msk.bf16.gmra.mxu2 %vm633_vm1, %v4902_v25  ;;  %v5595_v38 = vor.u32 %v4241_v47, %v4024_v8  ;;  %v985_v24 = vadd.f32 %v984_v34, %v5460_v35 }
 0x143   :  { %6645 = vst [vmem:[#allocation26_spill] sm:$0xff] %v5572_v1  ;;  %1130 = vmatmul.bf16.gmra.mxu0 %v4904_v26  ;;  %v4236_v26 = vld [vmem:[%s6618_s2 + $0x64] sm:$0xf] }
 0x144   :  { %6646 = vst [vmem:[#allocation27_spill] sm:$0xff] %v5580_v41  ;;  %1179 = vmatmul.bf16.gmra.mxu1 %v4906_v27  ;;  %1561 = vmatpush.bf16.msrb.mxu3 %v5595_v38  ;;  %v5610_v47 = vor.u32 %v4236_v26, %v4000_v61  ;;  %v3982_v26 = vld [vmem:[%s6618_s2 + $0x40] sm:$0xf] }
 0x145   :  { %3942 = vmatmul.msk.bf16.gmra.mxu3 %vm633_vm1, %v4855_v7  ;;  %v891_v9 = vpop.f32.mrf.mxu2 }
 0x146   :  { %v892_v17 = vadd.f32 %v891_v9, %v843_v37  ;;  %1536 = vmatpush.bf16.msrb.mxu0 %v5610_v47  ;;  %v845_v37 = vadd.f32 %v5291_v58, %v5401_v43  ;;  %v4006_v58 = vld [vmem:[%s6618_s2 + $0x68] sm:$0xf] }
 0x148   :  { %v1033_v54 = vpop.f32.mrf.mxu3  ;;  %v937_v27 = vpop.f32.mrf.mxu0 }
 0x149   :  { %v5612_v34 = vadd.f32 %v1033_v54, %v985_v24  ;;  %v5614_v8 = vadd.f32 %v937_v27, %v889_v36  ;;  %v986_v7 = vpop.f32.mrf.mxu1  ;;  %v4234_v24 = vld [vmem:[%s6618_s2 + $0x4c] sm:$0xf0] }
 0x14a   :  { %v987_v9 = vadd.f32 %v986_v7, %v5460_v35  ;;  %v5626_v61 = vor.u32 %v4234_v24, %v3982_v26  ;;  %v4008_v26 = vld [vmem:[%s6618_s2 + $0x78] sm:$0xf0]  ;;  %v848_v24 = vadd.f32 %v5313_v39, %v5401_v43 }
 0x14b   :  { %6647 = vst [vmem:[#allocation28_spill] sm:$0xff] %v5614_v8 }
 0x14c   :  { %1524 = vmatpush.bf16.msrb.mxu2 %v5626_v61 }
 0x14d   :  { %v893_v41 = vpop.f32.mrf.mxu2 }
 0x14e   :  { %v894_v1 = vadd.f32 %v893_v41, %v845_v37  ;;  %v4239_v41 = vld [vmem:[%s6618_s2 + $0x74] sm:$0xf0] }
 0x14f   :  { %v5639_v8 = vor.u32 %v4239_v41, %v4006_v58  ;;  %v3984_v41 = vld [vmem:[%s6618_s2 + $0x50] sm:$0xf0] }
 0x150   :  { %v1035_v36 = vpop.f32.mrf.mxu3  ;;  %v940_v27 = vpop.f32.mrf.mxu0 }
 0x151   :  { %v5628_v54 = vadd.f32 %v1035_v36, %v987_v9  ;;  %v5636_v7 = vadd.f32 %v940_v27, %v892_v17  ;;  %v989_v37 = vpop.f32.mrf.mxu1  ;;  %v4237_v9 = vld [vmem:[%s6618_s2 + $0x6c] sm:$0xf]  ;;  %1549 = vmatpush.bf16.msrb.mxu1 %v5639_v8 }
 0x152   :  { %3936 = vmatmul.msk.bf16.gmra.mxu2 %vm633_vm1, %v4949_v45  ;;  %v5651_v17 = vor.u32 %v4237_v9, %v4008_v26  ;;  %v990_v36 = vadd.f32 %v989_v37, %v5460_v35 }
 0x153   :  { %6648 = vst [vmem:[#allocation29_spill] sm:$0xff] %v5628_v54  ;;  %1135 = vmatmul.bf16.gmra.mxu0 %v4951_v46  ;;  %v4232_v46 = vld [vmem:[%s6618_s2 + $0x44] sm:$0xf] }
 0x154   :  { %6649 = vst [vmem:[#allocation30_spill] sm:$0xff] %v5636_v7  ;;  %1184 = vmatmul.bf16.gmra.mxu1 %v4953_v48  ;;  %1562 = vmatpush.bf16.msrb.mxu3 %v5651_v17  ;;  %v5666_v9 = vor.u32 %v4232_v46, %v3984_v41  ;;  %v3966_v46 = vld [vmem:[%s6618_s2 + $0x20] sm:$0xf] }
 0x155   :  { %3943 = vmatmul.msk.bf16.gmra.mxu3 %vm633_vm1, %v4902_v25  ;;  %v896_v27 = vpop.f32.mrf.mxu2 }
 0x156   :  { %v897_v58 = vadd.f32 %v896_v27, %v848_v24  ;;  %1537 = vmatpush.bf16.msrb.mxu0 %v5666_v9  ;;  %v850_v24 = vadd.f32 %v5324_v13, %v5401_v43  ;;  %v3990_v13 = vld [vmem:[%s6618_s2 + $0x48] sm:$0xf] }
 0x158   :  { %v1038_v39 = vpop.f32.mrf.mxu3  ;;  %v942_v48 = vpop.f32.mrf.mxu0 }
 0x159   :  { %v5668_v37 = vadd.f32 %v1038_v39, %v990_v36  ;;  %v5670_v26 = vadd.f32 %v942_v48, %v894_v1  ;;  %v991_v25 = vpop.f32.mrf.mxu1  ;;  %v4230_v36 = vld [vmem:[%s6618_s2 + $0x2c] sm:$0xf0] }
 0x15a   :  { %v992_v27 = vadd.f32 %v991_v25, %v5460_v35  ;;  %v5682_v41 = vor.u32 %v4230_v36, %v3966_v46  ;;  %v3992_v46 = vld [vmem:[%s6618_s2 + $0x58] sm:$0xf0]  ;;  %v853_v36 = vadd.f32 %v5346_v55, %v5401_v43 }
 0x15b   :  { %6650 = vst [vmem:[#allocation31_spill] sm:$0xff] %v5670_v26 }
 0x15c   :  { %1525 = vmatpush.bf16.msrb.mxu2 %v5682_v41 }
 0x15d   :  { %v898_v7 = vpop.f32.mrf.mxu2 }
 0x15e   :  { %v899_v54 = vadd.f32 %v898_v7, %v850_v24  ;;  %v4235_v7 = vld [vmem:[%s6618_s2 + $0x54] sm:$0xf0] }
 0x15f   :  { %v5695_v26 = vor.u32 %v4235_v7, %v3990_v13  ;;  %v3968_v7 = vld [vmem:[%s6618_s2 + $0x30] sm:$0xf0] }
 0x160   :  { %v1040_v1 = vpop.f32.mrf.mxu3  ;;  %v945_v48 = vpop.f32.mrf.mxu0 }
 0x161   :  { %v5684_v39 = vadd.f32 %v1040_v1, %v992_v27  ;;  %v5692_v25 = vadd.f32 %v945_v48, %v897_v58  ;;  %v994_v24 = vpop.f32.mrf.mxu1  ;;  %v4233_v27 = vld [vmem:[%s6618_s2 + $0x4c] sm:$0xf]  ;;  %1550 = vmatpush.bf16.msrb.mxu1 %v5695_v26 }
 0x162   :  { %3937 = vmatmul.msk.bf16.gmra.mxu2 %vm633_vm1, %v5002_v4  ;;  %v5707_v58 = vor.u32 %v4233_v27, %v3992_v46  ;;  %v995_v1 = vadd.f32 %v994_v24, %v5460_v35 }
 0x163   :  { %6651 = vst [vmem:[#allocation32_spill] sm:$0xff] %v5684_v39  ;;  %1140 = vmatmul.bf16.gmra.mxu0 %v5004_v5  ;;  %v4228_v5 = vld [vmem:[%s6618_s2 + $0x24] sm:$0xf] }
 0x164   :  { %6652 = vst [vmem:[#allocation33_spill] sm:$0xff] %v5692_v25  ;;  %1189 = vmatmul.bf16.gmra.mxu1 %v5006_v6  ;;  %1563 = vmatpush.bf16.msrb.mxu3 %v5707_v58  ;;  %v5722_v27 = vor.u32 %v4228_v5, %v3968_v7  ;;  %v4226_v25 = vld [vmem:[%s6618_s2 + $0xc] sm:$0xf0] }
 0x165   :  { %3944 = vmatmul.msk.bf16.gmra.mxu3 %vm633_vm1, %v4949_v45  ;;  %v901_v48 = vpop.f32.mrf.mxu2 }
 0x166   :  { %v902_v13 = vadd.f32 %v901_v48, %v853_v36  ;;  %1538 = vmatpush.bf16.msrb.mxu0 %v5722_v27  ;;  %v3950_v48 = vld [vmem:[%s6618_s2] sm:$0xf] }
 0x168   :  { %v1043_v55 = vpop.f32.mrf.mxu3  ;;  %v947_v6 = vpop.f32.mrf.mxu0 }
 0x169   :  { %v5724_v24 = vadd.f32 %v1043_v55, %v995_v1  ;;  %v5726_v46 = vadd.f32 %v947_v6, %v899_v54  ;;  %v996_v45 = vpop.f32.mrf.mxu1  ;;  %v5738_v1 = vor.u32 %v4226_v25, %v3950_v48  ;;  %v3974_v6 = vld [vmem:[%s6618_s2 + $0x28] sm:$0xf] }
 0x16a   :  { %v997_v36 = vadd.f32 %v996_v45, %v5460_v35  ;;  %v4231_v45 = vld [vmem:[%s6618_s2 + $0x34] sm:$0xf0] }
 0x16b   :  { %6653 = vst [vmem:[#allocation34_spill] sm:$0xff] %v5726_v46  ;;  %1526 = vmatpush.bf16.msrb.mxu2 %v5738_v1  ;;  %v5752_v48 = vor.u32 %v4231_v45, %v3974_v6 }
 0x16d   :  { %v5736_v5 = vpop.f32.mrf.mxu2  ;;  %1551 = vmatpush.bf16.msrb.mxu1 %v5752_v48 }
 0x16e   :  { %6654 = vst [vmem:[#allocation35_spill] sm:$0xff] %v5736_v5 }
 0x16f   :  { %1643 = vmatpush.bf16.msra.mxu2 %v5359_v32 }
 0x170   :  { %v1045_v7 = vpop.f32.mrf.mxu3  ;;  %v950_v55 = vpop.f32.mrf.mxu0 }
 0x171   :  { %v5741_v54 = vadd.f32 %v1045_v7, %v997_v36  ;;  %v5750_v46 = vadd.f32 %v950_v55, %v902_v13  ;;  %v999_v25 = vpop.f32.mrf.mxu1  ;;  %v4229_v36 = vld [vmem:[%s6618_s2 + $0x2c] sm:$0xf]  ;;  %v3976_v7 = vld [vmem:[%s6618_s2 + $0x38] sm:$0xf0]  ;;  %v858_v55 = vadd.f32 %v5382_v2, %v5401_v43  ;;  %v3952_v2 = vld [vmem:[%s6618_s2 + $0x10] sm:$0xf0] }
 0x172   :  { %3938 = vmatmul.msk.bf16.gmra.mxu2 %vm633_vm1, %v5049_v28  ;;  %v5764_v13 = vor.u32 %v4229_v36, %v3976_v7  ;;  %v1000_v6 = vadd.f32 %v999_v25, %v5460_v35  ;;  %v4224_v36 = vld [vmem:[%s6618_s2 + $0x4] sm:$0xf] }
 0x173   :  { %6655 = vst [vmem:[#allocation36_spill] sm:$0xff] %v5741_v54  ;;  %1145 = vmatmul.bf16.gmra.mxu0 %v5051_v29  ;;  %1644 = vmatpush.bf16.msra.mxu2 %v5398_v23  ;;  %v5780_v7 = vor.u32 %v4224_v36, %v3952_v2  ;;  %v4227_v36 = vld [vmem:[%s6618_s2 + $0x14] sm:$0xf0]  ;;  %v4225_v2 = vld [vmem:[%s6618_s2 + $0xc] sm:$0xf] }
 0x174   :  { %6656 = vst [vmem:[#allocation37_spill] sm:$0xff] %v5750_v46  ;;  %1194 = vmatmul.bf16.gmra.mxu1 %v5053_v30  ;;  %1564 = vmatpush.bf16.msrb.mxu3 %v5764_v13 }
 0x175   :  { %3945 = vmatmul.msk.bf16.gmra.mxu3 %vm633_vm1, %v5002_v4  ;;  %v906_v45 = vpop.f32.mrf.mxu2  ;;  %1539 = vmatpush.bf16.msrb.mxu0 %v5780_v7 }
 0x176   :  { %v907_v29 = vadd.f32 %v906_v45, %v858_v55 }
 0x177   :  { %1645 = vmatpush.bf16.msra.mxu2 %v5457_v12 }
 0x178   :  { %v1048_v25 = vpop.f32.mrf.mxu3  ;;  %v5784_v4 = vpop.f32.mrf.mxu0 }
 0x179   :  { %v5782_v30 = vadd.f32 %v1048_v25, %v1000_v6  ;;  %6657 = vst [vmem:[#allocation38_spill] sm:$0xff] %v5784_v4  ;;  %v5786_v5 = vpop.f32.mrf.mxu1  ;;  %1656 = vmatpush.bf16.msra.mxu0 %v5384_v33  ;;  %v3958_v6 = vld [vmem:[%s6618_s2 + $0x8] sm:$0xf]  ;;  %v3960_v4 = vld [vmem:[%s6618_s2 + $0x18] sm:$0xf0] }
 0x17a   :  { %6658 = vst [vmem:[#allocation39_spill] sm:$0xff] %v5786_v5  ;;  %v5813_v46 = vor.u32 %v4225_v2, %v3960_v4 }
 0x17b   :  { %1646 = vmatpush.bf16.msra.mxu2 %v5514_v59 }
 0x17c   :  { %1565 = vmatpush.bf16.msrb.mxu3 %v5813_v46 }
 0x17d   :  { %v5791_v55 = vpop.f32.mrf.mxu2  ;;  %1657 = vmatpush.bf16.msra.mxu0 %v5441_v50 }
 0x17e   :  { %6659 = vst [vmem:[#allocation40_spill] sm:$0xff] %v5791_v55  ;;  %v5806_v55 = vor.u32 %v4227_v36, %v3958_v6  ;;  %v863_v6 = vadd.f32 %v5439_v19, %v5401_v43 }
 0x17f   :  { %1647 = vmatpush.bf16.msra.mxu2 %v5570_v52 }
 0x180   :  { %v5795_v45 = vpop.f32.mrf.mxu3  ;;  %v955_v25 = vpop.f32.mrf.mxu0  ;;  %1552 = vmatpush.bf16.msrb.mxu1 %v5806_v55  ;;  %1682 = vmatpush.bf16.msra.mxu3 %v5424_v31 }
 0x181   :  { %6660 = vst [vmem:[#allocation41_spill] sm:$0xff] %v5795_v45  ;;  %v5811_v45 = vadd.f32 %v955_v25, %v907_v29  ;;  %v1004_v5 = vpop.f32.mrf.mxu1  ;;  %1658 = vmatpush.bf16.msra.mxu0 %v5498_v22 }
 0x182   :  { %3939 = vmatmul.msk.bf16.gmra.mxu2 %vm633_vm1, %v5093_v49  ;;  %v1005_v29 = vadd.f32 %v1004_v5, %v5460_v35 }
 0x183   :  { %6661 = vst [vmem:[#allocation42_spill] sm:$0xff] %v5811_v45  ;;  %1150 = vmatmul.bf16.gmra.mxu0 %v5098_v53  ;;  %1648 = vmatpush.bf16.msra.mxu2 %v5626_v61 }
 0x184   :  { %1199 = vmatmul.bf16.gmra.mxu1 %v5106_v57  ;;  %1683 = vmatpush.bf16.msra.mxu3 %v5483_v56 }
 0x185   :  { %3946 = vmatmul.msk.bf16.gmra.mxu3 %vm633_vm1, %v5049_v28  ;;  %v911_v4 = vpop.f32.mrf.mxu2  ;;  %1669 = vmatpush.bf16.msra.mxu1 %v5411_v60 }
 0x186   :  { %v912_v36 = vadd.f32 %v911_v4, %v863_v6  ;;  %1659 = vmatpush.bf16.msra.mxu0 %v5554_v11  ;;  %v4541_v4 = vmov 0  }
 0x187   :  { %1649 = vmatpush.bf16.msra.mxu2 %v5682_v41 }
 0x188   :  { %v1053_v53 = vpop.f32.mrf.mxu3  ;;  %v5833_v19 = vpop.f32.mrf.mxu0  ;;  %1684 = vmatpush.bf16.msra.mxu3 %v5539_v63 }
 0x189   :  { %v5831_v2 = vadd.f32 %v1053_v53, %v1005_v29  ;;  %6662 = vst [vmem:[#allocation43_spill] sm:$0xff] %v5833_v19  ;;  %v5835_v5 = vpop.f32.mrf.mxu1  ;;  %1670 = vmatpush.bf16.msra.mxu1 %v5471_v21 }
 0x18a   :  { %6663 = vst [vmem:[#allocation44_spill] sm:$0xff] %v5835_v5  ;;  %1660 = vmatpush.bf16.msra.mxu0 %v5610_v47 }
 0x18b   :  { %1650 = vmatpush.bf16.msra.mxu2 %v5738_v1 }
 0x18c   :  { %1685 = vmatpush.bf16.msra.mxu3 %v5595_v38 }
 0x18d   :  { %v5841_v28 = vpop.f32.mrf.mxu2  ;;  %1671 = vmatpush.bf16.msra.mxu1 %v5527_v16 }
 0x18e   :  { %6664 = vst [vmem:[#allocation45_spill] sm:$0xff] %v5841_v28  ;;  %1661 = vmatpush.bf16.msra.mxu0 %v5666_v9 }
 0x190   :  { %v5847_v57 = vpop.f32.mrf.mxu3  ;;  %v960_v25 = vpop.f32.mrf.mxu0  ;;  %1686 = vmatpush.bf16.msra.mxu3 %v5651_v17 }
 0x191   :  { %6665 = vst [vmem:[#allocation46_spill] sm:$0xff] %v5847_v57  ;;  %v5849_v6 = vadd.f32 %v960_v25, %v912_v36  ;;  %v1009_v29 = vpop.f32.mrf.mxu1  ;;  %1672 = vmatpush.bf16.msra.mxu1 %v5583_v44 }
 0x192   :  { %1527 = vmatmul.bf16.vlgmr.msrb.gmra.mxu2 %v4541_v4  ;;  %v1010_v53 = vadd.f32 %v1009_v29, %v5460_v35  ;;  %1662 = vmatpush.bf16.msra.mxu0 %v5722_v27 }
 0x193   :  { %6666 = vst [vmem:[#allocation47_spill] sm:$0xff] %v5849_v6  ;;  %1155 = vmatmul.bf16.gmra.mxu0 %v5132_v3  ;;  %1767 = vmatpush.bf16.msrb.mxu2 %v5359_v32 }
 0x194   :  { %1204 = vmatmul.bf16.gmra.mxu1 %v5134_v10  ;;  %1687 = vmatpush.bf16.msra.mxu3 %v5707_v58 }
 0x195   :  { %3947 = vmatmul.msk.bf16.gmra.mxu3 %vm633_vm1, %v5093_v49  ;;  %v1072_v36 = vpop.f32.mrf.mxu2  ;;  %1673 = vmatpush.bf16.msra.mxu1 %v5639_v8 }
 0x196   :  { %v5863_v25 = vadd.f32 %v1072_v36, %v5500_v0  ;;  %1663 = vmatpush.bf16.msra.mxu0 %v5780_v7  ;;  %v4514_v0 = vld [vmem:[%s6619_s3] sm:$0xf]  ;;  %s4542_s3 = smov [#allocation3]  }
 0x197   :  { %1768 = vmatpush.bf16.msrb.mxu2 %v5398_v23  ;;  %s3505_s13 = sshll.u32 %s4542_s3, 4  ;;  %s3506_s13 = int_to_ptr.vmem [resolvable:$true] %s3505_s13 }
 0x198   :  { %v1058_v3 = vpop.f32.mrf.mxu3  ;;  %v5869_v29 = vpop.f32.mrf.mxu0  ;;  %1688 = vmatpush.bf16.msra.mxu3 %v5764_v13 }
 0x199   :  { %v5867_v28 = vadd.f32 %v1058_v3, %v1010_v53  ;;  %6667 = vst [vmem:[#allocation48_spill] sm:$0xff] %v5869_v29  ;;  %v5871_v10 = vpop.f32.mrf.mxu1  ;;  %1674 = vmatpush.bf16.msra.mxu1 %v5695_v26  ;;  %v5882_v53 = vperm.slane %v4514_v0, 3 }
 0x19a   :  { %6668 = vst [vmem:[#allocation49_spill] sm:$0xff] %v5871_v10 }
 0x19b   :  { %1769 = vmatpush.bf16.msrb.mxu2 %v5457_v12 }
 0x19c   :  { %1689 = vmatpush.bf16.msra.mxu3 %v5813_v46 }
 0x19d   :  { %v5877_v49 = vpop.f32.mrf.mxu2  ;;  %1675 = vmatpush.bf16.msra.mxu1 %v5752_v48 }
 0x19f   :  { %1770 = vmatpush.bf16.msrb.mxu2 %v5514_v59 }
 0x1a0   :  { %v5886_v36 = vpop.f32.mrf.mxu3  ;;  %v1121_v3 = vpop.f32.mrf.mxu0 }
 0x1a1   :  { %6669 = vst [vmem:[#allocation50_spill] sm:$0xff] %v5886_v36  ;;  %v1122_v29 = vadd.f32 %v1121_v3, %v5882_v53  ;;  %v1170_v10 = vpop.f32.mrf.mxu1  ;;  %1676 = vmatpush.bf16.msra.mxu1 %v5806_v55 }
 0x1a3   :  { %v1171_v6 = vadd.f32 %v1170_v10, %v1122_v29  ;;  %1540 = vmatmul.bf16.vlgmr.msrb.gmra.mxu0 %v4541_v4  ;;  %1771 = vmatpush.bf16.msrb.mxu2 %v5570_v52 }
 0x1a4   :  { %1553 = vmatmul.bf16.vlgmr.msrb.gmra.mxu1 %v4541_v4  ;;  %1780 = vmatpush.bf16.msrb.mxu0 %v5384_v33 }
 0x1a5   :  { %1566 = vmatmul.bf16.vlgmr.msrb.gmra.mxu3 %v4541_v4  ;;  %v1077_v0 = vpop.f32.mrf.mxu2  ;;  %1793 = vmatpush.bf16.msrb.mxu1 %v5411_v60 }
 0x1a6   :  { %v5896_v36 = vadd.f32 %v1077_v0, %v5556_v15  ;;  %1806 = vmatpush.bf16.msrb.mxu3 %v5424_v31 }
 0x1a7   :  { %1772 = vmatpush.bf16.msrb.mxu2 %v5626_v61 }
 0x1a8   :  { %6670 = vst [vmem:[#allocation51_spill] sm:$0xff] %v5896_v36  ;;  %v1219_v3 = vpop.f32.mrf.mxu3  ;;  %v5902_v29 = vpop.f32.mrf.mxu0  ;;  %1781 = vmatpush.bf16.msrb.mxu0 %v5441_v50 }
 0x1a9   :  { %v5900_v19 = vadd.f32 %v1219_v3, %v1171_v6  ;;  %v5904_v10 = vpop.f32.mrf.mxu1  ;;  %1794 = vmatpush.bf16.msrb.mxu1 %v5471_v21 }
 0x1aa   :  { %1807 = vmatpush.bf16.msrb.mxu3 %v5483_v56 }
 0x1ab   :  { %1773 = vmatpush.bf16.msrb.mxu2 %v5682_v41 }
 0x1ac   :  { %1782 = vmatpush.bf16.msrb.mxu0 %v5498_v22 }
 0x1ad   :  { %v5910_v15 = vpop.f32.mrf.mxu2  ;;  %1795 = vmatpush.bf16.msrb.mxu1 %v5527_v16 }
 0x1ae   :  { %6671 = vst [vmem:[#allocation52_spill] sm:$0xff] %v5910_v15  ;;  %1808 = vmatpush.bf16.msrb.mxu3 %v5539_v63 }
 0x1af   :  { %1774 = vmatpush.bf16.msrb.mxu2 %v5738_v1 }
 0x1b0   :  { %v5915_v6 = vpop.f32.mrf.mxu3  ;;  %v1126_v4 = vpop.f32.mrf.mxu0  ;;  %1783 = vmatpush.bf16.msrb.mxu0 %v5554_v11 }
 0x1b1   :  { %v1127_v0 = vadd.f32 %v1126_v4, %v5882_v53  ;;  %v1175_v3 = vpop.f32.mrf.mxu1  ;;  %1796 = vmatpush.bf16.msrb.mxu1 %v5583_v44 }
 0x1b2   :  { %1809 = vmatpush.bf16.msrb.mxu3 %v5595_v38 }
 0x1b3   :  { %v1176_v57 = vadd.f32 %v1175_v3, %v1127_v0 }
 0x1b4   :  { %1784 = vmatpush.bf16.msrb.mxu0 %v5610_v47 }
 0x1b5   :  { %v1082_v5 = vpop.f32.mrf.mxu2  ;;  %1797 = vmatpush.bf16.msrb.mxu1 %v5639_v8 }
 0x1b6   :  { %v5925_v45 = vadd.f32 %v1082_v5, %v5612_v34  ;;  %1810 = vmatpush.bf16.msrb.mxu3 %v5651_v17 }
 0x1b8   :  { %6672 = vst [vmem:[#allocation53_spill] sm:$0xff] %v5925_v45  ;;  %v1224_v43 = vpop.f32.mrf.mxu3  ;;  %v5930_v35 = vpop.f32.mrf.mxu0  ;;  %1785 = vmatpush.bf16.msrb.mxu0 %v5666_v9 }
 0x1b9   :  { %v5928_v4 = vadd.f32 %v1224_v43, %v1176_v57  ;;  %6674 = vst [vmem:[#allocation55_spill] sm:$0xff] %v5930_v35  ;;  %v5932_v54 = vpop.f32.mrf.mxu1  ;;  %1798 = vmatpush.bf16.msrb.mxu1 %v5695_v26 }
 0x1ba   :  { %6675 = vst [vmem:[#allocation56_spill] sm:$0xff] %v5932_v54  ;;  %1811 = vmatpush.bf16.msrb.mxu3 %v5707_v58 }
 0x1bb   :  { %6673 = vst [vmem:[#allocation54_spill] sm:$0xff] %v5928_v4 }
 0x1bc   :  { %1786 = vmatpush.bf16.msrb.mxu0 %v5722_v27 }
 0x1bd   :  { %v5937_v0 = vpop.f32.mrf.mxu2  ;;  %1799 = vmatpush.bf16.msrb.mxu1 %v5752_v48 }
 0x1be   :  { %6676 = vst [vmem:[#allocation57_spill] sm:$0xff] %v5937_v0  ;;  %1812 = vmatpush.bf16.msrb.mxu3 %v5764_v13 }
 0x1c0   :  { %v5942_v43 = vpop.f32.mrf.mxu3  ;;  %v1131_v34 = vpop.f32.mrf.mxu0  ;;  %1787 = vmatpush.bf16.msrb.mxu0 %v5780_v7 }
 0x1c1   :  { %6677 = vst [vmem:[#allocation58_spill] sm:$0xff] %v5942_v43  ;;  %v1132_v5 = vadd.f32 %v1131_v34, %v5882_v53  ;;  %v1180_v57 = vpop.f32.mrf.mxu1  ;;  %1800 = vmatpush.bf16.msrb.mxu1 %v5806_v55 }
 0x1c2   :  { %1813 = vmatpush.bf16.msrb.mxu3 %v5813_v46 }
 0x1c3   :  { %v1181_v3 = vadd.f32 %v1180_v57, %v1132_v5 }
 0x1c5   :  { %v1087_v39 = vpop.f32.mrf.mxu2 }
 0x1c6   :  { %v5949_v0 = vadd.f32 %v1087_v39, %v5668_v37 }
 0x1c8   :  { %6678 = vst [vmem:[#allocation59_spill] sm:$0xff] %v5949_v0  ;;  %v1229_v45 = vpop.f32.mrf.mxu3  ;;  %v5953_v35 = vpop.f32.mrf.mxu0 }
 0x1c9   :  { %v5951_v54 = vadd.f32 %v1229_v45, %v1181_v3  ;;  %6680 = vst [vmem:[#allocation61_spill] sm:$0xff] %v5953_v35  ;;  %v5955_v43 = vpop.f32.mrf.mxu1 }
 0x1ca   :  { %6681 = vst [vmem:[#allocation62_spill] sm:$0xff] %v5955_v43 }
 0x1cb   :  { %6679 = vst [vmem:[#allocation60_spill] sm:$0xff] %v5951_v54 }
 0x1cd   :  { %v5957_v34 = vpop.f32.mrf.mxu2 }
 0x1ce   :  { %6682 = vst [vmem:[#allocation63_spill] sm:$0xff] %v5957_v34 }
 0x1d0   :  { %v5959_v15 = vpop.f32.mrf.mxu3  ;;  %v1136_v4 = vpop.f32.mrf.mxu0 }
 0x1d1   :  { %6683 = vst [vmem:[#allocation64_spill] sm:$0xff] %v5959_v15  ;;  %v1137_v18 = vadd.f32 %v1136_v4, %v5882_v53  ;;  %v1185_v36 = vpop.f32.mrf.mxu1 }
 0x1d3   :  { %v1186_v5 = vadd.f32 %v1185_v36, %v1137_v18 }
 0x1d5   :  { %v1092_v57 = vpop.f32.mrf.mxu2 }
 0x1d6   :  { %v5963_v37 = vadd.f32 %v1092_v57, %v5724_v24 }
 0x1d8   :  { %6684 = vst [vmem:[#allocation65_spill] sm:$0xff] %v5963_v37  ;;  %v1234_v39 = vpop.f32.mrf.mxu3  ;;  %v5967_v3 = vpop.f32.mrf.mxu0 }
 0x1d9   :  { %v5965_v45 = vadd.f32 %v1234_v39, %v1186_v5  ;;  %6686 = vst [vmem:[#allocation67_spill] sm:$0xff] %v5967_v3  ;;  %v5969_v0 = vpop.f32.mrf.mxu1 }
 0x1da   :  { %6687 = vst [vmem:[#allocation68_spill] sm:$0xff] %v5969_v0 }
 0x1db   :  { %6685 = vst [vmem:[#allocation66_spill] sm:$0xff] %v5965_v45 }
 0x1dd   :  { %v5971_v43 = vpop.f32.mrf.mxu2 }
 0x1de   :  { %6688 = vst [vmem:[#allocation69_spill] sm:$0xff] %v5971_v43 }
 0x1e0   :  { %v5973_v34 = vpop.f32.mrf.mxu3  ;;  %v1141_v15 = vpop.f32.mrf.mxu0 }
 0x1e1   :  { %6689 = vst [vmem:[#allocation70_spill] sm:$0xff] %v5973_v34  ;;  %v1142_v4 = vadd.f32 %v1141_v15, %v5882_v53  ;;  %v1190_v35 = vpop.f32.mrf.mxu1 }
 0x1e3   :  { %v1191_v18 = vadd.f32 %v1190_v35, %v1142_v4 }
 0x1e5   :  { %v1097_v36 = vpop.f32.mrf.mxu2 }
 0x1e6   :  { %v5977_v24 = vadd.f32 %v1097_v36, %v5782_v30 }
 0x1e8   :  { %6690 = vst [vmem:[#allocation71_spill] sm:$0xff] %v5977_v24  ;;  %v1239_v57 = vpop.f32.mrf.mxu3  ;;  %v5981_v39 = vpop.f32.mrf.mxu0 }
 0x1e9   :  { %v5979_v5 = vadd.f32 %v1239_v57, %v1191_v18  ;;  %6692 = vst [vmem:[#allocation73_spill] sm:$0xff] %v5981_v39  ;;  %v5983_v37 = vpop.f32.mrf.mxu1 }
 0x1ea   :  { %6693 = vst [vmem:[#allocation74_spill] sm:$0xff] %v5983_v37 }
 0x1eb   :  { %6691 = vst [vmem:[#allocation72_spill] sm:$0xff] %v5979_v5 }
 0x1ed   :  { %v5985_v0 = vpop.f32.mrf.mxu2 }
 0x1ee   :  { %6694 = vst [vmem:[#allocation75_spill] sm:$0xff] %v5985_v0 }
 0x1f0   :  { %v5987_v43 = vpop.f32.mrf.mxu3  ;;  %v1146_v34 = vpop.f32.mrf.mxu0 }
 0x1f1   :  { %6695 = vst [vmem:[#allocation76_spill] sm:$0xff] %v5987_v43  ;;  %v1147_v15 = vadd.f32 %v1146_v34, %v5882_v53  ;;  %v1195_v3 = vpop.f32.mrf.mxu1 }
 0x1f3   :  { %v1196_v35 = vadd.f32 %v1195_v3, %v1147_v15 }
 0x1f5   :  { %v1102_v4 = vpop.f32.mrf.mxu2 }
 0x1f6   :  { %v5991_v30 = vadd.f32 %v1102_v4, %v5831_v2 }
 0x1f8   :  { %6696 = vst [vmem:[#allocation77_spill] sm:$0xff] %v5991_v30  ;;  %v1244_v36 = vpop.f32.mrf.mxu3  ;;  %v5995_v57 = vpop.f32.mrf.mxu0 }
 0x1f9   :  { %v5993_v18 = vadd.f32 %v1244_v36, %v1196_v35  ;;  %6698 = vst [vmem:[#allocation79_spill] sm:$0xff] %v5995_v57  ;;  %v5997_v24 = vpop.f32.mrf.mxu1 }
 0x1fa   :  { %6699 = vst [vmem:[#allocation80_spill] sm:$0xff] %v5997_v24 }
 0x1fb   :  { %6697 = vst [vmem:[#allocation78_spill] sm:$0xff] %v5993_v18 }
 0x1fd   :  { %v5999_v37 = vpop.f32.mrf.mxu2 }
 0x1fe   :  { %6700 = vst [vmem:[#allocation81_spill] sm:$0xff] %v5999_v37 }
 0x200   :  { %v6001_v0 = vpop.f32.mrf.mxu3  ;;  %v1151_v43 = vpop.f32.mrf.mxu0 }
 0x201   :  { %6701 = vst [vmem:[#allocation82_spill] sm:$0xff] %v6001_v0  ;;  %v1152_v34 = vadd.f32 %v1151_v43, %v5882_v53  ;;  %v1200_v39 = vpop.f32.mrf.mxu1 }
 0x203   :  { %v1201_v3 = vadd.f32 %v1200_v39, %v1152_v34 }
 0x205   :  { %v1107_v15 = vpop.f32.mrf.mxu2 }
 0x206   :  { %v6005_v2 = vadd.f32 %v1107_v15, %v5867_v28 }
 0x208   :  { %6702 = vst [vmem:[#allocation83_spill] sm:$0xff] %v6005_v2  ;;  %v1249_v4 = vpop.f32.mrf.mxu3  ;;  %v6009_v36 = vpop.f32.mrf.mxu0 }
 0x209   :  { %v6007_v35 = vadd.f32 %v1249_v4, %v1201_v3  ;;  %6704 = vst [vmem:[#allocation85_spill] sm:$0xff] %v6009_v36  ;;  %v6011_v30 = vpop.f32.mrf.mxu1 }
 0x20a   :  { %6705 = vst [vmem:[#allocation86_spill] sm:$0xff] %v6011_v30 }
 0x20b   :  { %6703 = vst [vmem:[#allocation84_spill] sm:$0xff] %v6007_v35 }
 0x20d   :  { %v6013_v24 = vpop.f32.mrf.mxu2 }
 0x20e   :  { %6706 = vst [vmem:[#allocation87_spill] sm:$0xff] %v6013_v24 }
 0x210   :  { %v6015_v37 = vpop.f32.mrf.mxu3  ;;  %v1156_v0 = vpop.f32.mrf.mxu0 }
 0x211   :  { %6707 = vst [vmem:[#allocation88_spill] sm:$0xff] %v6015_v37  ;;  %v1157_v43 = vadd.f32 %v1156_v0, %v5882_v53  ;;  %v1205_v57 = vpop.f32.mrf.mxu1 }
 0x213   :  { %v1206_v39 = vadd.f32 %v1205_v57, %v1157_v43 }
 0x215   :  { %v1528_v34 = vpop.f32.mrf.mxu2 }
 0x216   :  { %v1571_v28 = vadd.f32 %v1528_v34, %v5185_v42 }
 0x218   :  { %v1254_v15 = vpop.f32.mrf.mxu3  ;;  %v4076_v2 = vmul.f32 -1.442695, %v1571_v28  ;;  %v6021_v4 = vpop.f32.mrf.mxu0 }
 0x219   :  { %v6019_v3 = vadd.f32 %v1254_v15, %v1206_v39  ;;  %6709 = vst [vmem:[#allocation90_spill] sm:$0xff] %v6021_v4  ;;  %v6023_v36 = vpop.f32.mrf.mxu1 }
 0x21a   :  { %6710 = vst [vmem:[#allocation91_spill] sm:$0xff] %v6023_v36  ;;  %4258 = vpow2.f32 %v4076_v2 }
 0x21b   :  { %6708 = vst [vmem:[#allocation89_spill] sm:$0xff] %v6019_v3 }
 0x21d   :  { %v1530_v24 = vpop.f32.mrf.mxu2 }
 0x220   :  { %v6025_v30 = vpop.f32.mrf.mxu3  ;;  %v4259_v37 = vpop.eup %4258 }
 0x221   :  { %6711 = vst [vmem:[#allocation92_spill] sm:$0xff] %v6025_v30  ;;  %v1541_v35 = vpop.f32.mrf.mxu0  ;;  %v1584_v0 = vadd.f32 1.0, %v4259_v37  ;;  %v1554_v43 = vpop.f32.mrf.mxu1 }
 0x222   :  { %v1572_v57 = vadd.f32 %v1541_v35, %v5468_v14  ;;  %v1573_v42 = vadd.f32 %v1554_v43, %v5863_v25 }
 0x223   :  { %4260 = vrcp.f32 %v1584_v0  ;;  %v1598_v35 = vand.u32 2147483648, %v1584_v0  ;;  %vm1592_vm3 = vweird.f32 %v1584_v0 }
 0x224   :  { %v4077_v34 = vmul.f32 -1.442695, %v1572_v57  ;;  %v4078_v39 = vmul.f32 -1.442695, %v1573_v42  ;;  %v1596_v57 = vand.u32 2147483647, %v1584_v0 }
 0x226   :  { %4262 = vpow2.f32 %v4077_v34  ;;  %v1599_v34 = vor.u32 1.1754944e-38, %v1598_v35  ;;  %vm1597_vm5 = vcmp.eq.f32.partialorder %v1596_v57, 8.507059e+37 }
 0x227   :  { %4264 = vpow2.f32 %v4078_v39 }
 0x228   :  { %v1567_v28 = vpop.f32.mrf.mxu3 }
 0x229   :  { %v1543_v15 = vpop.f32.mrf.mxu0  ;;  %v4261_v36 = vpop.eup %4260  ;;  %v1574_v24 = vadd.f32 %v1567_v28, %v5900_v19 }
 0x22a   :  { %v1556_v2 = vpop.f32.mrf.mxu1  ;;  %v1588_v30 = vmul.f32 %v4261_v36, %v1584_v0  ;;  %vm1593_vm2 = vweird.f32 %v4261_v36 }
 0x22b   :  { %4266 = vtanh.f32 %v1574_v24  ;;  %vm1594_vm4 = vmor %vm1592_vm3, %vm1593_vm2 }
 0x22c   :  { %v4263_v4 = vpop.eup %4262  ;;  %v1589_v37 = vsub.f32 1.0, %v1588_v30 }
 0x22d   :  { %v4265_v3 = vpop.eup %4264  ;;  %v1585_v18 = vadd.f32 1.0, %v4263_v4 }
 0x22e   :  { %v1586_v14 = vadd.f32 1.0, %v4265_v3  ;;  %v1590_v25 = vmul.f32 %v4261_v36, %v1589_v37 }
 0x22f   :  { %4268 = vrcp.f32 %v1585_v18  ;;  %v1613_v5 = vand.u32 2147483648, %v1585_v18  ;;  %v1611_v45 = vand.u32 2147483647, %v1585_v18  ;;  %vm1607_vm7 = vweird.f32 %v1585_v18 }
 0x230   :  { %4270 = vrcp.f32 %v1586_v14  ;;  %v1569_v43 = vpop.f32.mrf.mxu3  ;;  %v1591_v42 = vadd.f32 %v4261_v36, %v1590_v25  ;;  %vm1622_vm11 = vweird.f32 %v1586_v14 }
 0x231   :  { %v4267_v39 = vpop.eup %4266  ;;  %v1614_v0 = vor.u32 1.1754944e-38, %v1613_v5  ;;  %vm1612_vm9 = vcmp.eq.f32.partialorder %v1611_v45, 8.507059e+37 }
 0x232   :  { %v1595_v19 = vsel %vm1594_vm4, %v4261_v36, %v1591_v42 }
 0x233   :  { %v1600_v28 = vsel %vm1597_vm5, %v1599_v34, %v1595_v19  ;;  %v1628_v19 = vand.u32 2147483648, %v1586_v14 }
 0x234   :  { %v1634_v30 = vmul.f32 %v4267_v39, %v1600_v28  ;;  %v1626_v39 = vand.u32 2147483647, %v1586_v14 }
 0x235   :  { %v4269_v15 = vpop.eup %4268 }
 0x236   :  { %v4271_v4 = vpop.eup %4270  ;;  %v1603_v3 = vmul.f32 %v4269_v15, %v1585_v18  ;;  %vm1608_vm6 = vweird.f32 %v4269_v15  ;;  %v1629_v18 = vor.u32 1.1754944e-38, %v1628_v19  ;;  %vm1627_vm13 = vcmp.eq.f32.partialorder %v1626_v39, 8.507059e+37 }
 0x237   :  { %v1618_v2 = vmul.f32 %v4271_v4, %v1586_v14  ;;  %vm1609_vm8 = vmor %vm1607_vm7, %vm1608_vm6  ;;  %vm1623_vm10 = vweird.f32 %v4271_v4 }
 0x238   :  { %v1604_v24 = vsub.f32 1.0, %v1603_v3  ;;  %vm1624_vm12 = vmor %vm1622_vm11, %vm1623_vm10 }
 0x239   :  { %v1619_v54 = vsub.f32 1.0, %v1618_v2 }
 0x23a   :  { %v1605_v37 = vmul.f32 %v4269_v15, %v1604_v24 }
 0x23b   :  { %v1620_v36 = vmul.f32 %v4271_v4, %v1619_v54  ;;  %v1075_v54 = vadd.f32 %v5877_v49, %v5516_v20 }
 0x23c   :  { %v1606_v25 = vadd.f32 %v4269_v15, %v1605_v37 }
 0x23d   :  { %v1621_v34 = vadd.f32 %v4271_v4, %v1620_v36 }
 0x23e   :  { %v1610_v35 = vsel %vm1609_vm8, %v4269_v15, %v1606_v25 }
 0x23f   :  { %v1615_v57 = vsel %vm1612_vm9, %v1614_v0, %v1610_v35  ;;  %v1625_v28 = vsel %vm1624_vm12, %v4271_v4, %v1621_v34 }
 0x240   :  { %v1633_v43 = vmul.f32 0.0, %v1615_v57  ;;  %v1630_v3 = vsel %vm1627_vm13, %v1629_v18, %v1625_v28  ;;  %v1124_v18 = vadd.f32 %v5902_v29, %v5882_v53 }
 0x242   :  { %v6030_v42 = vadd.f32 %v1634_v30, %v1633_v43 }
 0x244   :  { %4272 = vtanh.f32 %v6030_v42 }
 0x24a   :  { %v4273_v5 = vpop.eup %4272 }
 0x24b   :  { %v1637_v15 = vmul.f32 %v4273_v5, %v1630_v3 }
 0x24d   :  { %v1642_v45 = vpack.c.bf16 %v1637_v15, %v1637_v15  ;;  %v1173_v15 = vadd.f32 %v5904_v10, %v1124_v18 }
 0x24f   :  { %1651 = vmatmul.bf16.vlgmr.msra.gmra.mxu2 %v1642_v45  ;;  %1664 = vmatmul.bf16.vlgmr.msra.gmra.mxu0 %v1642_v45 }
 0x250   :  { %1677 = vmatmul.bf16.vlgmr.msra.gmra.mxu1 %v1642_v45  ;;  %1690 = vmatmul.bf16.vlgmr.msra.gmra.mxu3 %v1642_v45 }
 0x251   :  { %1891 = vmatpush.bf16.msra.mxu2 %v5359_v32  ;;  %1904 = vmatpush.bf16.msra.mxu0 %v5384_v33 }
 0x252   :  { %1917 = vmatpush.bf16.msra.mxu1 %v5411_v60  ;;  %1930 = vmatpush.bf16.msra.mxu3 %v5424_v31 }
 0x255   :  { %1892 = vmatpush.bf16.msra.mxu2 %v5398_v23  ;;  %1905 = vmatpush.bf16.msra.mxu0 %v5441_v50 }
 0x256   :  { %1918 = vmatpush.bf16.msra.mxu1 %v5471_v21  ;;  %1931 = vmatpush.bf16.msra.mxu3 %v5483_v56 }
 0x259   :  { %1893 = vmatpush.bf16.msra.mxu2 %v5457_v12  ;;  %1906 = vmatpush.bf16.msra.mxu0 %v5498_v22 }
 0x25a   :  { %1919 = vmatpush.bf16.msra.mxu1 %v5527_v16  ;;  %1932 = vmatpush.bf16.msra.mxu3 %v5539_v63 }
 0x25d   :  { %1894 = vmatpush.bf16.msra.mxu2 %v5514_v59  ;;  %1907 = vmatpush.bf16.msra.mxu0 %v5554_v11 }
 0x25e   :  { %1920 = vmatpush.bf16.msra.mxu1 %v5583_v44  ;;  %1933 = vmatpush.bf16.msra.mxu3 %v5595_v38 }
 0x261   :  { %1895 = vmatpush.bf16.msra.mxu2 %v5570_v52  ;;  %1908 = vmatpush.bf16.msra.mxu0 %v5610_v47 }
 0x262   :  { %1921 = vmatpush.bf16.msra.mxu1 %v5639_v8  ;;  %1934 = vmatpush.bf16.msra.mxu3 %v5651_v17 }
 0x265   :  { %1896 = vmatpush.bf16.msra.mxu2 %v5626_v61  ;;  %1909 = vmatpush.bf16.msra.mxu0 %v5666_v9 }
 0x266   :  { %1922 = vmatpush.bf16.msra.mxu1 %v5695_v26  ;;  %1935 = vmatpush.bf16.msra.mxu3 %v5707_v58 }
 0x269   :  { %1897 = vmatpush.bf16.msra.mxu2 %v5682_v41  ;;  %1910 = vmatpush.bf16.msra.mxu0 %v5722_v27 }
 0x26a   :  { %1923 = vmatpush.bf16.msra.mxu1 %v5752_v48  ;;  %1936 = vmatpush.bf16.msra.mxu3 %v5764_v13 }
 0x26d   :  { %1898 = vmatpush.bf16.msra.mxu2 %v5738_v1  ;;  %1911 = vmatpush.bf16.msra.mxu0 %v5780_v7 }
 0x26e   :  { %1924 = vmatpush.bf16.msra.mxu1 %v5806_v55  ;;  %1937 = vmatpush.bf16.msra.mxu3 %v5813_v46 }
 0x2cc   :  { %v1665_v14 = vpop.f32.mrf.mxu0 }
 0x2cd   :  { %v1696_v30 = vadd.f32 %v1665_v14, %v5502_v40  ;;  %v1678_v4 = vpop.f32.mrf.mxu1 }
 0x2ce   :  { %v1697_v2 = vadd.f32 %v1678_v4, %v1075_v54  ;;  %v1222_v54 = vadd.f32 %v5915_v6, %v1173_v15 }
 0x2cf   :  { %v4080_v24 = vmul.f32 -1.442695, %v1696_v30 }
 0x2d0   :  { %v4081_v37 = vmul.f32 -1.442695, %v1697_v2 }
 0x2d1   :  { %4274 = vpow2.f32 %v4080_v24 }
 0x2d2   :  { %4276 = vpow2.f32 %v4081_v37  ;;  %v1652_v25 = vpop.f32.mrf.mxu2 }
 0x2d3   :  { %v1695_v0 = vadd.f32 %v1652_v25, %v5196_v62  ;;  %v1691_v35 = vpop.f32.mrf.mxu3 }
 0x2d4   :  { %v1667_v36 = vpop.f32.mrf.mxu0  ;;  %v1698_v2 = vadd.f32 %v1691_v35, %v1222_v54 }
 0x2d5   :  { %v4079_v57 = vmul.f32 -1.442695, %v1695_v0  ;;  %v1680_v43 = vpop.f32.mrf.mxu1 }
 0x2d7   :  { %v4275_v34 = vpop.eup %4274  ;;  %4278 = vpow2.f32 %v4079_v57 }
 0x2d8   :  { %v4277_v19 = vpop.eup %4276  ;;  %v1709_v20 = vadd.f32 1.0, %v4275_v34 }
 0x2d9   :  { %v1710_v40 = vadd.f32 1.0, %v4277_v19 }
 0x2da   :  { %4280 = vrcp.f32 %v1709_v20  ;;  %v1654_v49 = vpop.f32.mrf.mxu2  ;;  %v1737_v25 = vand.u32 2147483648, %v1709_v20  ;;  %vm1731_vm15 = vweird.f32 %v1709_v20  ;;  %v1735_v36 = vand.u32 2147483647, %v1709_v20 }
 0x2db   :  { %v1693_v39 = vpop.f32.mrf.mxu3  ;;  %4282 = vrcp.f32 %v1710_v40  ;;  %vm1746_vm7 = vweird.f32 %v1710_v40 }
 0x2dc   :  { %v1738_v6 = vor.u32 1.1754944e-38, %v1737_v25  ;;  %vm1736_vm3 = vcmp.eq.f32.partialorder %v1735_v36, 8.507059e+37 }
 0x2dd   :  { %v4279_v28 = vpop.eup %4278 }
 0x2de   :  { %v1708_v5 = vadd.f32 1.0, %v4279_v28 }
 0x2e0   :  { %v4281_v3 = vpop.eup %4280  ;;  %4284 = vrcp.f32 %v1708_v5  ;;  %v1722_v57 = vand.u32 2147483648, %v1708_v5  ;;  %v1720_v10 = vand.u32 2147483647, %v1708_v5  ;;  %vm1716_vm2 = vweird.f32 %v1708_v5 }
 0x2e1   :  { %v1727_v62 = vmul.f32 %v4281_v3, %v1709_v20  ;;  %v4283_v14 = vpop.eup %4282  ;;  %vm1732_vm14 = vweird.f32 %v4281_v3  ;;  %4286 = vtanh.f32 %v1698_v2 }
 0x2e2   :  { %v1742_v0 = vmul.f32 %v4283_v14, %v1710_v40  ;;  %vm1733_vm0 = vmor %vm1731_vm15, %vm1732_vm14  ;;  %v1723_v35 = vor.u32 1.1754944e-38, %v1722_v57  ;;  %vm1721_vm5 = vcmp.eq.f32.partialorder %v1720_v10, 8.507059e+37  ;;  %vm1747_vm6 = vweird.f32 %v4283_v14 }
 0x2e3   :  { %v1728_v45 = vsub.f32 1.0, %v1727_v62  ;;  %vm1748_vm8 = vmor %vm1746_vm7, %vm1747_vm6 }
 0x2e4   :  { %v1743_v19 = vsub.f32 1.0, %v1742_v0 }
 0x2e5   :  { %v1729_v30 = vmul.f32 %v4281_v3, %v1728_v45 }
 0x2e6   :  { %v4285_v4 = vpop.eup %4284  ;;  %v1744_v62 = vmul.f32 %v4283_v14, %v1743_v19 }
 0x2e7   :  { %v1712_v24 = vmul.f32 %v4285_v4, %v1708_v5  ;;  %v1730_v37 = vadd.f32 %v4281_v3, %v1729_v30  ;;  %vm1717_vm1 = vweird.f32 %v4285_v4  ;;  %v4287_v18 = vpop.eup %4286  ;;  %v1752_v30 = vand.u32 2147483648, %v1710_v40 }
 0x2e8   :  { %vm1718_vm4 = vmor %vm1716_vm2, %vm1717_vm1  ;;  %v1750_v5 = vand.u32 2147483647, %v1710_v40 }
 0x2e9   :  { %v1713_v29 = vsub.f32 1.0, %v1712_v24  ;;  %v1734_v34 = vsel %vm1733_vm0, %v4281_v3, %v1730_v37  ;;  %v1745_v3 = vadd.f32 %v4283_v14, %v1744_v62  ;;  %v1753_v24 = vor.u32 1.1754944e-38, %v1752_v30 }
 0x2ea   :  { %v1739_v39 = vsel %vm1736_vm3, %v1738_v6, %v1734_v34  ;;  %vm1751_vm9 = vcmp.eq.f32.partialorder %v1750_v5, 8.507059e+37  ;;  %v6713_v34 = vld [vmem:[#allocation6_spill] sm:$0xff] }
 0x2eb   :  { %v1714_v43 = vmul.f32 %v4285_v4, %v1713_v29  ;;  %v1757_v15 = vmul.f32 %v1739_v39, %v6030_v42  ;;  %v1749_v2 = vsel %vm1748_vm8, %v4283_v14, %v1745_v3  ;;  %v6712_v29 = vld [vmem:[#allocation51_spill] sm:$0xff] }
 0x2ec   :  { %v1754_v37 = vsel %vm1751_vm9, %v1753_v24, %v1749_v2 }
 0x2ed   :  { %v1715_v49 = vadd.f32 %v4285_v4, %v1714_v43 }
 0x2ef   :  { %v1719_v28 = vsel %vm1718_vm4, %v4285_v4, %v1715_v49 }
 0x2f0   :  { %v1724_v20 = vsel %vm1721_vm5, %v1723_v35, %v1719_v28 }
 0x2f1   :  { %v1758_v45 = vmul.f32 %v4287_v18, %v1724_v20 }
 0x2f3   :  { %v6074_v54 = vadd.f32 %v1758_v45, %v1757_v15 }
 0x2f5   :  { %4288 = vtanh.f32 %v6074_v54 }
 0x2fb   :  { %v4289_v4 = vpop.eup %4288 }
 0x2fc   :  { %v1761_v25 = vmul.f32 %v4289_v4, %v1754_v37 }
 0x2fe   :  { %v1766_v0 = vpack.c.bf16 %v1761_v25, %v1761_v25  ;;  %v6714_v25 = vld [vmem:[#allocation54_spill] sm:$0xff] }
 0x300   :  { %1775 = vmatmul.bf16.vlgmr.msrb.gmra.mxu2 %v1766_v0  ;;  %1788 = vmatmul.bf16.vlgmr.msrb.gmra.mxu0 %v1766_v0 }
 0x301   :  { %1801 = vmatmul.bf16.vlgmr.msrb.gmra.mxu1 %v1766_v0  ;;  %1814 = vmatmul.bf16.vlgmr.msrb.gmra.mxu3 %v1766_v0 }
 0x302   :  { %2015 = vmatpush.bf16.msrb.mxu2 %v5359_v32  ;;  %2028 = vmatpush.bf16.msrb.mxu0 %v5384_v33 }
 0x303   :  { %2041 = vmatpush.bf16.msrb.mxu1 %v5411_v60  ;;  %2054 = vmatpush.bf16.msrb.mxu3 %v5424_v31 }
 0x306   :  { %2016 = vmatpush.bf16.msrb.mxu2 %v5398_v23  ;;  %2029 = vmatpush.bf16.msrb.mxu0 %v5441_v50 }
 0x307   :  { %2042 = vmatpush.bf16.msrb.mxu1 %v5471_v21  ;;  %2055 = vmatpush.bf16.msrb.mxu3 %v5483_v56 }
 0x30a   :  { %2017 = vmatpush.bf16.msrb.mxu2 %v5457_v12  ;;  %2030 = vmatpush.bf16.msrb.mxu0 %v5498_v22 }
 0x30b   :  { %2043 = vmatpush.bf16.msrb.mxu1 %v5527_v16  ;;  %2056 = vmatpush.bf16.msrb.mxu3 %v5539_v63 }
 0x30e   :  { %2018 = vmatpush.bf16.msrb.mxu2 %v5514_v59  ;;  %2031 = vmatpush.bf16.msrb.mxu0 %v5554_v11 }
 0x30f   :  { %2044 = vmatpush.bf16.msrb.mxu1 %v5583_v44  ;;  %2057 = vmatpush.bf16.msrb.mxu3 %v5595_v38 }
 0x312   :  { %2019 = vmatpush.bf16.msrb.mxu2 %v5570_v52  ;;  %2032 = vmatpush.bf16.msrb.mxu0 %v5610_v47 }
 0x313   :  { %2045 = vmatpush.bf16.msrb.mxu1 %v5639_v8  ;;  %2058 = vmatpush.bf16.msrb.mxu3 %v5651_v17 }
 0x316   :  { %2020 = vmatpush.bf16.msrb.mxu2 %v5626_v61  ;;  %2033 = vmatpush.bf16.msrb.mxu0 %v5666_v9 }
 0x317   :  { %2046 = vmatpush.bf16.msrb.mxu1 %v5695_v26  ;;  %2059 = vmatpush.bf16.msrb.mxu3 %v5707_v58 }
 0x31a   :  { %2021 = vmatpush.bf16.msrb.mxu2 %v5682_v41  ;;  %2034 = vmatpush.bf16.msrb.mxu0 %v5722_v27 }
 0x31b   :  { %2047 = vmatpush.bf16.msrb.mxu1 %v5752_v48  ;;  %2060 = vmatpush.bf16.msrb.mxu3 %v5764_v13 }
 0x31e   :  { %2022 = vmatpush.bf16.msrb.mxu2 %v5738_v1  ;;  %2035 = vmatpush.bf16.msrb.mxu0 %v5780_v7 }
 0x31f   :  { %2048 = vmatpush.bf16.msrb.mxu1 %v5806_v55  ;;  %2061 = vmatpush.bf16.msrb.mxu3 %v5813_v46 }
 0x37d   :  { %v1789_v42 = vpop.f32.mrf.mxu0 }
 0x37e   :  { %v1820_v40 = vadd.f32 %v1789_v42, %v5524_v51  ;;  %v1802_v14 = vpop.f32.mrf.mxu1 }
 0x37f   :  { %v1821_v36 = vadd.f32 %v1802_v14, %v6712_v29 }
 0x380   :  { %v4083_v57 = vmul.f32 -1.442695, %v1820_v40 }
 0x381   :  { %v4084_v43 = vmul.f32 -1.442695, %v1821_v36 }
 0x382   :  { %4290 = vpow2.f32 %v4083_v57 }
 0x383   :  { %4292 = vpow2.f32 %v4084_v43  ;;  %v1776_v10 = vpop.f32.mrf.mxu2 }
 0x384   :  { %v1819_v6 = vadd.f32 %v1776_v10, %v6713_v34  ;;  %v1815_v19 = vpop.f32.mrf.mxu3 }
 0x385   :  { %v1791_v49 = vpop.f32.mrf.mxu0  ;;  %v1822_v0 = vadd.f32 %v1815_v19, %v6714_v25 }
 0x386   :  { %v4082_v35 = vmul.f32 -1.442695, %v1819_v6  ;;  %v1804_v39 = vpop.f32.mrf.mxu1 }
 0x388   :  { %v4291_v28 = vpop.eup %4290  ;;  %4294 = vpow2.f32 %v4082_v35 }
 0x389   :  { %v4293_v18 = vpop.eup %4292  ;;  %v1833_v62 = vadd.f32 1.0, %v4291_v28 }
 0x38a   :  { %v1834_v20 = vadd.f32 1.0, %v4293_v18 }
 0x38b   :  { %4296 = vrcp.f32 %v1833_v62  ;;  %v1778_v51 = vpop.f32.mrf.mxu2  ;;  %v1861_v14 = vand.u32 2147483648, %v1833_v62  ;;  %vm1855_vm11 = vweird.f32 %v1833_v62  ;;  %v1859_v57 = vand.u32 2147483647, %v1833_v62 }
 0x38c   :  { %v1817_v15 = vpop.f32.mrf.mxu3  ;;  %4298 = vrcp.f32 %v1834_v20  ;;  %vm1870_vm3 = vweird.f32 %v1834_v20 }
 0x38d   :  { %v1862_v49 = vor.u32 1.1754944e-38, %v1861_v14  ;;  %vm1860_vm15 = vcmp.eq.f32.partialorder %v1859_v57, 8.507059e+37 }
 0x38e   :  { %v4295_v45 = vpop.eup %4294 }
 0x38f   :  { %v1832_v3 = vadd.f32 1.0, %v4295_v45 }
 0x391   :  { %v4297_v30 = vpop.eup %4296  ;;  %4300 = vrcp.f32 %v1832_v3  ;;  %v1846_v43 = vand.u32 2147483648, %v1832_v3  ;;  %v1844_v34 = vand.u32 2147483647, %v1832_v3  ;;  %vm1840_vm14 = vweird.f32 %v1832_v3 }
 0x392   :  { %v1851_v5 = vmul.f32 %v4297_v30, %v1833_v62  ;;  %v4299_v24 = vpop.eup %4298  ;;  %vm1856_vm10 = vweird.f32 %v4297_v30  ;;  %4302 = vtanh.f32 %v1822_v0 }
 0x393   :  { %v1866_v29 = vmul.f32 %v4299_v24, %v1834_v20  ;;  %vm1857_vm12 = vmor %vm1855_vm11, %vm1856_vm10  ;;  %v1847_v19 = vor.u32 1.1754944e-38, %v1846_v43  ;;  %vm1845_vm1 = vcmp.eq.f32.partialorder %v1844_v34, 8.507059e+37  ;;  %vm1871_vm2 = vweird.f32 %v4299_v24 }
 0x394   :  { %v1852_v2 = vsub.f32 1.0, %v1851_v5  ;;  %vm1872_vm4 = vmor %vm1870_vm3, %vm1871_vm2 }
 0x395   :  { %v1867_v35 = vsub.f32 1.0, %v1866_v29 }
 0x396   :  { %v1853_v4 = vmul.f32 %v4297_v30, %v1852_v2 }
 0x397   :  { %v4301_v37 = vpop.eup %4300  ;;  %v1868_v15 = vmul.f32 %v4299_v24, %v1867_v35  ;;  %v6718_v35 = vld [vmem:[#allocation7_spill] sm:$0xff] }
 0x398   :  { %v1836_v42 = vmul.f32 %v4301_v37, %v1832_v3  ;;  %v1854_v40 = vadd.f32 %v4297_v30, %v1853_v4  ;;  %vm1841_vm13 = vweird.f32 %v4301_v37  ;;  %v4303_v51 = vpop.eup %4302  ;;  %v1876_v4 = vand.u32 2147483648, %v1834_v20 }
 0x399   :  { %vm1842_vm0 = vmor %vm1840_vm14, %vm1841_vm13  ;;  %v1874_v3 = vand.u32 2147483647, %v1834_v20  ;;  %v6716_v20 = vld [vmem:[#allocation52_spill] sm:$0xff] }
 0x39a   :  { %v1837_v36 = vsub.f32 1.0, %v1836_v42  ;;  %v1858_v6 = vsel %vm1857_vm12, %v4297_v30, %v1854_v40  ;;  %v1869_v30 = vadd.f32 %v4299_v24, %v1868_v15  ;;  %v1877_v0 = vor.u32 1.1754944e-38, %v1876_v4 }
 0x39b   :  { %v1863_v28 = vsel %vm1860_vm15, %v1862_v49, %v1858_v6  ;;  %vm1875_vm5 = vcmp.eq.f32.partialorder %v1874_v3, 8.507059e+37 }
 0x39c   :  { %v1838_v10 = vmul.f32 %v4301_v37, %v1837_v36  ;;  %v1881_v45 = vmul.f32 %v1863_v28, %v6074_v54  ;;  %v1873_v25 = vsel %vm1872_vm4, %v4299_v24, %v1869_v30  ;;  %v6715_v54 = vld [vmem:[#allocation26_spill] sm:$0xff]  ;;  %v6717_v36 = vld [vmem:[#allocation25_spill] sm:$0xff] }
 0x39d   :  { %v1878_v42 = vsel %vm1875_vm5, %v1877_v0, %v1873_v25  ;;  %v1080_v24 = vadd.f32 %v6716_v20, %v6715_v54  ;;  %v6719_v25 = vld [vmem:[#allocation55_spill] sm:$0xff] }
 0x39e   :  { %v1839_v39 = vadd.f32 %v4301_v37, %v1838_v10  ;;  %v1129_v0 = vadd.f32 %v6719_v25, %v5882_v53 }
 0x3a0   :  { %v1843_v18 = vsel %vm1842_vm0, %v4301_v37, %v1839_v39 }
 0x3a1   :  { %v1848_v62 = vsel %vm1845_vm1, %v1847_v19, %v1843_v18 }
 0x3a2   :  { %v1882_v5 = vmul.f32 %v4303_v51, %v1848_v62 }
 0x3a4   :  { %v6114_v2 = vadd.f32 %v1882_v5, %v1881_v45 }
 0x3a6   :  { %4304 = vtanh.f32 %v6114_v2 }
 0x3ac   :  { %v4305_v37 = vpop.eup %4304 }
 0x3ad   :  { %v1885_v40 = vmul.f32 %v4305_v37, %v1878_v42 }
 0x3af   :  { %v1890_v14 = vpack.c.bf16 %v1885_v40, %v1885_v40 }
 0x3b1   :  { %1899 = vmatmul.bf16.vlgmr.msra.gmra.mxu2 %v1890_v14  ;;  %1912 = vmatmul.bf16.vlgmr.msra.gmra.mxu0 %v1890_v14 }
 0x3b2   :  { %1925 = vmatmul.bf16.vlgmr.msra.gmra.mxu1 %v1890_v14  ;;  %1938 = vmatmul.bf16.vlgmr.msra.gmra.mxu3 %v1890_v14  ;;  %v6720_v14 = vld [vmem:[#allocation56_spill] sm:$0xff] }
 0x3b3   :  { %2139 = vmatpush.bf16.msra.mxu2 %v5359_v32  ;;  %2152 = vmatpush.bf16.msra.mxu0 %v5384_v33  ;;  %v1178_v54 = vadd.f32 %v6720_v14, %v1129_v0 }
 0x3b4   :  { %2165 = vmatpush.bf16.msra.mxu1 %v5411_v60  ;;  %2178 = vmatpush.bf16.msra.mxu3 %v5424_v31 }
 0x3b7   :  { %2140 = vmatpush.bf16.msra.mxu2 %v5398_v23  ;;  %2153 = vmatpush.bf16.msra.mxu0 %v5441_v50 }
 0x3b8   :  { %2166 = vmatpush.bf16.msra.mxu1 %v5471_v21  ;;  %2179 = vmatpush.bf16.msra.mxu3 %v5483_v56 }
 0x3bb   :  { %2141 = vmatpush.bf16.msra.mxu2 %v5457_v12  ;;  %2154 = vmatpush.bf16.msra.mxu0 %v5498_v22 }
 0x3bc   :  { %2167 = vmatpush.bf16.msra.mxu1 %v5527_v16  ;;  %2180 = vmatpush.bf16.msra.mxu3 %v5539_v63 }
 0x3bf   :  { %2142 = vmatpush.bf16.msra.mxu2 %v5514_v59  ;;  %2155 = vmatpush.bf16.msra.mxu0 %v5554_v11 }
 0x3c0   :  { %2168 = vmatpush.bf16.msra.mxu1 %v5583_v44  ;;  %2181 = vmatpush.bf16.msra.mxu3 %v5595_v38 }
 0x3c3   :  { %2143 = vmatpush.bf16.msra.mxu2 %v5570_v52  ;;  %2156 = vmatpush.bf16.msra.mxu0 %v5610_v47 }
 0x3c4   :  { %2169 = vmatpush.bf16.msra.mxu1 %v5639_v8  ;;  %2182 = vmatpush.bf16.msra.mxu3 %v5651_v17 }
 0x3c7   :  { %2144 = vmatpush.bf16.msra.mxu2 %v5626_v61  ;;  %2157 = vmatpush.bf16.msra.mxu0 %v5666_v9 }
 0x3c8   :  { %2170 = vmatpush.bf16.msra.mxu1 %v5695_v26  ;;  %2183 = vmatpush.bf16.msra.mxu3 %v5707_v58 }
 0x3cb   :  { %2145 = vmatpush.bf16.msra.mxu2 %v5682_v41  ;;  %2158 = vmatpush.bf16.msra.mxu0 %v5722_v27 }
 0x3cc   :  { %2171 = vmatpush.bf16.msra.mxu1 %v5752_v48  ;;  %2184 = vmatpush.bf16.msra.mxu3 %v5764_v13 }
 0x3cf   :  { %2146 = vmatpush.bf16.msra.mxu2 %v5738_v1  ;;  %2159 = vmatpush.bf16.msra.mxu0 %v5780_v7 }
 0x3d0   :  { %2172 = vmatpush.bf16.msra.mxu1 %v5806_v55  ;;  %2185 = vmatpush.bf16.msra.mxu3 %v5813_v46 }
 0x42e   :  { %v1913_v29 = vpop.f32.mrf.mxu0 }
 0x42f   :  { %v1944_v57 = vadd.f32 %v1913_v29, %v6717_v36  ;;  %v1926_v43 = vpop.f32.mrf.mxu1 }
 0x430   :  { %v1945_v10 = vadd.f32 %v1926_v43, %v1080_v24  ;;  %v6721_v24 = vld [vmem:[#allocation58_spill] sm:$0xff] }
 0x431   :  { %v4086_v34 = vmul.f32 -1.442695, %v1944_v57  ;;  %v1227_v29 = vadd.f32 %v6721_v24, %v1178_v54 }
 0x432   :  { %v4087_v6 = vmul.f32 -1.442695, %v1945_v10 }
 0x433   :  { %4306 = vpow2.f32 %v4086_v34 }
 0x434   :  { %4308 = vpow2.f32 %v4087_v6  ;;  %v1900_v49 = vpop.f32.mrf.mxu2 }
 0x435   :  { %v1943_v39 = vadd.f32 %v1900_v49, %v6718_v35  ;;  %v1939_v19 = vpop.f32.mrf.mxu3 }
 0x436   :  { %v1915_v28 = vpop.f32.mrf.mxu0  ;;  %v1946_v10 = vadd.f32 %v1939_v19, %v1227_v29 }
 0x437   :  { %v4085_v18 = vmul.f32 -1.442695, %v1943_v39  ;;  %v1928_v51 = vpop.f32.mrf.mxu1 }
 0x439   :  { %v4307_v15 = vpop.eup %4306  ;;  %4310 = vpow2.f32 %v4085_v18 }
 0x43a   :  { %v4309_v62 = vpop.eup %4308  ;;  %v1957_v45 = vadd.f32 1.0, %v4307_v15 }
 0x43b   :  { %v1958_v30 = vadd.f32 1.0, %v4309_v62 }
 0x43c   :  { %4312 = vrcp.f32 %v1957_v45  ;;  %v1902_v5 = vpop.f32.mrf.mxu2  ;;  %v1985_v49 = vand.u32 2147483648, %v1957_v45  ;;  %vm1979_vm7 = vweird.f32 %v1957_v45  ;;  %v1983_v28 = vand.u32 2147483647, %v1957_v45 }
 0x43d   :  { %v1941_v4 = vpop.f32.mrf.mxu3  ;;  %4314 = vrcp.f32 %v1958_v30  ;;  %v2000_v29 = vand.u32 2147483648, %v1958_v30  ;;  %vm1994_vm15 = vweird.f32 %v1958_v30 }
 0x43e   :  { %v1986_v5 = vor.u32 1.1754944e-38, %v1985_v49  ;;  %vm1984_vm11 = vcmp.eq.f32.partialorder %v1983_v28, 8.507059e+37 }
 0x43f   :  { %v4311_v3 = vpop.eup %4310 }
 0x440   :  { %v1956_v37 = vadd.f32 1.0, %v4311_v3 }
 0x442   :  { %v4313_v42 = vpop.eup %4312  ;;  %4316 = vrcp.f32 %v1956_v37  ;;  %v1970_v18 = vand.u32 2147483648, %v1956_v37  ;;  %v1968_v15 = vand.u32 2147483647, %v1956_v37  ;;  %vm1964_vm10 = vweird.f32 %v1956_v37 }
 0x443   :  { %v1975_v40 = vmul.f32 %v4313_v42, %v1957_v45  ;;  %v4315_v36 = vpop.eup %4314  ;;  %vm1980_vm6 = vweird.f32 %v4313_v42  ;;  %4318 = vtanh.f32 %v1946_v10  ;;  %v2001_v10 = vor.u32 1.1754944e-38, %v2000_v29 }
 0x444   :  { %v1990_v35 = vmul.f32 %v4315_v36, %v1958_v30  ;;  %vm1981_vm8 = vmor %vm1979_vm7, %vm1980_vm6  ;;  %v1971_v19 = vor.u32 1.1754944e-38, %v1970_v18  ;;  %vm1969_vm13 = vcmp.eq.f32.partialorder %v1968_v15, 8.507059e+37  ;;  %vm1995_vm14 = vweird.f32 %v4315_v36 }
 0x445   :  { %v1976_v20 = vsub.f32 1.0, %v1975_v40  ;;  %vm1996_vm0 = vmor %vm1994_vm15, %vm1995_vm14 }
 0x446   :  { %v1991_v4 = vsub.f32 1.0, %v1990_v35 }
 0x447   :  { %v1977_v57 = vmul.f32 %v4313_v42, %v1976_v20 }
 0x448   :  { %v4317_v43 = vpop.eup %4316  ;;  %v1992_v14 = vmul.f32 %v4315_v36, %v1991_v4 }
 0x449   :  { %v1960_v34 = vmul.f32 %v4317_v43, %v1956_v37  ;;  %v1978_v6 = vadd.f32 %v4313_v42, %v1977_v57  ;;  %vm1965_vm9 = vweird.f32 %v4317_v43  ;;  %v4319_v40 = vpop.eup %4318  ;;  %v1998_v37 = vand.u32 2147483647, %v1958_v30  ;;  %v6722_v30 = vld [vmem:[#allocation27_spill] sm:$0xff] }
 0x44a   :  { %vm1966_vm12 = vmor %vm1964_vm10, %vm1965_vm9 }
 0x44b   :  { %v1961_v39 = vsub.f32 1.0, %v1960_v34  ;;  %v1982_v62 = vsel %vm1981_vm8, %v4313_v42, %v1978_v6  ;;  %v1993_v42 = vadd.f32 %v4315_v36, %v1992_v14  ;;  %vm1999_vm1 = vcmp.eq.f32.partialorder %v1998_v37, 8.507059e+37 }
 0x44c   :  { %v1987_v25 = vsel %vm1984_vm11, %v1986_v5, %v1982_v62  ;;  %v6724_v62 = vld [vmem:[#allocation8_spill] sm:$0xff] }
 0x44d   :  { %v1962_v51 = vmul.f32 %v4317_v43, %v1961_v39  ;;  %v2005_v54 = vmul.f32 %v1987_v25, %v6114_v2  ;;  %v1997_v57 = vsel %vm1996_vm0, %v4315_v36, %v1993_v42  ;;  %v6723_v39 = vld [vmem:[#allocation53_spill] sm:$0xff] }
 0x44e   :  { %v2002_v34 = vsel %vm1999_vm1, %v2001_v10, %v1997_v57 }
 0x44f   :  { %v1963_v3 = vadd.f32 %v4317_v43, %v1962_v51 }
 0x451   :  { %v1967_v0 = vsel %vm1966_vm12, %v4317_v43, %v1963_v3 }
 0x452   :  { %v1972_v45 = vsel %vm1969_vm13, %v1971_v19, %v1967_v0 }
 0x453   :  { %v2006_v20 = vmul.f32 %v4319_v40, %v1972_v45 }
 0x455   :  { %v6158_v24 = vadd.f32 %v2006_v20, %v2005_v54 }
 0x457   :  { %4320 = vtanh.f32 %v6158_v24 }
 0x45d   :  { %v4321_v43 = vpop.eup %4320 }
 0x45e   :  { %v2009_v6 = vmul.f32 %v4321_v43, %v2002_v34 }
 0x460   :  { %v2014_v49 = vpack.c.bf16 %v2009_v6, %v2009_v6 }
 0x462   :  { %2023 = vmatmul.bf16.vlgmr.msrb.gmra.mxu2 %v2014_v49  ;;  %2036 = vmatmul.bf16.vlgmr.msrb.gmra.mxu0 %v2014_v49 }
 0x463   :  { %2049 = vmatmul.bf16.vlgmr.msrb.gmra.mxu1 %v2014_v49  ;;  %2062 = vmatmul.bf16.vlgmr.msrb.gmra.mxu3 %v2014_v49  ;;  %v6725_v49 = vld [vmem:[#allocation60_spill] sm:$0xff] }
 0x464   :  { %2263 = vmatpush.bf16.msrb.mxu2 %v5359_v32  ;;  %2276 = vmatpush.bf16.msrb.mxu0 %v5384_v33 }
 0x465   :  { %2289 = vmatpush.bf16.msrb.mxu1 %v5411_v60  ;;  %2302 = vmatpush.bf16.msrb.mxu3 %v5424_v31 }
 0x468   :  { %2264 = vmatpush.bf16.msrb.mxu2 %v5398_v23  ;;  %2277 = vmatpush.bf16.msrb.mxu0 %v5441_v50 }
 0x469   :  { %2290 = vmatpush.bf16.msrb.mxu1 %v5471_v21  ;;  %2303 = vmatpush.bf16.msrb.mxu3 %v5483_v56 }
 0x46c   :  { %2265 = vmatpush.bf16.msrb.mxu2 %v5457_v12  ;;  %2278 = vmatpush.bf16.msrb.mxu0 %v5498_v22 }
 0x46d   :  { %2291 = vmatpush.bf16.msrb.mxu1 %v5527_v16  ;;  %2304 = vmatpush.bf16.msrb.mxu3 %v5539_v63 }
 0x470   :  { %2266 = vmatpush.bf16.msrb.mxu2 %v5514_v59  ;;  %2279 = vmatpush.bf16.msrb.mxu0 %v5554_v11 }
 0x471   :  { %2292 = vmatpush.bf16.msrb.mxu1 %v5583_v44  ;;  %2305 = vmatpush.bf16.msrb.mxu3 %v5595_v38 }
 0x474   :  { %2267 = vmatpush.bf16.msrb.mxu2 %v5570_v52  ;;  %2280 = vmatpush.bf16.msrb.mxu0 %v5610_v47 }
 0x475   :  { %2293 = vmatpush.bf16.msrb.mxu1 %v5639_v8  ;;  %2306 = vmatpush.bf16.msrb.mxu3 %v5651_v17 }
 0x478   :  { %2268 = vmatpush.bf16.msrb.mxu2 %v5626_v61  ;;  %2281 = vmatpush.bf16.msrb.mxu0 %v5666_v9 }
 0x479   :  { %2294 = vmatpush.bf16.msrb.mxu1 %v5695_v26  ;;  %2307 = vmatpush.bf16.msrb.mxu3 %v5707_v58 }
 0x47c   :  { %2269 = vmatpush.bf16.msrb.mxu2 %v5682_v41  ;;  %2282 = vmatpush.bf16.msrb.mxu0 %v5722_v27 }
 0x47d   :  { %2295 = vmatpush.bf16.msrb.mxu1 %v5752_v48  ;;  %2308 = vmatpush.bf16.msrb.mxu3 %v5764_v13 }
 0x480   :  { %2270 = vmatpush.bf16.msrb.mxu2 %v5738_v1  ;;  %2283 = vmatpush.bf16.msrb.mxu0 %v5780_v7 }
 0x481   :  { %2296 = vmatpush.bf16.msrb.mxu1 %v5806_v55  ;;  %2309 = vmatpush.bf16.msrb.mxu3 %v5813_v46 }
 0x4df   :  { %v2037_v2 = vpop.f32.mrf.mxu0 }
 0x4e0   :  { %v2068_v36 = vadd.f32 %v2037_v2, %v6722_v30  ;;  %v2050_v35 = vpop.f32.mrf.mxu1 }
 0x4e1   :  { %v2069_v28 = vadd.f32 %v2050_v35, %v6723_v39 }
 0x4e2   :  { %v4089_v18 = vmul.f32 -1.442695, %v2068_v36 }
 0x4e3   :  { %v4090_v51 = vmul.f32 -1.442695, %v2069_v28 }
 0x4e4   :  { %4322 = vpow2.f32 %v4089_v18 }
 0x4e5   :  { %4324 = vpow2.f32 %v4090_v51  ;;  %v2024_v15 = vpop.f32.mrf.mxu2 }
 0x4e6   :  { %v2067_v5 = vadd.f32 %v2024_v15, %v6724_v62  ;;  %v2063_v4 = vpop.f32.mrf.mxu3 }
 0x4e7   :  { %v2039_v3 = vpop.f32.mrf.mxu0  ;;  %v2070_v2 = vadd.f32 %v2063_v4, %v6725_v49 }
 0x4e8   :  { %v4088_v19 = vmul.f32 -1.442695, %v2067_v5  ;;  %v2052_v25 = vpop.f32.mrf.mxu1 }
 0x4ea   :  { %v4323_v0 = vpop.eup %4322  ;;  %4326 = vpow2.f32 %v4088_v19 }
 0x4eb   :  { %v4325_v40 = vpop.eup %4324  ;;  %v2081_v14 = vadd.f32 1.0, %v4323_v0 }
 0x4ec   :  { %v2082_v54 = vadd.f32 1.0, %v4325_v40 }
 0x4ed   :  { %4328 = vrcp.f32 %v2081_v14  ;;  %v2026_v45 = vpop.f32.mrf.mxu2  ;;  %v2109_v35 = vand.u32 2147483648, %v2081_v14  ;;  %vm2103_vm3 = vweird.f32 %v2081_v14  ;;  %v2107_v18 = vand.u32 2147483647, %v2081_v14 }
 0x4ee   :  { %v2065_v20 = vpop.f32.mrf.mxu3  ;;  %4330 = vrcp.f32 %v2082_v54  ;;  %vm2118_vm11 = vweird.f32 %v2082_v54 }
 0x4ef   :  { %v2110_v3 = vor.u32 1.1754944e-38, %v2109_v35  ;;  %vm2108_vm7 = vcmp.eq.f32.partialorder %v2107_v18, 8.507059e+37 }
 0x4f0   :  { %v4327_v42 = vpop.eup %4326 }
 0x4f1   :  { %v2080_v29 = vadd.f32 1.0, %v4327_v42 }
 0x4f3   :  { %v4329_v37 = vpop.eup %4328  ;;  %4332 = vrcp.f32 %v2080_v29  ;;  %v2094_v51 = vand.u32 2147483648, %v2080_v29  ;;  %v2092_v62 = vand.u32 2147483647, %v2080_v29  ;;  %vm2088_vm6 = vweird.f32 %v2080_v29 }
 0x4f4   :  { %v2099_v57 = vmul.f32 %v4329_v37, %v2081_v14  ;;  %v4331_v43 = vpop.eup %4330  ;;  %vm2104_vm2 = vweird.f32 %v4329_v37  ;;  %4334 = vtanh.f32 %v2070_v2 }
 0x4f5   :  { %v2114_v39 = vmul.f32 %v4331_v43, %v2082_v54  ;;  %vm2105_vm4 = vmor %vm2103_vm3, %vm2104_vm2  ;;  %v2095_v4 = vor.u32 1.1754944e-38, %v2094_v51  ;;  %vm2093_vm9 = vcmp.eq.f32.partialorder %v2092_v62, 8.507059e+37  ;;  %vm2119_vm10 = vweird.f32 %v4331_v43 }
 0x4f6   :  { %v2100_v10 = vsub.f32 1.0, %v2099_v57  ;;  %vm2120_vm12 = vmor %vm2118_vm11, %vm2119_vm10 }
 0x4f7   :  { %v2115_v19 = vsub.f32 1.0, %v2114_v39 }
 0x4f8   :  { %v2101_v34 = vmul.f32 %v4329_v37, %v2100_v10 }
 0x4f9   :  { %v4333_v6 = vpop.eup %4332  ;;  %v2116_v20 = vmul.f32 %v4331_v43, %v2115_v19  ;;  %v6729_v19 = vld [vmem:[#allocation9_spill] sm:$0xff] }
 0x4fa   :  { %v2084_v30 = vmul.f32 %v4333_v6, %v2080_v29  ;;  %v2102_v36 = vadd.f32 %v4329_v37, %v2101_v34  ;;  %vm2089_vm5 = vweird.f32 %v4333_v6  ;;  %v4335_v45 = vpop.eup %4334  ;;  %v2124_v34 = vand.u32 2147483648, %v2082_v54 }
 0x4fb   :  { %vm2090_vm8 = vmor %vm2088_vm6, %vm2089_vm5  ;;  %v2122_v29 = vand.u32 2147483647, %v2082_v54  ;;  %v6727_v54 = vld [vmem:[#allocation57_spill] sm:$0xff] }
 0x4fc   :  { %v2085_v28 = vsub.f32 1.0, %v2084_v30  ;;  %v2106_v5 = vsel %vm2105_vm4, %v4329_v37, %v2102_v36  ;;  %v2117_v37 = vadd.f32 %v4331_v43, %v2116_v20  ;;  %v2125_v2 = vor.u32 1.1754944e-38, %v2124_v34 }
 0x4fd   :  { %v2111_v0 = vsel %vm2108_vm7, %v2110_v3, %v2106_v5  ;;  %vm2123_vm13 = vcmp.eq.f32.partialorder %v2122_v29, 8.507059e+37 }
 0x4fe   :  { %v2086_v15 = vmul.f32 %v4333_v6, %v2085_v28  ;;  %v2129_v42 = vmul.f32 %v2111_v0, %v6158_v24  ;;  %v2121_v49 = vsel %vm2120_vm12, %v4331_v43, %v2117_v37  ;;  %v6726_v24 = vld [vmem:[#allocation29_spill] sm:$0xff]  ;;  %v6728_v28 = vld [vmem:[#allocation28_spill] sm:$0xff] }
 0x4ff   :  { %v2126_v30 = vsel %vm2123_vm13, %v2125_v2, %v2121_v49  ;;  %v1085_v43 = vadd.f32 %v6727_v54, %v6726_v24  ;;  %v6730_v49 = vld [vmem:[#allocation61_spill] sm:$0xff] }
 0x500   :  { %v2087_v25 = vadd.f32 %v4333_v6, %v2086_v15  ;;  %v1134_v2 = vadd.f32 %v6730_v49, %v5882_v53 }
 0x502   :  { %v2091_v40 = vsel %vm2090_vm8, %v4333_v6, %v2087_v25 }
 0x503   :  { %v2096_v14 = vsel %vm2093_vm9, %v2095_v4, %v2091_v40 }
 0x504   :  { %v2130_v57 = vmul.f32 %v4335_v45, %v2096_v14 }
 0x506   :  { %v6198_v10 = vadd.f32 %v2130_v57, %v2129_v42 }
 0x508   :  { %4336 = vtanh.f32 %v6198_v10 }
 0x50e   :  { %v4337_v6 = vpop.eup %4336 }
 0x50f   :  { %v2133_v36 = vmul.f32 %v4337_v6, %v2126_v30 }
 0x511   :  { %v2138_v35 = vpack.c.bf16 %v2133_v36, %v2133_v36 }
 0x513   :  { %2147 = vmatmul.bf16.vlgmr.msra.gmra.mxu2 %v2138_v35  ;;  %2160 = vmatmul.bf16.vlgmr.msra.gmra.mxu0 %v2138_v35 }
 0x514   :  { %2173 = vmatmul.bf16.vlgmr.msra.gmra.mxu1 %v2138_v35  ;;  %2186 = vmatmul.bf16.vlgmr.msra.gmra.mxu3 %v2138_v35  ;;  %v6731_v35 = vld [vmem:[#allocation62_spill] sm:$0xff] }
 0x515   :  { %2387 = vmatpush.bf16.msra.mxu2 %v5359_v32  ;;  %2400 = vmatpush.bf16.msra.mxu0 %v5384_v33  ;;  %v1183_v24 = vadd.f32 %v6731_v35, %v1134_v2 }
 0x516   :  { %2413 = vmatpush.bf16.msra.mxu1 %v5411_v60  ;;  %2426 = vmatpush.bf16.msra.mxu3 %v5424_v31 }
 0x519   :  { %2388 = vmatpush.bf16.msra.mxu2 %v5398_v23  ;;  %2401 = vmatpush.bf16.msra.mxu0 %v5441_v50 }
 0x51a   :  { %2414 = vmatpush.bf16.msra.mxu1 %v5471_v21  ;;  %2427 = vmatpush.bf16.msra.mxu3 %v5483_v56 }
 0x51d   :  { %2389 = vmatpush.bf16.msra.mxu2 %v5457_v12  ;;  %2402 = vmatpush.bf16.msra.mxu0 %v5498_v22 }
 0x51e   :  { %2415 = vmatpush.bf16.msra.mxu1 %v5527_v16  ;;  %2428 = vmatpush.bf16.msra.mxu3 %v5539_v63 }
 0x521   :  { %2390 = vmatpush.bf16.msra.mxu2 %v5514_v59  ;;  %2403 = vmatpush.bf16.msra.mxu0 %v5554_v11 }
 0x522   :  { %2416 = vmatpush.bf16.msra.mxu1 %v5583_v44  ;;  %2429 = vmatpush.bf16.msra.mxu3 %v5595_v38 }
 0x525   :  { %2391 = vmatpush.bf16.msra.mxu2 %v5570_v52  ;;  %2404 = vmatpush.bf16.msra.mxu0 %v5610_v47 }
 0x526   :  { %2417 = vmatpush.bf16.msra.mxu1 %v5639_v8  ;;  %2430 = vmatpush.bf16.msra.mxu3 %v5651_v17 }
 0x529   :  { %2392 = vmatpush.bf16.msra.mxu2 %v5626_v61  ;;  %2405 = vmatpush.bf16.msra.mxu0 %v5666_v9 }
 0x52a   :  { %2418 = vmatpush.bf16.msra.mxu1 %v5695_v26  ;;  %2431 = vmatpush.bf16.msra.mxu3 %v5707_v58 }
 0x52d   :  { %2393 = vmatpush.bf16.msra.mxu2 %v5682_v41  ;;  %2406 = vmatpush.bf16.msra.mxu0 %v5722_v27 }
 0x52e   :  { %2419 = vmatpush.bf16.msra.mxu1 %v5752_v48  ;;  %2432 = vmatpush.bf16.msra.mxu3 %v5764_v13 }
 0x531   :  { %2394 = vmatpush.bf16.msra.mxu2 %v5738_v1  ;;  %2407 = vmatpush.bf16.msra.mxu0 %v5780_v7 }
 0x532   :  { %2420 = vmatpush.bf16.msra.mxu1 %v5806_v55  ;;  %2433 = vmatpush.bf16.msra.mxu3 %v5813_v46 }
 0x590   :  { %v2161_v39 = vpop.f32.mrf.mxu0 }
 0x591   :  { %v2192_v18 = vadd.f32 %v2161_v39, %v6728_v28  ;;  %v2174_v51 = vpop.f32.mrf.mxu1 }
 0x592   :  { %v2193_v15 = vadd.f32 %v2174_v51, %v1085_v43  ;;  %v6732_v43 = vld [vmem:[#allocation64_spill] sm:$0xff] }
 0x593   :  { %v4092_v62 = vmul.f32 -1.442695, %v2192_v18  ;;  %v1232_v39 = vadd.f32 %v6732_v43, %v1183_v24 }
 0x594   :  { %v4093_v5 = vmul.f32 -1.442695, %v2193_v15 }
 0x595   :  { %4338 = vpow2.f32 %v4092_v62 }
 0x596   :  { %4340 = vpow2.f32 %v4093_v5  ;;  %v2148_v3 = vpop.f32.mrf.mxu2 }
 0x597   :  { %v2191_v25 = vadd.f32 %v2148_v3, %v6729_v19  ;;  %v2187_v4 = vpop.f32.mrf.mxu3 }
 0x598   :  { %v2163_v0 = vpop.f32.mrf.mxu0  ;;  %v2194_v15 = vadd.f32 %v2187_v4, %v1232_v39 }
 0x599   :  { %v4091_v40 = vmul.f32 -1.442695, %v2191_v25  ;;  %v2176_v45 = vpop.f32.mrf.mxu1 }
 0x59b   :  { %v4339_v20 = vpop.eup %4338  ;;  %4342 = vpow2.f32 %v4091_v40 }
 0x59c   :  { %v4341_v14 = vpop.eup %4340  ;;  %v2205_v42 = vadd.f32 1.0, %v4339_v20 }
 0x59d   :  { %v2206_v37 = vadd.f32 1.0, %v4341_v14 }
 0x59e   :  { %4344 = vrcp.f32 %v2205_v42  ;;  %v2150_v57 = vpop.f32.mrf.mxu2  ;;  %v2233_v3 = vand.u32 2147483648, %v2205_v42  ;;  %vm2227_vm15 = vweird.f32 %v2205_v42  ;;  %v2231_v0 = vand.u32 2147483647, %v2205_v42 }
 0x59f   :  { %v2189_v34 = vpop.f32.mrf.mxu3  ;;  %4346 = vrcp.f32 %v2206_v37  ;;  %v2248_v39 = vand.u32 2147483648, %v2206_v37  ;;  %vm2242_vm7 = vweird.f32 %v2206_v37 }
 0x5a0   :  { %v2234_v57 = vor.u32 1.1754944e-38, %v2233_v3  ;;  %vm2232_vm3 = vcmp.eq.f32.partialorder %v2231_v0, 8.507059e+37 }
 0x5a1   :  { %v4343_v29 = vpop.eup %4342 }
 0x5a2   :  { %v2204_v6 = vadd.f32 1.0, %v4343_v29 }
 0x5a4   :  { %v4345_v30 = vpop.eup %4344  ;;  %4348 = vrcp.f32 %v2204_v6  ;;  %v2218_v40 = vand.u32 2147483648, %v2204_v6  ;;  %v2216_v20 = vand.u32 2147483647, %v2204_v6  ;;  %vm2212_vm2 = vweird.f32 %v2204_v6 }
 0x5a5   :  { %v2223_v36 = vmul.f32 %v4345_v30, %v2205_v42  ;;  %v4347_v28 = vpop.eup %4346  ;;  %vm2228_vm14 = vweird.f32 %v4345_v30  ;;  %4350 = vtanh.f32 %v2194_v15  ;;  %v2249_v15 = vor.u32 1.1754944e-38, %v2248_v39 }
 0x5a6   :  { %v2238_v19 = vmul.f32 %v4347_v28, %v2206_v37  ;;  %vm2229_vm0 = vmor %vm2227_vm15, %vm2228_vm14  ;;  %v2219_v4 = vor.u32 1.1754944e-38, %v2218_v40  ;;  %vm2217_vm5 = vcmp.eq.f32.partialorder %v2216_v20, 8.507059e+37  ;;  %vm2243_vm6 = vweird.f32 %v4347_v28 }
 0x5a7   :  { %v2224_v54 = vsub.f32 1.0, %v2223_v36  ;;  %vm2244_vm8 = vmor %vm2242_vm7, %vm2243_vm6 }
 0x5a8   :  { %v2239_v34 = vsub.f32 1.0, %v2238_v19 }
 0x5a9   :  { %v2225_v18 = vmul.f32 %v4345_v30, %v2224_v54 }
 0x5aa   :  { %v4349_v51 = vpop.eup %4348  ;;  %v2240_v35 = vmul.f32 %v4347_v28, %v2239_v34 }
 0x5ab   :  { %v2208_v62 = vmul.f32 %v4349_v51, %v2204_v6  ;;  %v2226_v5 = vadd.f32 %v4345_v30, %v2225_v18  ;;  %vm2213_vm1 = vweird.f32 %v4349_v51  ;;  %v4351_v36 = vpop.eup %4350  ;;  %v2246_v6 = vand.u32 2147483647, %v2206_v37  ;;  %v6733_v37 = vld [vmem:[#allocation30_spill] sm:$0xff] }
 0x5ac   :  { %vm2214_vm4 = vmor %vm2212_vm2, %vm2213_vm1 }
 0x5ad   :  { %v2209_v25 = vsub.f32 1.0, %v2208_v62  ;;  %v2230_v14 = vsel %vm2229_vm0, %v4345_v30, %v2226_v5  ;;  %v2241_v30 = vadd.f32 %v4347_v28, %v2240_v35  ;;  %vm2247_vm9 = vcmp.eq.f32.partialorder %v2246_v6, 8.507059e+37 }
 0x5ae   :  { %v2235_v49 = vsel %vm2232_vm3, %v2234_v57, %v2230_v14  ;;  %v6735_v14 = vld [vmem:[#allocation10_spill] sm:$0xff] }
 0x5af   :  { %v2210_v45 = vmul.f32 %v4349_v51, %v2209_v25  ;;  %v2253_v24 = vmul.f32 %v2235_v49, %v6198_v10  ;;  %v2245_v18 = vsel %vm2244_vm8, %v4347_v28, %v2241_v30  ;;  %v6734_v25 = vld [vmem:[#allocation59_spill] sm:$0xff] }
 0x5b0   :  { %v2250_v62 = vsel %vm2247_vm9, %v2249_v15, %v2245_v18 }
 0x5b1   :  { %v2211_v29 = vadd.f32 %v4349_v51, %v2210_v45 }
 0x5b3   :  { %v2215_v2 = vsel %vm2214_vm4, %v4349_v51, %v2211_v29 }
 0x5b4   :  { %v2220_v42 = vsel %vm2217_vm5, %v2219_v4, %v2215_v2 }
 0x5b5   :  { %v2254_v54 = vmul.f32 %v4351_v36, %v2220_v42 }
 0x5b7   :  { %v6242_v43 = vadd.f32 %v2254_v54, %v2253_v24 }
 0x5b9   :  { %4352 = vtanh.f32 %v6242_v43 }
 0x5bf   :  { %v4353_v51 = vpop.eup %4352 }
 0x5c0   :  { %v2257_v5 = vmul.f32 %v4353_v51, %v2250_v62 }
 0x5c2   :  { %v2262_v3 = vpack.c.bf16 %v2257_v5, %v2257_v5 }
 0x5c4   :  { %2271 = vmatmul.bf16.vlgmr.msrb.gmra.mxu2 %v2262_v3  ;;  %2284 = vmatmul.bf16.vlgmr.msrb.gmra.mxu0 %v2262_v3 }
 0x5c5   :  { %2297 = vmatmul.bf16.vlgmr.msrb.gmra.mxu1 %v2262_v3  ;;  %2310 = vmatmul.bf16.vlgmr.msrb.gmra.mxu3 %v2262_v3  ;;  %v6736_v3 = vld [vmem:[#allocation66_spill] sm:$0xff] }
 0x5c6   :  { %2511 = vmatpush.bf16.msrb.mxu2 %v5359_v32  ;;  %2524 = vmatpush.bf16.msrb.mxu0 %v5384_v33 }
 0x5c7   :  { %2537 = vmatpush.bf16.msrb.mxu1 %v5411_v60  ;;  %2550 = vmatpush.bf16.msrb.mxu3 %v5424_v31 }
 0x5ca   :  { %2512 = vmatpush.bf16.msrb.mxu2 %v5398_v23  ;;  %2525 = vmatpush.bf16.msrb.mxu0 %v5441_v50 }
 0x5cb   :  { %2538 = vmatpush.bf16.msrb.mxu1 %v5471_v21  ;;  %2551 = vmatpush.bf16.msrb.mxu3 %v5483_v56 }
 0x5ce   :  { %2513 = vmatpush.bf16.msrb.mxu2 %v5457_v12  ;;  %2526 = vmatpush.bf16.msrb.mxu0 %v5498_v22 }
 0x5cf   :  { %2539 = vmatpush.bf16.msrb.mxu1 %v5527_v16  ;;  %2552 = vmatpush.bf16.msrb.mxu3 %v5539_v63 }
 0x5d2   :  { %2514 = vmatpush.bf16.msrb.mxu2 %v5514_v59  ;;  %2527 = vmatpush.bf16.msrb.mxu0 %v5554_v11 }
 0x5d3   :  { %2540 = vmatpush.bf16.msrb.mxu1 %v5583_v44  ;;  %2553 = vmatpush.bf16.msrb.mxu3 %v5595_v38 }
 0x5d6   :  { %2515 = vmatpush.bf16.msrb.mxu2 %v5570_v52  ;;  %2528 = vmatpush.bf16.msrb.mxu0 %v5610_v47 }
 0x5d7   :  { %2541 = vmatpush.bf16.msrb.mxu1 %v5639_v8  ;;  %2554 = vmatpush.bf16.msrb.mxu3 %v5651_v17 }
 0x5da   :  { %2516 = vmatpush.bf16.msrb.mxu2 %v5626_v61  ;;  %2529 = vmatpush.bf16.msrb.mxu0 %v5666_v9 }
 0x5db   :  { %2542 = vmatpush.bf16.msrb.mxu1 %v5695_v26  ;;  %2555 = vmatpush.bf16.msrb.mxu3 %v5707_v58 }
 0x5de   :  { %2517 = vmatpush.bf16.msrb.mxu2 %v5682_v41  ;;  %2530 = vmatpush.bf16.msrb.mxu0 %v5722_v27 }
 0x5df   :  { %2543 = vmatpush.bf16.msrb.mxu1 %v5752_v48  ;;  %2556 = vmatpush.bf16.msrb.mxu3 %v5764_v13 }
 0x5e2   :  { %2518 = vmatpush.bf16.msrb.mxu2 %v5738_v1  ;;  %2531 = vmatpush.bf16.msrb.mxu0 %v5780_v7 }
 0x5e3   :  { %2544 = vmatpush.bf16.msrb.mxu1 %v5806_v55  ;;  %2557 = vmatpush.bf16.msrb.mxu3 %v5813_v46 }
 0x641   :  { %v2285_v10 = vpop.f32.mrf.mxu0 }
 0x642   :  { %v2316_v28 = vadd.f32 %v2285_v10, %v6733_v37  ;;  %v2298_v19 = vpop.f32.mrf.mxu1 }
 0x643   :  { %v2317_v0 = vadd.f32 %v2298_v19, %v6734_v25 }
 0x644   :  { %v4095_v40 = vmul.f32 -1.442695, %v2316_v28 }
 0x645   :  { %v4096_v45 = vmul.f32 -1.442695, %v2317_v0 }
 0x646   :  { %4354 = vpow2.f32 %v4095_v40 }
 0x647   :  { %4356 = vpow2.f32 %v4096_v45  ;;  %v2272_v20 = vpop.f32.mrf.mxu2 }
 0x648   :  { %v2315_v57 = vadd.f32 %v2272_v20, %v6735_v14  ;;  %v2311_v34 = vpop.f32.mrf.mxu3 }
 0x649   :  { %v2287_v29 = vpop.f32.mrf.mxu0  ;;  %v2318_v10 = vadd.f32 %v2311_v34, %v6736_v3 }
 0x64a   :  { %v4094_v4 = vmul.f32 -1.442695, %v2315_v57  ;;  %v2300_v49 = vpop.f32.mrf.mxu1 }
 0x64c   :  { %v4355_v2 = vpop.eup %4354  ;;  %4358 = vpow2.f32 %v4094_v4 }
 0x64d   :  { %v4357_v36 = vpop.eup %4356  ;;  %v2329_v35 = vadd.f32 1.0, %v4355_v2 }
 0x64e   :  { %v2330_v24 = vadd.f32 1.0, %v4357_v36 }
 0x64f   :  { %4360 = vrcp.f32 %v2329_v35  ;;  %v2274_v42 = vpop.f32.mrf.mxu2  ;;  %v2357_v19 = vand.u32 2147483648, %v2329_v35  ;;  %vm2351_vm11 = vweird.f32 %v2329_v35  ;;  %v2355_v40 = vand.u32 2147483647, %v2329_v35 }
 0x650   :  { %v2313_v54 = vpop.f32.mrf.mxu3  ;;  %4362 = vrcp.f32 %v2330_v24  ;;  %vm2366_vm3 = vweird.f32 %v2330_v24 }
 0x651   :  { %v2358_v29 = vor.u32 1.1754944e-38, %v2357_v19  ;;  %vm2356_vm15 = vcmp.eq.f32.partialorder %v2355_v40, 8.507059e+37 }
 0x652   :  { %v4359_v30 = vpop.eup %4358 }
 0x653   :  { %v2328_v39 = vadd.f32 1.0, %v4359_v30 }
 0x655   :  { %v4361_v6 = vpop.eup %4360  ;;  %4364 = vrcp.f32 %v2328_v39  ;;  %v2342_v45 = vand.u32 2147483648, %v2328_v39  ;;  %v2340_v14 = vand.u32 2147483647, %v2328_v39  ;;  %vm2336_vm14 = vweird.f32 %v2328_v39 }
 0x656   :  { %v2347_v18 = vmul.f32 %v4361_v6, %v2329_v35  ;;  %v4363_v51 = vpop.eup %4362  ;;  %vm2352_vm10 = vweird.f32 %v4361_v6  ;;  %4366 = vtanh.f32 %v2318_v10 }
 0x657   :  { %v2362_v25 = vmul.f32 %v4363_v51, %v2330_v24  ;;  %vm2353_vm12 = vmor %vm2351_vm11, %vm2352_vm10  ;;  %v2343_v34 = vor.u32 1.1754944e-38, %v2342_v45  ;;  %vm2341_vm1 = vcmp.eq.f32.partialorder %v2340_v14, 8.507059e+37  ;;  %vm2367_vm2 = vweird.f32 %v4363_v51 }
 0x658   :  { %v2348_v15 = vsub.f32 1.0, %v2347_v18  ;;  %vm2368_vm4 = vmor %vm2366_vm3, %vm2367_vm2 }
 0x659   :  { %v2363_v4 = vsub.f32 1.0, %v2362_v25 }
 0x65a   :  { %v2349_v62 = vmul.f32 %v4361_v6, %v2348_v15 }
 0x65b   :  { %v4365_v5 = vpop.eup %4364  ;;  %v2364_v54 = vmul.f32 %v4363_v51, %v2363_v4  ;;  %v6740_v4 = vld [vmem:[#allocation11_spill] sm:$0xff] }
 0x65c   :  { %v2332_v37 = vmul.f32 %v4365_v5, %v2328_v39  ;;  %v2350_v28 = vadd.f32 %v4361_v6, %v2349_v62  ;;  %vm2337_vm13 = vweird.f32 %v4365_v5  ;;  %v4367_v42 = vpop.eup %4366  ;;  %v2372_v62 = vand.u32 2147483648, %v2330_v24 }
 0x65d   :  { %vm2338_vm0 = vmor %vm2336_vm14, %vm2337_vm13  ;;  %v2370_v39 = vand.u32 2147483647, %v2330_v24  ;;  %v6738_v24 = vld [vmem:[#allocation63_spill] sm:$0xff] }
 0x65e   :  { %v2333_v0 = vsub.f32 1.0, %v2332_v37  ;;  %v2354_v57 = vsel %vm2353_vm12, %v4361_v6, %v2350_v28  ;;  %v2365_v6 = vadd.f32 %v4363_v51, %v2364_v54  ;;  %v2373_v10 = vor.u32 1.1754944e-38, %v2372_v62 }
 0x65f   :  { %v2359_v2 = vsel %vm2356_vm15, %v2358_v29, %v2354_v57  ;;  %vm2371_vm5 = vcmp.eq.f32.partialorder %v2370_v39, 8.507059e+37 }
 0x660   :  { %v2334_v20 = vmul.f32 %v4365_v5, %v2333_v0  ;;  %v2377_v30 = vmul.f32 %v2359_v2, %v6242_v43  ;;  %v2369_v3 = vsel %vm2368_vm4, %v4363_v51, %v2365_v6  ;;  %v6737_v43 = vld [vmem:[#allocation32_spill] sm:$0xff]  ;;  %v6739_v0 = vld [vmem:[#allocation31_spill] sm:$0xff] }
 0x661   :  { %v2374_v37 = vsel %vm2371_vm5, %v2373_v10, %v2369_v3  ;;  %v1090_v51 = vadd.f32 %v6738_v24, %v6737_v43  ;;  %v6741_v3 = vld [vmem:[#allocation67_spill] sm:$0xff] }
 0x662   :  { %v2335_v49 = vadd.f32 %v4365_v5, %v2334_v20  ;;  %v1139_v10 = vadd.f32 %v6741_v3, %v5882_v53 }
 0x664   :  { %v2339_v36 = vsel %vm2338_vm0, %v4365_v5, %v2335_v49 }
 0x665   :  { %v2344_v35 = vsel %vm2341_vm1, %v2343_v34, %v2339_v36 }
 0x666   :  { %v2378_v18 = vmul.f32 %v4367_v42, %v2344_v35 }
 0x668   :  { %v6282_v15 = vadd.f32 %v2378_v18, %v2377_v30 }
 0x66a   :  { %4368 = vtanh.f32 %v6282_v15 }
 0x670   :  { %v4369_v5 = vpop.eup %4368 }
 0x671   :  { %v2381_v28 = vmul.f32 %v4369_v5, %v2374_v37 }
 0x673   :  { %v2386_v19 = vpack.c.bf16 %v2381_v28, %v2381_v28 }
 0x675   :  { %2395 = vmatmul.bf16.vlgmr.msra.gmra.mxu2 %v2386_v19  ;;  %2408 = vmatmul.bf16.vlgmr.msra.gmra.mxu0 %v2386_v19 }
 0x676   :  { %2421 = vmatmul.bf16.vlgmr.msra.gmra.mxu1 %v2386_v19  ;;  %2434 = vmatmul.bf16.vlgmr.msra.gmra.mxu3 %v2386_v19  ;;  %v6742_v19 = vld [vmem:[#allocation68_spill] sm:$0xff] }
 0x677   :  { %2635 = vmatpush.bf16.msra.mxu2 %v5359_v32  ;;  %2648 = vmatpush.bf16.msra.mxu0 %v5384_v33  ;;  %v1188_v43 = vadd.f32 %v6742_v19, %v1139_v10 }
 0x678   :  { %2661 = vmatpush.bf16.msra.mxu1 %v5411_v60  ;;  %2674 = vmatpush.bf16.msra.mxu3 %v5424_v31 }
 0x67b   :  { %2636 = vmatpush.bf16.msra.mxu2 %v5398_v23  ;;  %2649 = vmatpush.bf16.msra.mxu0 %v5441_v50 }
 0x67c   :  { %2662 = vmatpush.bf16.msra.mxu1 %v5471_v21  ;;  %2675 = vmatpush.bf16.msra.mxu3 %v5483_v56 }
 0x67f   :  { %2637 = vmatpush.bf16.msra.mxu2 %v5457_v12  ;;  %2650 = vmatpush.bf16.msra.mxu0 %v5498_v22 }
 0x680   :  { %2663 = vmatpush.bf16.msra.mxu1 %v5527_v16  ;;  %2676 = vmatpush.bf16.msra.mxu3 %v5539_v63 }
 0x683   :  { %2638 = vmatpush.bf16.msra.mxu2 %v5514_v59  ;;  %2651 = vmatpush.bf16.msra.mxu0 %v5554_v11 }
 0x684   :  { %2664 = vmatpush.bf16.msra.mxu1 %v5583_v44  ;;  %2677 = vmatpush.bf16.msra.mxu3 %v5595_v38 }
 0x687   :  { %2639 = vmatpush.bf16.msra.mxu2 %v5570_v52  ;;  %2652 = vmatpush.bf16.msra.mxu0 %v5610_v47 }
 0x688   :  { %2665 = vmatpush.bf16.msra.mxu1 %v5639_v8  ;;  %2678 = vmatpush.bf16.msra.mxu3 %v5651_v17 }
 0x68b   :  { %2640 = vmatpush.bf16.msra.mxu2 %v5626_v61  ;;  %2653 = vmatpush.bf16.msra.mxu0 %v5666_v9 }
 0x68c   :  { %2666 = vmatpush.bf16.msra.mxu1 %v5695_v26  ;;  %2679 = vmatpush.bf16.msra.mxu3 %v5707_v58 }
 0x68f   :  { %2641 = vmatpush.bf16.msra.mxu2 %v5682_v41  ;;  %2654 = vmatpush.bf16.msra.mxu0 %v5722_v27 }
 0x690   :  { %2667 = vmatpush.bf16.msra.mxu1 %v5752_v48  ;;  %2680 = vmatpush.bf16.msra.mxu3 %v5764_v13 }
 0x693   :  { %2642 = vmatpush.bf16.msra.mxu2 %v5738_v1  ;;  %2655 = vmatpush.bf16.msra.mxu0 %v5780_v7 }
 0x694   :  { %2668 = vmatpush.bf16.msra.mxu1 %v5806_v55  ;;  %2681 = vmatpush.bf16.msra.mxu3 %v5813_v46 }
 0x6f2   :  { %v2409_v25 = vpop.f32.mrf.mxu0 }
 0x6f3   :  { %v2440_v40 = vadd.f32 %v2409_v25, %v6739_v0  ;;  %v2422_v45 = vpop.f32.mrf.mxu1 }
 0x6f4   :  { %v2441_v20 = vadd.f32 %v2422_v45, %v1090_v51  ;;  %v6743_v51 = vld [vmem:[#allocation70_spill] sm:$0xff] }
 0x6f5   :  { %v4098_v14 = vmul.f32 -1.442695, %v2440_v40  ;;  %v1237_v25 = vadd.f32 %v6743_v51, %v1188_v43 }
 0x6f6   :  { %v4099_v57 = vmul.f32 -1.442695, %v2441_v20 }
 0x6f7   :  { %4370 = vpow2.f32 %v4098_v14 }
 0x6f8   :  { %4372 = vpow2.f32 %v4099_v57  ;;  %v2396_v29 = vpop.f32.mrf.mxu2 }
 0x6f9   :  { %v2439_v49 = vadd.f32 %v2396_v29, %v6740_v4  ;;  %v2435_v34 = vpop.f32.mrf.mxu3 }
 0x6fa   :  { %v2411_v2 = vpop.f32.mrf.mxu0  ;;  %v2442_v20 = vadd.f32 %v2435_v34, %v1237_v25 }
 0x6fb   :  { %v4097_v36 = vmul.f32 -1.442695, %v2439_v49  ;;  %v2424_v42 = vpop.f32.mrf.mxu1 }
 0x6fd   :  { %v4371_v54 = vpop.eup %4370  ;;  %4374 = vpow2.f32 %v4097_v36 }
 0x6fe   :  { %v4373_v35 = vpop.eup %4372  ;;  %v2453_v30 = vadd.f32 1.0, %v4371_v54 }
 0x6ff   :  { %v2454_v6 = vadd.f32 1.0, %v4373_v35 }
 0x700   :  { %4376 = vrcp.f32 %v2453_v30  ;;  %v2398_v18 = vpop.f32.mrf.mxu2  ;;  %v2481_v29 = vand.u32 2147483648, %v2453_v30  ;;  %vm2475_vm7 = vweird.f32 %v2453_v30  ;;  %v2479_v2 = vand.u32 2147483647, %v2453_v30 }
 0x701   :  { %v2437_v62 = vpop.f32.mrf.mxu3  ;;  %4378 = vrcp.f32 %v2454_v6  ;;  %v2496_v25 = vand.u32 2147483648, %v2454_v6  ;;  %vm2490_vm15 = vweird.f32 %v2454_v6 }
 0x702   :  { %v2482_v18 = vor.u32 1.1754944e-38, %v2481_v29  ;;  %vm2480_vm11 = vcmp.eq.f32.partialorder %v2479_v2, 8.507059e+37 }
 0x703   :  { %v4375_v39 = vpop.eup %4374 }
 0x704   :  { %v2452_v5 = vadd.f32 1.0, %v4375_v39 }
 0x706   :  { %v4377_v37 = vpop.eup %4376  ;;  %4380 = vrcp.f32 %v2452_v5  ;;  %v2466_v36 = vand.u32 2147483648, %v2452_v5  ;;  %v2464_v54 = vand.u32 2147483647, %v2452_v5  ;;  %vm2460_vm10 = vweird.f32 %v2452_v5 }
 0x707   :  { %v2471_v28 = vmul.f32 %v4377_v37, %v2453_v30  ;;  %v4379_v0 = vpop.eup %4378  ;;  %vm2476_vm6 = vweird.f32 %v4377_v37  ;;  %4382 = vtanh.f32 %v2442_v20  ;;  %v2497_v20 = vor.u32 1.1754944e-38, %v2496_v25 }
 0x708   :  { %v2486_v4 = vmul.f32 %v4379_v0, %v2454_v6  ;;  %vm2477_vm8 = vmor %vm2475_vm7, %vm2476_vm6  ;;  %v2467_v34 = vor.u32 1.1754944e-38, %v2466_v36  ;;  %vm2465_vm13 = vcmp.eq.f32.partialorder %v2464_v54, 8.507059e+37  ;;  %vm2491_vm14 = vweird.f32 %v4379_v0 }
 0x709   :  { %v2472_v24 = vsub.f32 1.0, %v2471_v28  ;;  %vm2492_vm0 = vmor %vm2490_vm15, %vm2491_vm14 }
 0x70a   :  { %v2487_v62 = vsub.f32 1.0, %v2486_v4 }
 0x70b   :  { %v2473_v40 = vmul.f32 %v4377_v37, %v2472_v24 }
 0x70c   :  { %v4381_v45 = vpop.eup %4380  ;;  %v2488_v19 = vmul.f32 %v4379_v0, %v2487_v62 }
 0x70d   :  { %v2456_v14 = vmul.f32 %v4381_v45, %v2452_v5  ;;  %v2474_v57 = vadd.f32 %v4377_v37, %v2473_v40  ;;  %vm2461_vm9 = vweird.f32 %v4381_v45  ;;  %v4383_v28 = vpop.eup %4382  ;;  %v2494_v5 = vand.u32 2147483647, %v2454_v6  ;;  %v6744_v6 = vld [vmem:[#allocation33_spill] sm:$0xff] }
 0x70e   :  { %vm2462_vm12 = vmor %vm2460_vm10, %vm2461_vm9 }
 0x70f   :  { %v2457_v49 = vsub.f32 1.0, %v2456_v14  ;;  %v2478_v35 = vsel %vm2477_vm8, %v4377_v37, %v2474_v57  ;;  %v2489_v37 = vadd.f32 %v4379_v0, %v2488_v19  ;;  %vm2495_vm1 = vcmp.eq.f32.partialorder %v2494_v5, 8.507059e+37 }
 0x710   :  { %v2483_v3 = vsel %vm2480_vm11, %v2482_v18, %v2478_v35  ;;  %v6746_v35 = vld [vmem:[#allocation12_spill] sm:$0xff] }
 0x711   :  { %v2458_v42 = vmul.f32 %v4381_v45, %v2457_v49  ;;  %v2501_v43 = vmul.f32 %v2483_v3, %v6282_v15  ;;  %v2493_v40 = vsel %vm2492_vm0, %v4379_v0, %v2489_v37  ;;  %v6745_v49 = vld [vmem:[#allocation65_spill] sm:$0xff] }
 0x712   :  { %v2498_v14 = vsel %vm2495_vm1, %v2497_v20, %v2493_v40 }
 0x713   :  { %v2459_v39 = vadd.f32 %v4381_v45, %v2458_v42 }
 0x715   :  { %v2463_v10 = vsel %vm2462_vm12, %v4381_v45, %v2459_v39 }
 0x716   :  { %v2468_v30 = vsel %vm2465_vm13, %v2467_v34, %v2463_v10 }
 0x717   :  { %v2502_v24 = vmul.f32 %v4383_v28, %v2468_v30 }
 0x719   :  { %v6326_v51 = vadd.f32 %v2502_v24, %v2501_v43 }
 0x71b   :  { %4384 = vtanh.f32 %v6326_v51 }
 0x721   :  { %v4385_v45 = vpop.eup %4384 }
 0x722   :  { %v2505_v57 = vmul.f32 %v4385_v45, %v2498_v14 }
 0x724   :  { %v2510_v29 = vpack.c.bf16 %v2505_v57, %v2505_v57 }
 0x726   :  { %2519 = vmatmul.bf16.vlgmr.msrb.gmra.mxu2 %v2510_v29  ;;  %2532 = vmatmul.bf16.vlgmr.msrb.gmra.mxu0 %v2510_v29 }
 0x727   :  { %2545 = vmatmul.bf16.vlgmr.msrb.gmra.mxu1 %v2510_v29  ;;  %2558 = vmatmul.bf16.vlgmr.msrb.gmra.mxu3 %v2510_v29  ;;  %v6747_v29 = vld [vmem:[#allocation72_spill] sm:$0xff] }
 0x728   :  { %2759 = vmatpush.bf16.msrb.mxu2 %v5359_v32  ;;  %2772 = vmatpush.bf16.msrb.mxu0 %v5384_v33 }
 0x729   :  { %2785 = vmatpush.bf16.msrb.mxu1 %v5411_v60  ;;  %2798 = vmatpush.bf16.msrb.mxu3 %v5424_v31 }
 0x72c   :  { %2760 = vmatpush.bf16.msrb.mxu2 %v5398_v23  ;;  %2773 = vmatpush.bf16.msrb.mxu0 %v5441_v50 }
 0x72d   :  { %2786 = vmatpush.bf16.msrb.mxu1 %v5471_v21  ;;  %2799 = vmatpush.bf16.msrb.mxu3 %v5483_v56 }
 0x730   :  { %2761 = vmatpush.bf16.msrb.mxu2 %v5457_v12  ;;  %2774 = vmatpush.bf16.msrb.mxu0 %v5498_v22 }
 0x731   :  { %2787 = vmatpush.bf16.msrb.mxu1 %v5527_v16  ;;  %2800 = vmatpush.bf16.msrb.mxu3 %v5539_v63 }
 0x734   :  { %2762 = vmatpush.bf16.msrb.mxu2 %v5514_v59  ;;  %2775 = vmatpush.bf16.msrb.mxu0 %v5554_v11 }
 0x735   :  { %2788 = vmatpush.bf16.msrb.mxu1 %v5583_v44  ;;  %2801 = vmatpush.bf16.msrb.mxu3 %v5595_v38 }
 0x738   :  { %2763 = vmatpush.bf16.msrb.mxu2 %v5570_v52  ;;  %2776 = vmatpush.bf16.msrb.mxu0 %v5610_v47 }
 0x739   :  { %2789 = vmatpush.bf16.msrb.mxu1 %v5639_v8  ;;  %2802 = vmatpush.bf16.msrb.mxu3 %v5651_v17 }
 0x73c   :  { %2764 = vmatpush.bf16.msrb.mxu2 %v5626_v61  ;;  %2777 = vmatpush.bf16.msrb.mxu0 %v5666_v9 }
 0x73d   :  { %2790 = vmatpush.bf16.msrb.mxu1 %v5695_v26  ;;  %2803 = vmatpush.bf16.msrb.mxu3 %v5707_v58 }
 0x740   :  { %2765 = vmatpush.bf16.msrb.mxu2 %v5682_v41  ;;  %2778 = vmatpush.bf16.msrb.mxu0 %v5722_v27 }
 0x741   :  { %2791 = vmatpush.bf16.msrb.mxu1 %v5752_v48  ;;  %2804 = vmatpush.bf16.msrb.mxu3 %v5764_v13 }
 0x744   :  { %2766 = vmatpush.bf16.msrb.mxu2 %v5738_v1  ;;  %2779 = vmatpush.bf16.msrb.mxu0 %v5780_v7 }
 0x745   :  { %2792 = vmatpush.bf16.msrb.mxu1 %v5806_v55  ;;  %2805 = vmatpush.bf16.msrb.mxu3 %v5813_v46 }
 0x7a3   :  { %v2533_v15 = vpop.f32.mrf.mxu0 }
 0x7a4   :  { %v2564_v0 = vadd.f32 %v2533_v15, %v6744_v6  ;;  %v2546_v4 = vpop.f32.mrf.mxu1 }
 0x7a5   :  { %v2565_v2 = vadd.f32 %v2546_v4, %v6745_v49 }
 0x7a6   :  { %v4101_v36 = vmul.f32 -1.442695, %v2564_v0 }
 0x7a7   :  { %v4102_v42 = vmul.f32 -1.442695, %v2565_v2 }
 0x7a8   :  { %4386 = vpow2.f32 %v4101_v36 }
 0x7a9   :  { %4388 = vpow2.f32 %v4102_v42  ;;  %v2520_v54 = vpop.f32.mrf.mxu2 }
 0x7aa   :  { %v2563_v18 = vadd.f32 %v2520_v54, %v6746_v35  ;;  %v2559_v62 = vpop.f32.mrf.mxu3 }
 0x7ab   :  { %v2535_v39 = vpop.f32.mrf.mxu0  ;;  %v2566_v15 = vadd.f32 %v2559_v62, %v6747_v29 }
 0x7ac   :  { %v4100_v34 = vmul.f32 -1.442695, %v2563_v18  ;;  %v2548_v3 = vpop.f32.mrf.mxu1 }
 0x7ae   :  { %v4387_v10 = vpop.eup %4386  ;;  %4390 = vpow2.f32 %v4100_v34 }
 0x7af   :  { %v4389_v28 = vpop.eup %4388  ;;  %v2577_v19 = vadd.f32 1.0, %v4387_v10 }
 0x7b0   :  { %v2578_v43 = vadd.f32 1.0, %v4389_v28 }
 0x7b1   :  { %4392 = vrcp.f32 %v2577_v19  ;;  %v2522_v30 = vpop.f32.mrf.mxu2  ;;  %v2605_v4 = vand.u32 2147483648, %v2577_v19  ;;  %vm2599_vm3 = vweird.f32 %v2577_v19  ;;  %v2603_v36 = vand.u32 2147483647, %v2577_v19 }
 0x7b2   :  { %v2561_v24 = vpop.f32.mrf.mxu3  ;;  %4394 = vrcp.f32 %v2578_v43  ;;  %vm2614_vm11 = vweird.f32 %v2578_v43 }
 0x7b3   :  { %v2606_v39 = vor.u32 1.1754944e-38, %v2605_v4  ;;  %vm2604_vm7 = vcmp.eq.f32.partialorder %v2603_v36, 8.507059e+37 }
 0x7b4   :  { %v4391_v37 = vpop.eup %4390 }
 0x7b5   :  { %v2576_v25 = vadd.f32 1.0, %v4391_v37 }
 0x7b7   :  { %v4393_v5 = vpop.eup %4392  ;;  %4396 = vrcp.f32 %v2576_v25  ;;  %v2590_v42 = vand.u32 2147483648, %v2576_v25  ;;  %v2588_v35 = vand.u32 2147483647, %v2576_v25  ;;  %vm2584_vm6 = vweird.f32 %v2576_v25 }
 0x7b8   :  { %v2595_v40 = vmul.f32 %v4393_v5, %v2577_v19  ;;  %v4395_v45 = vpop.eup %4394  ;;  %vm2600_vm2 = vweird.f32 %v4393_v5  ;;  %4398 = vtanh.f32 %v2566_v15 }
 0x7b9   :  { %v2610_v49 = vmul.f32 %v4395_v45, %v2578_v43  ;;  %vm2601_vm4 = vmor %vm2599_vm3, %vm2600_vm2  ;;  %v2591_v62 = vor.u32 1.1754944e-38, %v2590_v42  ;;  %vm2589_vm9 = vcmp.eq.f32.partialorder %v2588_v35, 8.507059e+37  ;;  %vm2615_vm10 = vweird.f32 %v4395_v45 }
 0x7ba   :  { %v2596_v20 = vsub.f32 1.0, %v2595_v40  ;;  %vm2616_vm12 = vmor %vm2614_vm11, %vm2615_vm10 }
 0x7bb   :  { %v2611_v34 = vsub.f32 1.0, %v2610_v49 }
 0x7bc   :  { %v2597_v14 = vmul.f32 %v4393_v5, %v2596_v20 }
 0x7bd   :  { %v4397_v57 = vpop.eup %4396  ;;  %v2612_v24 = vmul.f32 %v4395_v45, %v2611_v34  ;;  %v6751_v34 = vld [vmem:[#allocation13_spill] sm:$0xff] }
 0x7be   :  { %v2580_v6 = vmul.f32 %v4397_v57, %v2576_v25  ;;  %v2598_v0 = vadd.f32 %v4393_v5, %v2597_v14  ;;  %vm2585_vm5 = vweird.f32 %v4397_v57  ;;  %v4399_v30 = vpop.eup %4398  ;;  %v2620_v14 = vand.u32 2147483648, %v2578_v43 }
 0x7bf   :  { %vm2586_vm8 = vmor %vm2584_vm6, %vm2585_vm5  ;;  %v2618_v25 = vand.u32 2147483647, %v2578_v43  ;;  %v6749_v43 = vld [vmem:[#allocation69_spill] sm:$0xff] }
 0x7c0   :  { %v2581_v2 = vsub.f32 1.0, %v2580_v6  ;;  %v2602_v18 = vsel %vm2601_vm4, %v4393_v5, %v2598_v0  ;;  %v2613_v5 = vadd.f32 %v4395_v45, %v2612_v24  ;;  %v2621_v15 = vor.u32 1.1754944e-38, %v2620_v14 }
 0x7c1   :  { %v2607_v10 = vsel %vm2604_vm7, %v2606_v39, %v2602_v18  ;;  %vm2619_vm13 = vcmp.eq.f32.partialorder %v2618_v25, 8.507059e+37 }
 0x7c2   :  { %v2582_v54 = vmul.f32 %v4397_v57, %v2581_v2  ;;  %v2625_v37 = vmul.f32 %v2607_v10, %v6326_v51  ;;  %v2617_v29 = vsel %vm2616_vm12, %v4395_v45, %v2613_v5  ;;  %v6748_v51 = vld [vmem:[#allocation36_spill] sm:$0xff]  ;;  %v6750_v2 = vld [vmem:[#allocation34_spill] sm:$0xff] }
 0x7c3   :  { %v2622_v6 = vsel %vm2619_vm13, %v2621_v15, %v2617_v29  ;;  %v1095_v45 = vadd.f32 %v6749_v43, %v6748_v51  ;;  %v6752_v29 = vld [vmem:[#allocation73_spill] sm:$0xff] }
 0x7c4   :  { %v2583_v3 = vadd.f32 %v4397_v57, %v2582_v54  ;;  %v1144_v15 = vadd.f32 %v6752_v29, %v5882_v53 }
 0x7c6   :  { %v2587_v28 = vsel %vm2586_vm8, %v4397_v57, %v2583_v3 }
 0x7c7   :  { %v2592_v19 = vsel %vm2589_vm9, %v2591_v62, %v2587_v28 }
 0x7c8   :  { %v2626_v40 = vmul.f32 %v4399_v30, %v2592_v19 }
 0x7ca   :  { %v6366_v20 = vadd.f32 %v2626_v40, %v2625_v37 }
 0x7cc   :  { %4400 = vtanh.f32 %v6366_v20 }
 0x7d2   :  { %v4401_v57 = vpop.eup %4400 }
 0x7d3   :  { %v2629_v0 = vmul.f32 %v4401_v57, %v2622_v6 }
 0x7d5   :  { %v2634_v4 = vpack.c.bf16 %v2629_v0, %v2629_v0 }
 0x7d7   :  { %2643 = vmatmul.bf16.vlgmr.msra.gmra.mxu2 %v2634_v4  ;;  %2656 = vmatmul.bf16.vlgmr.msra.gmra.mxu0 %v2634_v4 }
 0x7d8   :  { %2669 = vmatmul.bf16.vlgmr.msra.gmra.mxu1 %v2634_v4  ;;  %2682 = vmatmul.bf16.vlgmr.msra.gmra.mxu3 %v2634_v4  ;;  %v6753_v4 = vld [vmem:[#allocation74_spill] sm:$0xff] }
 0x7d9   :  { %2883 = vmatpush.bf16.msra.mxu2 %v5359_v32  ;;  %2896 = vmatpush.bf16.msra.mxu0 %v5384_v33  ;;  %v1193_v51 = vadd.f32 %v6753_v4, %v1144_v15 }
 0x7da   :  { %2909 = vmatpush.bf16.msra.mxu1 %v5411_v60  ;;  %2922 = vmatpush.bf16.msra.mxu3 %v5424_v31 }
 0x7dd   :  { %2884 = vmatpush.bf16.msra.mxu2 %v5398_v23  ;;  %2897 = vmatpush.bf16.msra.mxu0 %v5441_v50 }
 0x7de   :  { %2910 = vmatpush.bf16.msra.mxu1 %v5471_v21  ;;  %2923 = vmatpush.bf16.msra.mxu3 %v5483_v56 }
 0x7e1   :  { %2885 = vmatpush.bf16.msra.mxu2 %v5457_v12  ;;  %2898 = vmatpush.bf16.msra.mxu0 %v5498_v22 }
 0x7e2   :  { %2911 = vmatpush.bf16.msra.mxu1 %v5527_v16  ;;  %2924 = vmatpush.bf16.msra.mxu3 %v5539_v63 }
 0x7e5   :  { %2886 = vmatpush.bf16.msra.mxu2 %v5514_v59  ;;  %2899 = vmatpush.bf16.msra.mxu0 %v5554_v11 }
 0x7e6   :  { %2912 = vmatpush.bf16.msra.mxu1 %v5583_v44  ;;  %2925 = vmatpush.bf16.msra.mxu3 %v5595_v38 }
 0x7e9   :  { %2887 = vmatpush.bf16.msra.mxu2 %v5570_v52  ;;  %2900 = vmatpush.bf16.msra.mxu0 %v5610_v47 }
 0x7ea   :  { %2913 = vmatpush.bf16.msra.mxu1 %v5639_v8  ;;  %2926 = vmatpush.bf16.msra.mxu3 %v5651_v17 }
 0x7ed   :  { %2888 = vmatpush.bf16.msra.mxu2 %v5626_v61  ;;  %2901 = vmatpush.bf16.msra.mxu0 %v5666_v9 }
 0x7ee   :  { %2914 = vmatpush.bf16.msra.mxu1 %v5695_v26  ;;  %2927 = vmatpush.bf16.msra.mxu3 %v5707_v58 }
 0x7f1   :  { %2889 = vmatpush.bf16.msra.mxu2 %v5682_v41  ;;  %2902 = vmatpush.bf16.msra.mxu0 %v5722_v27 }
 0x7f2   :  { %2915 = vmatpush.bf16.msra.mxu1 %v5752_v48  ;;  %2928 = vmatpush.bf16.msra.mxu3 %v5764_v13 }
 0x7f5   :  { %2890 = vmatpush.bf16.msra.mxu2 %v5738_v1  ;;  %2903 = vmatpush.bf16.msra.mxu0 %v5780_v7 }
 0x7f6   :  { %2916 = vmatpush.bf16.msra.mxu1 %v5806_v55  ;;  %2929 = vmatpush.bf16.msra.mxu3 %v5813_v46 }
 0x854   :  { %v2657_v49 = vpop.f32.mrf.mxu0 }
 0x855   :  { %v2688_v36 = vadd.f32 %v2657_v49, %v6750_v2  ;;  %v2670_v42 = vpop.f32.mrf.mxu1 }
 0x856   :  { %v2689_v54 = vadd.f32 %v2670_v42, %v1095_v45  ;;  %v6754_v45 = vld [vmem:[#allocation76_spill] sm:$0xff] }
 0x857   :  { %v4104_v35 = vmul.f32 -1.442695, %v2688_v36  ;;  %v1242_v49 = vadd.f32 %v6754_v45, %v1193_v51 }
 0x858   :  { %v4105_v18 = vmul.f32 -1.442695, %v2689_v54 }
 0x859   :  { %4402 = vpow2.f32 %v4104_v35 }
 0x85a   :  { %4404 = vpow2.f32 %v4105_v18  ;;  %v2644_v39 = vpop.f32.mrf.mxu2 }
 0x85b   :  { %v2687_v3 = vadd.f32 %v2644_v39, %v6751_v34  ;;  %v2683_v62 = vpop.f32.mrf.mxu3 }
 0x85c   :  { %v2659_v10 = vpop.f32.mrf.mxu0  ;;  %v2690_v54 = vadd.f32 %v2683_v62, %v1242_v49 }
 0x85d   :  { %v4103_v28 = vmul.f32 -1.442695, %v2687_v3  ;;  %v2672_v30 = vpop.f32.mrf.mxu1 }
 0x85f   :  { %v4403_v24 = vpop.eup %4402  ;;  %4406 = vpow2.f32 %v4103_v28 }
 0x860   :  { %v4405_v19 = vpop.eup %4404  ;;  %v2701_v37 = vadd.f32 1.0, %v4403_v24 }
 0x861   :  { %v2702_v5 = vadd.f32 1.0, %v4405_v19 }
 0x862   :  { %4408 = vrcp.f32 %v2701_v37  ;;  %v2646_v40 = vpop.f32.mrf.mxu2  ;;  %v2729_v39 = vand.u32 2147483648, %v2701_v37  ;;  %vm2723_vm15 = vweird.f32 %v2701_v37  ;;  %v2727_v10 = vand.u32 2147483647, %v2701_v37 }
 0x863   :  { %v2685_v14 = vpop.f32.mrf.mxu3  ;;  %4410 = vrcp.f32 %v2702_v5  ;;  %v2744_v49 = vand.u32 2147483648, %v2702_v5  ;;  %vm2738_vm7 = vweird.f32 %v2702_v5 }
 0x864   :  { %v2730_v40 = vor.u32 1.1754944e-38, %v2729_v39  ;;  %vm2728_vm3 = vcmp.eq.f32.partialorder %v2727_v10, 8.507059e+37 }
 0x865   :  { %v4407_v25 = vpop.eup %4406 }
 0x866   :  { %v2700_v57 = vadd.f32 1.0, %v4407_v25 }
 0x868   :  { %v4409_v6 = vpop.eup %4408  ;;  %4412 = vrcp.f32 %v2700_v57  ;;  %v2714_v28 = vand.u32 2147483648, %v2700_v57  ;;  %v2712_v24 = vand.u32 2147483647, %v2700_v57  ;;  %vm2708_vm2 = vweird.f32 %v2700_v57 }
 0x869   :  { %v2719_v0 = vmul.f32 %v4409_v6, %v2701_v37  ;;  %v4411_v2 = vpop.eup %4410  ;;  %vm2724_vm14 = vweird.f32 %v4409_v6  ;;  %4414 = vtanh.f32 %v2690_v54  ;;  %v2745_v54 = vor.u32 1.1754944e-38, %v2744_v49 }
 0x86a   :  { %v2734_v34 = vmul.f32 %v4411_v2, %v2702_v5  ;;  %vm2725_vm0 = vmor %vm2723_vm15, %vm2724_vm14  ;;  %v2715_v62 = vor.u32 1.1754944e-38, %v2714_v28  ;;  %vm2713_vm5 = vcmp.eq.f32.partialorder %v2712_v24, 8.507059e+37  ;;  %vm2739_vm6 = vweird.f32 %v4411_v2 }
 0x86b   :  { %v2720_v43 = vsub.f32 1.0, %v2719_v0  ;;  %vm2740_vm8 = vmor %vm2738_vm7, %vm2739_vm6 }
 0x86c   :  { %v2735_v14 = vsub.f32 1.0, %v2734_v34 }
 0x86d   :  { %v2721_v36 = vmul.f32 %v4409_v6, %v2720_v43 }
 0x86e   :  { %v4413_v42 = vpop.eup %4412  ;;  %v2736_v4 = vmul.f32 %v4411_v2, %v2735_v14 }
 0x86f   :  { %v2704_v35 = vmul.f32 %v4413_v42, %v2700_v57  ;;  %v2722_v18 = vadd.f32 %v4409_v6, %v2721_v36  ;;  %vm2709_vm1 = vweird.f32 %v4413_v42  ;;  %v4415_v0 = vpop.eup %4414  ;;  %v2742_v57 = vand.u32 2147483647, %v2702_v5  ;;  %v6755_v5 = vld [vmem:[#allocation37_spill] sm:$0xff] }
 0x870   :  { %vm2710_vm4 = vmor %vm2708_vm2, %vm2709_vm1 }
 0x871   :  { %v2705_v3 = vsub.f32 1.0, %v2704_v35  ;;  %v2726_v19 = vsel %vm2725_vm0, %v4409_v6, %v2722_v18  ;;  %v2737_v6 = vadd.f32 %v4411_v2, %v2736_v4  ;;  %vm2743_vm9 = vcmp.eq.f32.partialorder %v2742_v57, 8.507059e+37 }
 0x872   :  { %v2731_v29 = vsel %vm2728_vm3, %v2730_v40, %v2726_v19  ;;  %v6757_v19 = vld [vmem:[#allocation14_spill] sm:$0xff] }
 0x873   :  { %v2706_v30 = vmul.f32 %v4413_v42, %v2705_v3  ;;  %v2749_v51 = vmul.f32 %v2731_v29, %v6366_v20  ;;  %v2741_v36 = vsel %vm2740_vm8, %v4411_v2, %v2737_v6  ;;  %v6756_v3 = vld [vmem:[#allocation71_spill] sm:$0xff] }
 0x874   :  { %v2746_v35 = vsel %vm2743_vm9, %v2745_v54, %v2741_v36 }
 0x875   :  { %v2707_v25 = vadd.f32 %v4413_v42, %v2706_v30 }
 0x877   :  { %v2711_v15 = vsel %vm2710_vm4, %v4413_v42, %v2707_v25 }
 0x878   :  { %v2716_v37 = vsel %vm2713_vm5, %v2715_v62, %v2711_v15 }
 0x879   :  { %v2750_v43 = vmul.f32 %v4415_v0, %v2716_v37 }
 0x87b   :  { %v6410_v45 = vadd.f32 %v2750_v43, %v2749_v51 }
 0x87d   :  { %4416 = vtanh.f32 %v6410_v45 }
 0x883   :  { %v4417_v42 = vpop.eup %4416 }
 0x884   :  { %v2753_v18 = vmul.f32 %v4417_v42, %v2746_v35 }
 0x886   :  { %v2758_v39 = vpack.c.bf16 %v2753_v18, %v2753_v18 }
 0x888   :  { %2767 = vmatmul.bf16.vlgmr.msrb.gmra.mxu2 %v2758_v39  ;;  %2780 = vmatmul.bf16.vlgmr.msrb.gmra.mxu0 %v2758_v39 }
 0x889   :  { %2793 = vmatmul.bf16.vlgmr.msrb.gmra.mxu1 %v2758_v39  ;;  %2806 = vmatmul.bf16.vlgmr.msrb.gmra.mxu3 %v2758_v39  ;;  %v6758_v39 = vld [vmem:[#allocation78_spill] sm:$0xff] }
 0x88a   :  { %3007 = vmatpush.bf16.msrb.mxu2 %v5359_v32  ;;  %3020 = vmatpush.bf16.msrb.mxu0 %v5384_v33 }
 0x88b   :  { %3033 = vmatpush.bf16.msrb.mxu1 %v5411_v60  ;;  %3046 = vmatpush.bf16.msrb.mxu3 %v5424_v31 }
 0x88e   :  { %3008 = vmatpush.bf16.msrb.mxu2 %v5398_v23  ;;  %3021 = vmatpush.bf16.msrb.mxu0 %v5441_v50 }
 0x88f   :  { %3034 = vmatpush.bf16.msrb.mxu1 %v5471_v21  ;;  %3047 = vmatpush.bf16.msrb.mxu3 %v5483_v56 }
 0x892   :  { %3009 = vmatpush.bf16.msrb.mxu2 %v5457_v12  ;;  %3022 = vmatpush.bf16.msrb.mxu0 %v5498_v22 }
 0x893   :  { %3035 = vmatpush.bf16.msrb.mxu1 %v5527_v16  ;;  %3048 = vmatpush.bf16.msrb.mxu3 %v5539_v63 }
 0x896   :  { %3010 = vmatpush.bf16.msrb.mxu2 %v5514_v59  ;;  %3023 = vmatpush.bf16.msrb.mxu0 %v5554_v11 }
 0x897   :  { %3036 = vmatpush.bf16.msrb.mxu1 %v5583_v44  ;;  %3049 = vmatpush.bf16.msrb.mxu3 %v5595_v38 }
 0x89a   :  { %3011 = vmatpush.bf16.msrb.mxu2 %v5570_v52  ;;  %3024 = vmatpush.bf16.msrb.mxu0 %v5610_v47 }
 0x89b   :  { %3037 = vmatpush.bf16.msrb.mxu1 %v5639_v8  ;;  %3050 = vmatpush.bf16.msrb.mxu3 %v5651_v17 }
 0x89e   :  { %3012 = vmatpush.bf16.msrb.mxu2 %v5626_v61  ;;  %3025 = vmatpush.bf16.msrb.mxu0 %v5666_v9 }
 0x89f   :  { %3038 = vmatpush.bf16.msrb.mxu1 %v5695_v26  ;;  %3051 = vmatpush.bf16.msrb.mxu3 %v5707_v58 }
 0x8a2   :  { %3013 = vmatpush.bf16.msrb.mxu2 %v5682_v41  ;;  %3026 = vmatpush.bf16.msrb.mxu0 %v5722_v27 }
 0x8a3   :  { %3039 = vmatpush.bf16.msrb.mxu1 %v5752_v48  ;;  %3052 = vmatpush.bf16.msrb.mxu3 %v5764_v13 }
 0x8a6   :  { %3014 = vmatpush.bf16.msrb.mxu2 %v5738_v1  ;;  %3027 = vmatpush.bf16.msrb.mxu0 %v5780_v7 }
 0x8a7   :  { %3040 = vmatpush.bf16.msrb.mxu1 %v5806_v55  ;;  %3053 = vmatpush.bf16.msrb.mxu3 %v5813_v46 }
 0x905   :  { %v2781_v20 = vpop.f32.mrf.mxu0 }
 0x906   :  { %v2812_v2 = vadd.f32 %v2781_v20, %v6755_v5  ;;  %v2794_v34 = vpop.f32.mrf.mxu1 }
 0x907   :  { %v2813_v10 = vadd.f32 %v2794_v34, %v6756_v3 }
 0x908   :  { %v4107_v28 = vmul.f32 -1.442695, %v2812_v2 }
 0x909   :  { %v4108_v30 = vmul.f32 -1.442695, %v2813_v10 }
 0x90a   :  { %4418 = vpow2.f32 %v4107_v28 }
 0x90b   :  { %4420 = vpow2.f32 %v4108_v30  ;;  %v2768_v24 = vpop.f32.mrf.mxu2 }
 0x90c   :  { %v2811_v40 = vadd.f32 %v2768_v24, %v6757_v19  ;;  %v2807_v14 = vpop.f32.mrf.mxu3 }
 0x90d   :  { %v2783_v25 = vpop.f32.mrf.mxu0  ;;  %v2814_v20 = vadd.f32 %v2807_v14, %v6758_v39 }
 0x90e   :  { %v4106_v62 = vmul.f32 -1.442695, %v2811_v40  ;;  %v2796_v29 = vpop.f32.mrf.mxu1 }
 0x910   :  { %v4419_v15 = vpop.eup %4418  ;;  %4422 = vpow2.f32 %v4106_v62 }
 0x911   :  { %v4421_v0 = vpop.eup %4420  ;;  %v2825_v4 = vadd.f32 1.0, %v4419_v15 }
 0x912   :  { %v2826_v51 = vadd.f32 1.0, %v4421_v0 }
 0x913   :  { %4424 = vrcp.f32 %v2825_v4  ;;  %v2770_v37 = vpop.f32.mrf.mxu2  ;;  %v2853_v34 = vand.u32 2147483648, %v2825_v4  ;;  %vm2847_vm11 = vweird.f32 %v2825_v4  ;;  %v2851_v28 = vand.u32 2147483647, %v2825_v4 }
 0x914   :  { %v2809_v43 = vpop.f32.mrf.mxu3  ;;  %4426 = vrcp.f32 %v2826_v51  ;;  %vm2862_vm3 = vweird.f32 %v2826_v51 }
 0x915   :  { %v2854_v25 = vor.u32 1.1754944e-38, %v2853_v34  ;;  %vm2852_vm15 = vcmp.eq.f32.partialorder %v2851_v28, 8.507059e+37 }
 0x916   :  { %v4423_v6 = vpop.eup %4422 }
 0x917   :  { %v2824_v49 = vadd.f32 1.0, %v4423_v6 }
 0x919   :  { %v4425_v57 = vpop.eup %4424  ;;  %4428 = vrcp.f32 %v2824_v49  ;;  %v2838_v30 = vand.u32 2147483648, %v2824_v49  ;;  %v2836_v19 = vand.u32 2147483647, %v2824_v49  ;;  %vm2832_vm14 = vweird.f32 %v2824_v49 }
 0x91a   :  { %v2843_v36 = vmul.f32 %v4425_v57, %v2825_v4  ;;  %v4427_v42 = vpop.eup %4426  ;;  %vm2848_vm10 = vweird.f32 %v4425_v57  ;;  %4430 = vtanh.f32 %v2814_v20 }
 0x91b   :  { %v2858_v3 = vmul.f32 %v4427_v42, %v2826_v51  ;;  %vm2849_vm12 = vmor %vm2847_vm11, %vm2848_vm10  ;;  %v2839_v14 = vor.u32 1.1754944e-38, %v2838_v30  ;;  %vm2837_vm1 = vcmp.eq.f32.partialorder %v2836_v19, 8.507059e+37  ;;  %vm2863_vm2 = vweird.f32 %v4427_v42  ;;  %v6763_v30 = vld [vmem:[#allocation35_spill] sm:$0xff]  ;;  %v6764_v19 = vld [vmem:[#allocation41_spill] sm:$0xff] }
 0x91c   :  { %v2844_v54 = vsub.f32 1.0, %v2843_v36  ;;  %vm2864_vm4 = vmor %vm2862_vm3, %vm2863_vm2 }
 0x91d   :  { %v2859_v62 = vsub.f32 1.0, %v2858_v3  ;;  %v6761_v3 = vld [vmem:[#allocation20_spill] sm:$0xff] }
 0x91e   :  { %v2845_v35 = vmul.f32 %v4425_v57, %v2844_v54 }
 0x91f   :  { %v4429_v18 = vpop.eup %4428  ;;  %v2860_v43 = vmul.f32 %v4427_v42, %v2859_v62 }
 0x920   :  { %v2828_v5 = vmul.f32 %v4429_v18, %v2824_v49  ;;  %v2846_v2 = vadd.f32 %v4425_v57, %v2845_v35  ;;  %vm2833_vm13 = vweird.f32 %v4429_v18  ;;  %v4431_v37 = vpop.eup %4430  ;;  %v2868_v35 = vand.u32 2147483648, %v2826_v51 }
 0x921   :  { %vm2834_vm0 = vmor %vm2832_vm14, %vm2833_vm13  ;;  %v2866_v49 = vand.u32 2147483647, %v2826_v51  ;;  %v6760_v51 = vld [vmem:[#allocation39_spill] sm:$0xff] }
 0x922   :  { %v2829_v10 = vsub.f32 1.0, %v2828_v5  ;;  %v2850_v40 = vsel %vm2849_vm12, %v4425_v57, %v2846_v2  ;;  %v2861_v57 = vadd.f32 %v4427_v42, %v2860_v43  ;;  %v2869_v20 = vor.u32 1.1754944e-38, %v2868_v35 }
 0x923   :  { %v2855_v15 = vsel %vm2852_vm15, %v2854_v25, %v2850_v40  ;;  %vm2867_vm5 = vcmp.eq.f32.partialorder %v2866_v49, 8.507059e+37  ;;  %v6765_v25 = vld [vmem:[#allocation38_spill] sm:$0xff] }
 0x924   :  { %v2830_v24 = vmul.f32 %v4429_v18, %v2829_v10  ;;  %v2873_v6 = vmul.f32 %v2855_v15, %v6410_v45  ;;  %v2865_v39 = vsel %vm2864_vm4, %v4427_v42, %v2861_v57  ;;  %v6759_v45 = vld [vmem:[#allocation24_spill] sm:$0xff]  ;;  %v6767_v57 = vld [vmem:[#allocation15_spill] sm:$0xff] }
 0x925   :  { %v2870_v5 = vsel %vm2867_vm5, %v2869_v20, %v2865_v39  ;;  %v1002_v42 = vadd.f32 %v6760_v51, %v6759_v45  ;;  %v6762_v10 = vld [vmem:[#allocation16_spill] sm:$0xff] }
 0x926   :  { %v2831_v29 = vadd.f32 %v4429_v18, %v2830_v24  ;;  %v855_v28 = vadd.f32 %v6762_v10, %v6761_v3 }
 0x927   :  { %v1051_v40 = vadd.f32 %v6764_v19, %v1002_v42 }
 0x928   :  { %v2835_v0 = vsel %vm2834_vm0, %v4429_v18, %v2831_v29  ;;  %v904_v24 = vadd.f32 %v6763_v30, %v855_v28  ;;  %v6766_v29 = vld [vmem:[#allocation75_spill] sm:$0xff] }
 0x929   :  { %v2840_v4 = vsel %vm2837_vm1, %v2839_v14, %v2835_v0  ;;  %v1100_v14 = vadd.f32 %v6766_v29, %v1051_v40  ;;  %v6768_v30 = vld [vmem:[#allocation79_spill] sm:$0xff] }
 0x92a   :  { %v2874_v36 = vmul.f32 %v4431_v37, %v2840_v4  ;;  %v953_v62 = vadd.f32 %v6765_v25, %v904_v24  ;;  %v1149_v24 = vadd.f32 %v6768_v30, %v5882_v53 }
 0x92c   :  { %v6450_v54 = vadd.f32 %v2874_v36, %v2873_v6 }
 0x92e   :  { %4432 = vtanh.f32 %v6450_v54 }
 0x934   :  { %v4433_v18 = vpop.eup %4432 }
 0x935   :  { %v2877_v2 = vmul.f32 %v4433_v18, %v2870_v5 }
 0x937   :  { %v2882_v34 = vpack.c.bf16 %v2877_v2, %v2877_v2 }
 0x939   :  { %2891 = vmatmul.bf16.vlgmr.msra.gmra.mxu2 %v2882_v34  ;;  %2904 = vmatmul.bf16.vlgmr.msra.gmra.mxu0 %v2882_v34 }
 0x93a   :  { %2917 = vmatmul.bf16.vlgmr.msra.gmra.mxu1 %v2882_v34  ;;  %2930 = vmatmul.bf16.vlgmr.msra.gmra.mxu3 %v2882_v34 }
 0x93b   :  { %3131 = vmatpush.bf16.msra.mxu2 %v5359_v32  ;;  %3144 = vmatpush.bf16.msra.mxu0 %v5384_v33 }
 0x93c   :  { %3157 = vmatpush.bf16.msra.mxu1 %v5411_v60  ;;  %3170 = vmatpush.bf16.msra.mxu3 %v5424_v31 }
 0x93f   :  { %3132 = vmatpush.bf16.msra.mxu2 %v5398_v23  ;;  %3145 = vmatpush.bf16.msra.mxu0 %v5441_v50 }
 0x940   :  { %3158 = vmatpush.bf16.msra.mxu1 %v5471_v21  ;;  %3171 = vmatpush.bf16.msra.mxu3 %v5483_v56 }
 0x943   :  { %3133 = vmatpush.bf16.msra.mxu2 %v5457_v12  ;;  %3146 = vmatpush.bf16.msra.mxu0 %v5498_v22 }
 0x944   :  { %3159 = vmatpush.bf16.msra.mxu1 %v5527_v16  ;;  %3172 = vmatpush.bf16.msra.mxu3 %v5539_v63 }
 0x947   :  { %3134 = vmatpush.bf16.msra.mxu2 %v5514_v59  ;;  %3147 = vmatpush.bf16.msra.mxu0 %v5554_v11 }
 0x948   :  { %3160 = vmatpush.bf16.msra.mxu1 %v5583_v44  ;;  %3173 = vmatpush.bf16.msra.mxu3 %v5595_v38 }
 0x94b   :  { %3135 = vmatpush.bf16.msra.mxu2 %v5570_v52  ;;  %3148 = vmatpush.bf16.msra.mxu0 %v5610_v47 }
 0x94c   :  { %3161 = vmatpush.bf16.msra.mxu1 %v5639_v8  ;;  %3174 = vmatpush.bf16.msra.mxu3 %v5651_v17 }
 0x94f   :  { %3136 = vmatpush.bf16.msra.mxu2 %v5626_v61  ;;  %3149 = vmatpush.bf16.msra.mxu0 %v5666_v9 }
 0x950   :  { %3162 = vmatpush.bf16.msra.mxu1 %v5695_v26  ;;  %3175 = vmatpush.bf16.msra.mxu3 %v5707_v58 }
 0x953   :  { %3137 = vmatpush.bf16.msra.mxu2 %v5682_v41  ;;  %3150 = vmatpush.bf16.msra.mxu0 %v5722_v27 }
 0x954   :  { %3163 = vmatpush.bf16.msra.mxu1 %v5752_v48  ;;  %3176 = vmatpush.bf16.msra.mxu3 %v5764_v13 }
 0x957   :  { %3138 = vmatpush.bf16.msra.mxu2 %v5738_v1  ;;  %3151 = vmatpush.bf16.msra.mxu0 %v5780_v7 }
 0x958   :  { %3164 = vmatpush.bf16.msra.mxu1 %v5806_v55  ;;  %3177 = vmatpush.bf16.msra.mxu3 %v5813_v46 }
 0x9b6   :  { %v2905_v15 = vpop.f32.mrf.mxu0 }
 0x9b7   :  { %v2936_v0 = vadd.f32 %v2905_v15, %v953_v62  ;;  %v2918_v37 = vpop.f32.mrf.mxu1  ;;  %v6769_v62 = vld [vmem:[#allocation80_spill] sm:$0xff]  ;;  %v6770_v15 = vld [vmem:[#allocation82_spill] sm:$0xff] }
 0x9b8   :  { %v2937_v43 = vadd.f32 %v2918_v37, %v1100_v14  ;;  %v1198_v29 = vadd.f32 %v6769_v62, %v1149_v24 }
 0x9b9   :  { %v4110_v4 = vmul.f32 -1.442695, %v2936_v0 }
 0x9ba   :  { %v4111_v6 = vmul.f32 -1.442695, %v2937_v43  ;;  %v1247_v0 = vadd.f32 %v6770_v15, %v1198_v29 }
 0x9bb   :  { %4434 = vpow2.f32 %v4110_v4 }
 0x9bc   :  { %4436 = vpow2.f32 %v4111_v6  ;;  %v2892_v36 = vpop.f32.mrf.mxu2 }
 0x9bd   :  { %v2935_v35 = vadd.f32 %v2892_v36, %v6767_v57  ;;  %v2931_v49 = vpop.f32.mrf.mxu3 }
 0x9be   :  { %v2907_v39 = vpop.f32.mrf.mxu0  ;;  %v2938_v6 = vadd.f32 %v2931_v49, %v1247_v0 }
 0x9bf   :  { %v4109_v20 = vmul.f32 -1.442695, %v2935_v35  ;;  %v2920_v18 = vpop.f32.mrf.mxu1 }
 0x9c1   :  { %v4435_v5 = vpop.eup %4434  ;;  %4438 = vpow2.f32 %v4109_v20 }
 0x9c2   :  { %v4437_v2 = vpop.eup %4436  ;;  %v2949_v34 = vadd.f32 1.0, %v4435_v5 }
 0x9c3   :  { %v2950_v42 = vadd.f32 1.0, %v4437_v2 }
 0x9c4   :  { %4440 = vrcp.f32 %v2949_v34  ;;  %v2894_v51 = vpop.f32.mrf.mxu2  ;;  %v2977_v35 = vand.u32 2147483648, %v2949_v34  ;;  %vm2971_vm7 = vweird.f32 %v2949_v34  ;;  %v2975_v18 = vand.u32 2147483647, %v2949_v34 }
 0x9c5   :  { %v2933_v10 = vpop.f32.mrf.mxu3  ;;  %4442 = vrcp.f32 %v2950_v42  ;;  %vm2986_vm15 = vweird.f32 %v2950_v42 }
 0x9c6   :  { %vm2976_vm11 = vcmp.eq.f32.partialorder %v2975_v18, 8.507059e+37 }
 0x9c7   :  { %v4439_v28 = vpop.eup %4438 }
 0x9c8   :  { %v2948_v19 = vadd.f32 1.0, %v4439_v28  ;;  %v2978_v28 = vor.u32 1.1754944e-38, %v2977_v35 }
 0x9ca   :  { %v4441_v40 = vpop.eup %4440  ;;  %4444 = vrcp.f32 %v2948_v19  ;;  %v2962_v5 = vand.u32 2147483648, %v2948_v19  ;;  %v2960_v51 = vand.u32 2147483647, %v2948_v19  ;;  %vm2956_vm10 = vweird.f32 %v2948_v19 }
 0x9cb   :  { %v2967_v25 = vmul.f32 %v4441_v40, %v2949_v34  ;;  %v4443_v37 = vpop.eup %4442  ;;  %vm2972_vm6 = vweird.f32 %v4441_v40  ;;  %4446 = vtanh.f32 %v2938_v6  ;;  %v2992_v6 = vand.u32 2147483648, %v2950_v42 }
 0x9cc   :  { %v2982_v39 = vmul.f32 %v4443_v37, %v2950_v42  ;;  %vm2973_vm8 = vmor %vm2971_vm7, %vm2972_vm6  ;;  %v2963_v49 = vor.u32 1.1754944e-38, %v2962_v5  ;;  %vm2961_vm13 = vcmp.eq.f32.partialorder %v2960_v51, 8.507059e+37  ;;  %vm2987_vm14 = vweird.f32 %v4443_v37  ;;  %v6772_v5 = vld [vmem:[#allocation77_spill] sm:$0xff] }
 0x9cd   :  { %v2968_v14 = vsub.f32 1.0, %v2967_v25  ;;  %vm2988_vm0 = vmor %vm2986_vm15, %vm2987_vm14 }
 0x9ce   :  { %v2983_v30 = vsub.f32 1.0, %v2982_v39 }
 0x9cf   :  { %v2969_v43 = vmul.f32 %v4441_v40, %v2968_v14 }
 0x9d0   :  { %v4445_v4 = vpop.eup %4444  ;;  %v2984_v14 = vmul.f32 %v4443_v37, %v2983_v30  ;;  %v6773_v30 = vld [vmem:[#allocation17_spill] sm:$0xff] }
 0x9d1   :  { %v2952_v36 = vmul.f32 %v4445_v4, %v2948_v19  ;;  %v2970_v57 = vadd.f32 %v4441_v40, %v2969_v43  ;;  %vm2957_vm9 = vweird.f32 %v4445_v4  ;;  %v4447_v29 = vpop.eup %4446  ;;  %v2990_v19 = vand.u32 2147483647, %v2950_v42  ;;  %v6771_v42 = vld [vmem:[#allocation42_spill] sm:$0xff] }
 0x9d2   :  { %vm2958_vm12 = vmor %vm2956_vm10, %vm2957_vm9 }
 0x9d3   :  { %v2953_v20 = vsub.f32 1.0, %v2952_v36  ;;  %v2974_v10 = vsel %vm2973_vm8, %v4441_v40, %v2970_v57  ;;  %v2985_v40 = vadd.f32 %v4443_v37, %v2984_v14  ;;  %v2993_v57 = vor.u32 1.1754944e-38, %v2992_v6 }
 0x9d4   :  { %v2979_v25 = vsel %vm2976_vm11, %v2978_v28, %v2974_v10  ;;  %vm2991_vm1 = vcmp.eq.f32.partialorder %v2990_v19, 8.507059e+37 }
 0x9d5   :  { %v2954_v2 = vmul.f32 %v4445_v4, %v2953_v20  ;;  %v2997_v15 = vmul.f32 %v2979_v25, %v6450_v54  ;;  %v2989_v36 = vsel %vm2988_vm0, %v4443_v37, %v2985_v40 }
 0x9d6   :  { %v2994_v35 = vsel %vm2991_vm1, %v2993_v57, %v2989_v36 }
 0x9d7   :  { %v2955_v24 = vadd.f32 %v4445_v4, %v2954_v2 }
 0x9d9   :  { %v2959_v62 = vsel %vm2958_vm12, %v4445_v4, %v2955_v24 }
 0x9da   :  { %v2964_v34 = vsel %vm2961_vm13, %v2963_v49, %v2959_v62 }
 0x9db   :  { %v2998_v0 = vmul.f32 %v4447_v29, %v2964_v34 }
 0x9dd   :  { %v6499_v43 = vadd.f32 %v2998_v0, %v2997_v15 }
 0x9df   :  { %4448 = vtanh.f32 %v6499_v43 }
 0x9e5   :  { %v4449_v4 = vpop.eup %4448 }
 0x9e6   :  { %v3001_v39 = vmul.f32 %v4449_v4, %v2994_v35 }
 0x9e8   :  { %v3006_v20 = vpack.c.bf16 %v3001_v39, %v3001_v39 }
 0x9ea   :  { %3015 = vmatmul.bf16.vlgmr.msrb.gmra.mxu2 %v3006_v20  ;;  %3028 = vmatmul.bf16.vlgmr.msrb.gmra.mxu0 %v3006_v20 }
 0x9eb   :  { %3041 = vmatmul.bf16.vlgmr.msrb.gmra.mxu1 %v3006_v20  ;;  %3054 = vmatmul.bf16.vlgmr.msrb.gmra.mxu3 %v3006_v20 }
 0x9ec   :  { %3255 = vmatpush.bf16.msrb.mxu2 %v5359_v32  ;;  %3268 = vmatpush.bf16.msrb.mxu0 %v5384_v33 }
 0x9ed   :  { %3281 = vmatpush.bf16.msrb.mxu1 %v5411_v60  ;;  %3294 = vmatpush.bf16.msrb.mxu3 %v5424_v31 }
 0x9f0   :  { %3256 = vmatpush.bf16.msrb.mxu2 %v5398_v23  ;;  %3269 = vmatpush.bf16.msrb.mxu0 %v5441_v50 }
 0x9f1   :  { %3282 = vmatpush.bf16.msrb.mxu1 %v5471_v21  ;;  %3295 = vmatpush.bf16.msrb.mxu3 %v5483_v56 }
 0x9f4   :  { %3257 = vmatpush.bf16.msrb.mxu2 %v5457_v12  ;;  %3270 = vmatpush.bf16.msrb.mxu0 %v5498_v22 }
 0x9f5   :  { %3283 = vmatpush.bf16.msrb.mxu1 %v5527_v16  ;;  %3296 = vmatpush.bf16.msrb.mxu3 %v5539_v63 }
 0x9f8   :  { %3258 = vmatpush.bf16.msrb.mxu2 %v5514_v59  ;;  %3271 = vmatpush.bf16.msrb.mxu0 %v5554_v11 }
 0x9f9   :  { %3284 = vmatpush.bf16.msrb.mxu1 %v5583_v44  ;;  %3297 = vmatpush.bf16.msrb.mxu3 %v5595_v38 }
 0x9fc   :  { %3259 = vmatpush.bf16.msrb.mxu2 %v5570_v52  ;;  %3272 = vmatpush.bf16.msrb.mxu0 %v5610_v47 }
 0x9fd   :  { %3285 = vmatpush.bf16.msrb.mxu1 %v5639_v8  ;;  %3298 = vmatpush.bf16.msrb.mxu3 %v5651_v17 }
 0xa00   :  { %3260 = vmatpush.bf16.msrb.mxu2 %v5626_v61  ;;  %3273 = vmatpush.bf16.msrb.mxu0 %v5666_v9 }
 0xa01   :  { %3286 = vmatpush.bf16.msrb.mxu1 %v5695_v26  ;;  %3299 = vmatpush.bf16.msrb.mxu3 %v5707_v58 }
 0xa04   :  { %3261 = vmatpush.bf16.msrb.mxu2 %v5682_v41  ;;  %3274 = vmatpush.bf16.msrb.mxu0 %v5722_v27 }
 0xa05   :  { %3287 = vmatpush.bf16.msrb.mxu1 %v5752_v48  ;;  %3300 = vmatpush.bf16.msrb.mxu3 %v5764_v13 }
 0xa08   :  { %3262 = vmatpush.bf16.msrb.mxu2 %v5738_v1  ;;  %3275 = vmatpush.bf16.msrb.mxu0 %v5780_v7 }
 0xa09   :  { %3288 = vmatpush.bf16.msrb.mxu1 %v5806_v55  ;;  %3301 = vmatpush.bf16.msrb.mxu3 %v5813_v46 }
 0xa67   :  { %v3029_v54 = vpop.f32.mrf.mxu0 }
 0xa68   :  { %v3060_v37 = vadd.f32 %v3029_v54, %v6771_v42  ;;  %v3042_v18 = vpop.f32.mrf.mxu1  ;;  %v6774_v42 = vld [vmem:[#allocation84_spill] sm:$0xff] }
 0xa69   :  { %v3061_v2 = vadd.f32 %v3042_v18, %v6772_v5 }
 0xa6a   :  { %v4113_v51 = vmul.f32 -1.442695, %v3060_v37 }
 0xa6b   :  { %v4114_v10 = vmul.f32 -1.442695, %v3061_v2 }
 0xa6c   :  { %4450 = vpow2.f32 %v4113_v51 }
 0xa6d   :  { %4452 = vpow2.f32 %v4114_v10  ;;  %v3016_v28 = vpop.f32.mrf.mxu2 }
 0xa6e   :  { %v3059_v24 = vadd.f32 %v3016_v28, %v6773_v30  ;;  %v3055_v49 = vpop.f32.mrf.mxu3 }
 0xa6f   :  { %v3031_v25 = vpop.f32.mrf.mxu0  ;;  %v3062_v37 = vadd.f32 %v3055_v49, %v6774_v42 }
 0xa70   :  { %v4112_v62 = vmul.f32 -1.442695, %v3059_v24  ;;  %v3044_v29 = vpop.f32.mrf.mxu1 }
 0xa72   :  { %v4451_v14 = vpop.eup %4450  ;;  %4454 = vpow2.f32 %v4112_v62 }
 0xa73   :  { %v4453_v34 = vpop.eup %4452  ;;  %v3073_v15 = vadd.f32 1.0, %v4451_v14 }
 0xa74   :  { %v3074_v40 = vadd.f32 1.0, %v4453_v34 }
 0xa75   :  { %4456 = vrcp.f32 %v3073_v15  ;;  %v3018_v0 = vpop.f32.mrf.mxu2  ;;  %v3101_v2 = vand.u32 2147483648, %v3073_v15  ;;  %vm3095_vm3 = vweird.f32 %v3073_v15  ;;  %v3099_v28 = vand.u32 2147483647, %v3073_v15 }
 0xa76   :  { %v3057_v6 = vpop.f32.mrf.mxu3  ;;  %4458 = vrcp.f32 %v3074_v40  ;;  %vm3110_vm11 = vweird.f32 %v3074_v40 }
 0xa77   :  { %v3102_v29 = vor.u32 1.1754944e-38, %v3101_v2  ;;  %vm3100_vm7 = vcmp.eq.f32.partialorder %v3099_v28, 8.507059e+37 }
 0xa78   :  { %v4455_v19 = vpop.eup %4454 }
 0xa79   :  { %v3072_v36 = vadd.f32 1.0, %v4455_v19 }
 0xa7b   :  { %v4457_v57 = vpop.eup %4456  ;;  %4460 = vrcp.f32 %v3072_v36  ;;  %v3086_v30 = vand.u32 2147483648, %v3072_v36  ;;  %v3084_v25 = vand.u32 2147483647, %v3072_v36  ;;  %vm3080_vm6 = vweird.f32 %v3072_v36 }
 0xa7c   :  { %v3091_v4 = vmul.f32 %v4457_v57, %v3073_v15  ;;  %v4459_v39 = vpop.eup %4458  ;;  %vm3096_vm2 = vweird.f32 %v4457_v57  ;;  %4462 = vtanh.f32 %v3062_v37  ;;  %v3116_v37 = vand.u32 2147483648, %v3074_v40 }
 0xa7d   :  { %v3106_v51 = vmul.f32 %v4459_v39, %v3074_v40  ;;  %vm3097_vm4 = vmor %vm3095_vm3, %vm3096_vm2  ;;  %v3087_v49 = vor.u32 1.1754944e-38, %v3086_v30  ;;  %vm3085_vm9 = vcmp.eq.f32.partialorder %v3084_v25, 8.507059e+37  ;;  %vm3111_vm10 = vweird.f32 %v4459_v39 }
 0xa7e   :  { %v3092_v35 = vsub.f32 1.0, %v3091_v4  ;;  %vm3112_vm12 = vmor %vm3110_vm11, %vm3111_vm10 }
 0xa7f   :  { %v3107_v14 = vsub.f32 1.0, %v3106_v51 }
 0xa80   :  { %v3093_v20 = vmul.f32 %v4457_v57, %v3092_v35 }
 0xa81   :  { %v4461_v54 = vpop.eup %4460  ;;  %v3108_v4 = vmul.f32 %v4459_v39, %v3107_v14 }
 0xa82   :  { %v3076_v18 = vmul.f32 %v4461_v54, %v3072_v36  ;;  %v3094_v5 = vadd.f32 %v4457_v57, %v3093_v20  ;;  %vm3081_vm5 = vweird.f32 %v4461_v54  ;;  %v4463_v19 = vpop.eup %4462  ;;  %v3114_v36 = vand.u32 2147483647, %v3074_v40 }
 0xa83   :  { %vm3082_vm8 = vmor %vm3080_vm6, %vm3081_vm5 }
 0xa84   :  { %v3077_v10 = vsub.f32 1.0, %v3076_v18  ;;  %v3098_v62 = vsel %vm3097_vm4, %v4457_v57, %v3094_v5  ;;  %v3109_v57 = vadd.f32 %v4459_v39, %v3108_v4  ;;  %v3117_v5 = vor.u32 1.1754944e-38, %v3116_v37 }
 0xa85   :  { %v3103_v0 = vsel %vm3100_vm7, %v3102_v29, %v3098_v62  ;;  %vm3115_vm13 = vcmp.eq.f32.partialorder %v3114_v36, 8.507059e+37  ;;  %v6784_v29 = vld [vmem:[#allocation88_spill] sm:$0xff] }
 0xa86   :  { %v3078_v24 = vmul.f32 %v4461_v54, %v3077_v10  ;;  %v3121_v35 = vmul.f32 %v3103_v0, %v6499_v43  ;;  %v3113_v18 = vsel %vm3112_vm12, %v4459_v39, %v3109_v57  ;;  %v6782_v43 = vld [vmem:[#allocation85_spill] sm:$0xff] }
 0xa87   :  { %v3118_v2 = vsel %vm3115_vm13, %v3117_v5, %v3113_v18  ;;  %v1154_v40 = vadd.f32 %v6782_v43, %v5882_v53 }
 0xa88   :  { %v3079_v34 = vadd.f32 %v4461_v54, %v3078_v24  ;;  %v6783_v24 = vld [vmem:[#allocation86_spill] sm:$0xff] }
 0xa89   :  { %v1203_v25 = vadd.f32 %v6783_v24, %v1154_v40 }
 0xa8a   :  { %v3083_v6 = vsel %vm3082_vm8, %v4461_v54, %v3079_v34 }
 0xa8b   :  { %v3088_v15 = vsel %vm3085_vm9, %v3087_v49, %v3083_v6  ;;  %v1252_v14 = vadd.f32 %v6784_v29, %v1203_v25 }
 0xa8c   :  { %v3122_v20 = vmul.f32 %v4463_v19, %v3088_v15 }
 0xa8e   :  { %v6539_v42 = vadd.f32 %v3122_v20, %v3121_v35 }
 0xa90   :  { %4464 = vtanh.f32 %v6539_v42 }
 0xa96   :  { %v4465_v54 = vpop.eup %4464 }
 0xa97   :  { %v3125_v51 = vmul.f32 %v4465_v54, %v3118_v2 }
 0xa99   :  { %v3130_v10 = vpack.c.bf16 %v3125_v51, %v3125_v51 }
 0xa9b   :  { %3139 = vmatmul.bf16.vlgmr.msra.gmra.mxu2 %v3130_v10  ;;  %3152 = vmatmul.bf16.vlgmr.msra.gmra.mxu0 %v3130_v10 }
 0xa9c   :  { %3165 = vmatmul.bf16.vlgmr.msra.gmra.mxu1 %v3130_v10  ;;  %3178 = vmatmul.bf16.vlgmr.msra.gmra.mxu3 %v3130_v10 }
 0xa9d   :  { %3379 = vmatpush.bf16.msra.mxu2 %v5359_v32  ;;  %3392 = vmatpush.bf16.msra.mxu0 %v5384_v33  ;;  %v6776_v33 = vld [vmem:[#allocation19_spill] sm:$0xff] }
 0xa9e   :  { %3405 = vmatpush.bf16.msra.mxu1 %v5411_v60  ;;  %3418 = vmatpush.bf16.msra.mxu3 %v5424_v31  ;;  %v860_v60 = vadd.f32 %v6776_v33, %v6761_v3 }
 0xaa1   :  { %3380 = vmatpush.bf16.msra.mxu2 %v5398_v23  ;;  %3393 = vmatpush.bf16.msra.mxu0 %v5441_v50  ;;  %v6777_v23 = vld [vmem:[#allocation40_spill] sm:$0xff]  ;;  %v6778_v50 = vld [vmem:[#allocation46_spill] sm:$0xff] }
 0xaa2   :  { %3406 = vmatpush.bf16.msra.mxu1 %v5471_v21  ;;  %3419 = vmatpush.bf16.msra.mxu3 %v5483_v56  ;;  %v909_v31 = vadd.f32 %v6777_v23, %v860_v60  ;;  %v6779_v21 = vld [vmem:[#allocation43_spill] sm:$0xff] }
 0xaa4   :  { %v958_v56 = vadd.f32 %v6779_v21, %v909_v31 }
 0xaa5   :  { %3381 = vmatpush.bf16.msra.mxu2 %v5457_v12  ;;  %3394 = vmatpush.bf16.msra.mxu0 %v5498_v22  ;;  %v6780_v22 = vld [vmem:[#allocation81_spill] sm:$0xff] }
 0xaa6   :  { %3407 = vmatpush.bf16.msra.mxu1 %v5527_v16  ;;  %3420 = vmatpush.bf16.msra.mxu3 %v5539_v63  ;;  %v6775_v16 = vld [vmem:[#allocation44_spill] sm:$0xff] }
 0xaa7   :  { %v1007_v32 = vadd.f32 %v6775_v16, %v6759_v45 }
 0xaa9   :  { %3382 = vmatpush.bf16.msra.mxu2 %v5514_v59  ;;  %3395 = vmatpush.bf16.msra.mxu0 %v5554_v11  ;;  %v1056_v12 = vadd.f32 %v6778_v50, %v1007_v32 }
 0xaaa   :  { %3408 = vmatpush.bf16.msra.mxu1 %v5583_v44  ;;  %3421 = vmatpush.bf16.msra.mxu3 %v5595_v38 }
 0xaab   :  { %v1105_v59 = vadd.f32 %v6780_v22, %v1056_v12 }
 0xaad   :  { %3383 = vmatpush.bf16.msra.mxu2 %v5570_v52  ;;  %3396 = vmatpush.bf16.msra.mxu0 %v5610_v47 }
 0xaae   :  { %3409 = vmatpush.bf16.msra.mxu1 %v5639_v8  ;;  %3422 = vmatpush.bf16.msra.mxu3 %v5651_v17 }
 0xab1   :  { %3384 = vmatpush.bf16.msra.mxu2 %v5626_v61  ;;  %3397 = vmatpush.bf16.msra.mxu0 %v5666_v9  ;;  %v6781_v61 = vld [vmem:[#allocation18_spill] sm:$0xff] }
 0xab2   :  { %3410 = vmatpush.bf16.msra.mxu1 %v5695_v26  ;;  %3423 = vmatpush.bf16.msra.mxu3 %v5707_v58 }
 0xab5   :  { %3385 = vmatpush.bf16.msra.mxu2 %v5682_v41  ;;  %3398 = vmatpush.bf16.msra.mxu0 %v5722_v27 }
 0xab6   :  { %3411 = vmatpush.bf16.msra.mxu1 %v5752_v48  ;;  %3424 = vmatpush.bf16.msra.mxu3 %v5764_v13 }
 0xab9   :  { %3386 = vmatpush.bf16.msra.mxu2 %v5738_v1  ;;  %3399 = vmatpush.bf16.msra.mxu0 %v5780_v7 }
 0xaba   :  { %3412 = vmatpush.bf16.msra.mxu1 %v5806_v55  ;;  %3425 = vmatpush.bf16.msra.mxu3 %v5813_v46 }
 0xb18   :  { %v3153_v63 = vpop.f32.mrf.mxu0 }
 0xb19   :  { %v3184_v11 = vadd.f32 %v3153_v63, %v958_v56  ;;  %v3166_v44 = vpop.f32.mrf.mxu1 }
 0xb1a   :  { %v3185_v52 = vadd.f32 %v3166_v44, %v1105_v59 }
 0xb1b   :  { %v4116_v38 = vmul.f32 -1.442695, %v3184_v11 }
 0xb1c   :  { %v4117_v47 = vmul.f32 -1.442695, %v3185_v52 }
 0xb1d   :  { %4466 = vpow2.f32 %v4116_v38 }
 0xb1e   :  { %4468 = vpow2.f32 %v4117_v47  ;;  %v3140_v8 = vpop.f32.mrf.mxu2  ;;  %v6785_v47 = vld [vmem:[#allocation47_spill] sm:$0xff] }
 0xb1f   :  { %v3183_v17 = vadd.f32 %v3140_v8, %v6781_v61  ;;  %v3179_v9 = vpop.f32.mrf.mxu3 }
 0xb20   :  { %v3155_v26 = vpop.f32.mrf.mxu0  ;;  %v3186_v6 = vadd.f32 %v3179_v9, %v1252_v14 }
 0xb21   :  { %v4115_v41 = vmul.f32 -1.442695, %v3183_v17  ;;  %v3168_v58 = vpop.f32.mrf.mxu1  ;;  %v6786_v17 = vld [vmem:[#allocation83_spill] sm:$0xff] }
 0xb23   :  { %v4467_v27 = vpop.eup %4466  ;;  %4470 = vpow2.f32 %v4115_v41 }
 0xb24   :  { %v4469_v46 = vpop.eup %4468  ;;  %v3197_v1 = vadd.f32 1.0, %v4467_v27  ;;  %v6787_v27 = vld [vmem:[#allocation21_spill] sm:$0xff] }
 0xb25   :  { %v3198_v13 = vadd.f32 1.0, %v4469_v46 }
 0xb26   :  { %4472 = vrcp.f32 %v3197_v1  ;;  %v3142_v48 = vpop.f32.mrf.mxu2  ;;  %v3225_v15 = vand.u32 2147483648, %v3197_v1  ;;  %vm3219_vm15 = vweird.f32 %v3197_v1  ;;  %v3223_v57 = vand.u32 2147483647, %v3197_v1 }
 0xb27   :  { %v3181_v7 = vpop.f32.mrf.mxu3  ;;  %4474 = vrcp.f32 %v3198_v13  ;;  %v3240_v56 = vand.u32 2147483648, %v3198_v13  ;;  %vm3234_vm7 = vweird.f32 %v3198_v13  ;;  %v3238_v22 = vand.u32 2147483647, %v3198_v13 }
 0xb28   :  { %v3226_v54 = vor.u32 1.1754944e-38, %v3225_v15  ;;  %vm3224_vm3 = vcmp.eq.f32.partialorder %v3223_v57, 8.507059e+37 }
 0xb29   :  { %v4471_v55 = vpop.eup %4470  ;;  %v3241_v63 = vor.u32 1.1754944e-38, %v3240_v56  ;;  %vm3239_vm9 = vcmp.eq.f32.partialorder %v3238_v22, 8.507059e+37 }
 0xb2a   :  { %v3196_v39 = vadd.f32 1.0, %v4471_v55 }
 0xb2c   :  { %v4473_v28 = vpop.eup %4472  ;;  %4476 = vrcp.f32 %v3196_v39  ;;  %v3210_v37 = vand.u32 2147483648, %v3196_v39  ;;  %v3208_v18 = vand.u32 2147483647, %v3196_v39  ;;  %vm3204_vm2 = vweird.f32 %v3196_v39 }
 0xb2d   :  { %v3215_v30 = vmul.f32 %v4473_v28, %v3197_v1  ;;  %v4475_v34 = vpop.eup %4474  ;;  %vm3220_vm14 = vweird.f32 %v4473_v28  ;;  %4478 = vtanh.f32 %v3186_v6  ;;  %v6788_v6 = vld [vmem:[#allocation89_spill] sm:$0xff] }
 0xb2e   :  { %v3230_v35 = vmul.f32 %v4475_v34, %v3198_v13  ;;  %vm3221_vm0 = vmor %vm3219_vm15, %vm3220_vm14  ;;  %v3211_v10 = vor.u32 1.1754944e-38, %v3210_v37  ;;  %vm3209_vm5 = vcmp.eq.f32.partialorder %v3208_v18, 8.507059e+37  ;;  %vm3235_vm6 = vweird.f32 %v4475_v34 }
 0xb2f   :  { %v3216_v62 = vsub.f32 1.0, %v3215_v30  ;;  %vm3236_vm8 = vmor %vm3234_vm7, %vm3235_vm6 }
 0xb30   :  { %v3231_v2 = vsub.f32 1.0, %v3230_v35 }
 0xb31   :  { %v3217_v49 = vmul.f32 %v4473_v28, %v3216_v62 }
 0xb32   :  { %v4477_v0 = vpop.eup %4476  ;;  %v3232_v60 = vmul.f32 %v4475_v34, %v3231_v2 }
 0xb33   :  { %v3200_v19 = vmul.f32 %v4477_v0, %v3196_v39  ;;  %v3218_v4 = vadd.f32 %v4473_v28, %v3217_v49  ;;  %vm3205_vm1 = vweird.f32 %v4477_v0  ;;  %v4479_v33 = vpop.eup %4478 }
 0xb34   :  { %vm3206_vm4 = vmor %vm3204_vm2, %vm3205_vm1  ;;  %v3233_v21 = vadd.f32 %v4475_v34, %v3232_v60 }
 0xb35   :  { %v3201_v20 = vsub.f32 1.0, %v3200_v19  ;;  %v3222_v5 = vsel %vm3221_vm0, %v4473_v28, %v3218_v4 }
 0xb36   :  { %v3227_v16 = vsel %vm3224_vm3, %v3226_v54, %v3222_v5  ;;  %v3237_v59 = vsel %vm3236_vm8, %v4475_v34, %v3233_v21 }
 0xb37   :  { %v3202_v36 = vmul.f32 %v4477_v0, %v3201_v20  ;;  %v3245_v31 = vmul.f32 %v3227_v16, %v6539_v42  ;;  %v3242_v44 = vsel %vm3239_vm9, %v3241_v63, %v3237_v59 }
 0xb39   :  { %v3203_v51 = vadd.f32 %v4477_v0, %v3202_v36 }
 0xb3b   :  { %v3207_v32 = vsel %vm3206_vm4, %v4477_v0, %v3203_v51 }
 0xb3c   :  { %v3212_v23 = vsel %vm3209_vm5, %v3211_v10, %v3207_v32 }
 0xb3d   :  { %v3246_v50 = vmul.f32 %v4479_v33, %v3212_v23 }
 0xb3f   :  { %v6588_v12 = vadd.f32 %v3246_v50, %v3245_v31 }
 0xb41   :  { %4480 = vtanh.f32 %v6588_v12 }
 0xb47   :  { %v4481_v11 = vpop.eup %4480 }
 0xb48   :  { %v3249_v52 = vmul.f32 %v4481_v11, %v3242_v44 }
 0xb4a   :  { %v3254_v38 = vpack.c.bf16 %v3249_v52, %v3249_v52 }
 0xb4c   :  { %3263 = vmatmul.bf16.vlgmr.msrb.gmra.mxu2 %v3254_v38  ;;  %3276 = vmatmul.bf16.vlgmr.msrb.gmra.mxu0 %v3254_v38 }
 0xb4d   :  { %3289 = vmatmul.bf16.vlgmr.msrb.gmra.mxu1 %v3254_v38  ;;  %3302 = vmatmul.bf16.vlgmr.msrb.gmra.mxu3 %v3254_v38 }
 0xbc9   :  { %v3277_v42 = vpop.f32.mrf.mxu0 }
 0xbca   :  { %v3308_v8 = vadd.f32 %v3277_v42, %v6785_v47  ;;  %v3290_v61 = vpop.f32.mrf.mxu1 }
 0xbcb   :  { %v3309_v9 = vadd.f32 %v3290_v61, %v6786_v17  ;;  %v6790_v61 = vld [vmem:[#allocation23_spill] sm:$0xff] }
 0xbcc   :  { %v4119_v26 = vmul.f32 -1.442695, %v3308_v8  ;;  %v865_v17 = vadd.f32 %v6790_v61, %v6761_v3 }
 0xbcd   :  { %v4120_v41 = vmul.f32 -1.442695, %v3309_v9  ;;  %v6791_v9 = vld [vmem:[#allocation45_spill] sm:$0xff] }
 0xbce   :  { %4482 = vpow2.f32 %v4119_v26  ;;  %v914_v26 = vadd.f32 %v6791_v9, %v865_v17 }
 0xbcf   :  { %4484 = vpow2.f32 %v4120_v41  ;;  %v3264_v58 = vpop.f32.mrf.mxu2  ;;  %v6792_v41 = vld [vmem:[#allocation50_spill] sm:$0xff] }
 0xbd0   :  { %v3307_v46 = vadd.f32 %v3264_v58, %v6787_v27  ;;  %v3303_v1 = vpop.f32.mrf.mxu3  ;;  %v6793_v27 = vld [vmem:[#allocation48_spill] sm:$0xff] }
 0xbd1   :  { %v3279_v48 = vpop.f32.mrf.mxu0  ;;  %v3310_v19 = vadd.f32 %v3303_v1, %v6788_v6  ;;  %v6794_v1 = vld [vmem:[#allocation87_spill] sm:$0xff] }
 0xbd2   :  { %v4118_v13 = vmul.f32 -1.442695, %v3307_v46  ;;  %v3292_v7 = vpop.f32.mrf.mxu1  ;;  %v963_v46 = vadd.f32 %v6793_v27, %v914_v26 }
 0xbd4   :  { %v4483_v55 = vpop.eup %4482  ;;  %4486 = vpow2.f32 %v4118_v13 }
 0xbd5   :  { %v4485_v43 = vpop.eup %4484  ;;  %v3321_v40 = vadd.f32 1.0, %v4483_v55 }
 0xbd6   :  { %v3322_v28 = vadd.f32 1.0, %v4485_v43 }
 0xbd7   :  { %4488 = vrcp.f32 %v3321_v40  ;;  %v3266_v39 = vpop.f32.mrf.mxu2  ;;  %v3349_v35 = vand.u32 2147483648, %v3321_v40  ;;  %vm3343_vm11 = vweird.f32 %v3321_v40  ;;  %v3347_v37 = vand.u32 2147483647, %v3321_v40 }
 0xbd8   :  { %v3305_v30 = vpop.f32.mrf.mxu3  ;;  %4490 = vrcp.f32 %v3322_v28  ;;  %v3364_v59 = vand.u32 2147483648, %v3322_v28  ;;  %vm3358_vm3 = vweird.f32 %v3322_v28  ;;  %v3362_v63 = vand.u32 2147483647, %v3322_v28 }
 0xbd9   :  { %v3350_v2 = vor.u32 1.1754944e-38, %v3349_v35  ;;  %vm3348_vm15 = vcmp.eq.f32.partialorder %v3347_v37, 8.507059e+37  ;;  %v6797_v37 = vld [vmem:[#allocation91_spill] sm:$0xff] }
 0xbda   :  { %v4487_v24 = vpop.eup %4486  ;;  %v3365_v44 = vor.u32 1.1754944e-38, %v3364_v59  ;;  %vm3363_vm5 = vcmp.eq.f32.partialorder %v3362_v63, 8.507059e+37 }
 0xbdb   :  { %v3320_v25 = vadd.f32 1.0, %v4487_v24 }
 0xbdd   :  { %v4489_v62 = vpop.eup %4488  ;;  %4492 = vrcp.f32 %v3320_v25  ;;  %v3334_v36 = vand.u32 2147483648, %v3320_v25  ;;  %v3332_v5 = vand.u32 2147483647, %v3320_v25  ;;  %vm3328_vm14 = vweird.f32 %v3320_v25 }
 0xbde   :  { %v3339_v29 = vmul.f32 %v4489_v62, %v3321_v40  ;;  %v4491_v34 = vpop.eup %4490  ;;  %vm3344_vm10 = vweird.f32 %v4489_v62  ;;  %4494 = vtanh.f32 %v3310_v19 }
 0xbdf   :  { %v3354_v20 = vmul.f32 %v4491_v34, %v3322_v28  ;;  %vm3345_vm12 = vmor %vm3343_vm11, %vm3344_vm10  ;;  %v3335_v16 = vor.u32 1.1754944e-38, %v3334_v36  ;;  %vm3333_vm1 = vcmp.eq.f32.partialorder %v3332_v5, 8.507059e+37  ;;  %vm3359_vm2 = vweird.f32 %v4491_v34  ;;  %v6795_v28 = vld [vmem:[#allocation22_spill] sm:$0xff]  ;;  %v6798_v5 = vld [vmem:[#allocation92_spill] sm:$0xff] }
 0xbe0   :  { %v3340_v14 = vsub.f32 1.0, %v3339_v29  ;;  %vm3360_vm4 = vmor %vm3358_vm3, %vm3359_vm2  ;;  %vm3498_vm2 = vcmask 523264  }
 0xbe1   :  { %v3355_v51 = vsub.f32 1.0, %v3354_v20 }
 0xbe2   :  { %v3341_v49 = vmul.f32 %v4489_v62, %v3340_v14 }
 0xbe3   :  { %v4493_v0 = vpop.eup %4492  ;;  %v3356_v23 = vmul.f32 %v4491_v34, %v3355_v51 }
 0xbe4   :  { %v3324_v4 = vmul.f32 %v4493_v0, %v3320_v25  ;;  %v3342_v15 = vadd.f32 %v4489_v62, %v3341_v49  ;;  %vm3329_vm13 = vweird.f32 %v4493_v0  ;;  %v4495_v60 = vpop.eup %4494 }
 0xbe5   :  { %vm3330_vm0 = vmor %vm3328_vm14, %vm3329_vm13  ;;  %v3357_v22 = vadd.f32 %v4491_v34, %v3356_v23 }
 0xbe6   :  { %v3325_v57 = vsub.f32 1.0, %v3324_v4  ;;  %v3346_v54 = vsel %vm3345_vm12, %v4489_v62, %v3342_v15  ;;  %v6796_v4 = vld [vmem:[#allocation90_spill] sm:$0xff] }
 0xbe7   :  { %v3351_v32 = vsel %vm3348_vm15, %v3350_v2, %v3346_v54  ;;  %v3361_v11 = vsel %vm3360_vm4, %v4491_v34, %v3357_v22  ;;  %v1159_v15 = vadd.f32 %v6796_v4, %v5882_v53 }
 0xbe8   :  { %v3326_v18 = vmul.f32 %v4493_v0, %v3325_v57  ;;  %v3369_v50 = vmul.f32 %v3351_v32, %v6588_v12  ;;  %v3366_v38 = vsel %vm3363_vm5, %v3365_v44, %v3361_v11  ;;  %v6789_v12 = vld [vmem:[#allocation49_spill] sm:$0xff] }
 0xbe9   :  { %v1012_v8 = vadd.f32 %v6789_v12, %v6759_v45  ;;  %v1208_v36 = vadd.f32 %v6797_v37, %v1159_v15 }
 0xbea   :  { %v3327_v10 = vadd.f32 %v4493_v0, %v3326_v18 }
 0xbeb   :  { %v1061_v58 = vadd.f32 %v6792_v41, %v1012_v8  ;;  %v1257_v54 = vadd.f32 %v6798_v5, %v1208_v36 }
 0xbec   :  { %v3331_v33 = vsel %vm3330_vm0, %v4493_v0, %v3327_v10 }
 0xbed   :  { %v3336_v31 = vsel %vm3333_vm1, %v3335_v16, %v3331_v33  ;;  %v1110_v48 = vadd.f32 %v6794_v1, %v1061_v58 }
 0xbee   :  { %v3370_v21 = vmul.f32 %v4495_v60, %v3336_v31 }
 0xbf0   :  { %v6596_v56 = vadd.f32 %v3370_v21, %v3369_v50 }
 0xbf2   :  { %4496 = vtanh.f32 %v6596_v56 }
 0xbf8   :  { %v4497_v52 = vpop.eup %4496 }
 0xbf9   :  { %v3373_v42 = vmul.f32 %v4497_v52, %v3366_v38 }
 0xbfb   :  { %v3378_v47 = vpack.c.bf16 %v3373_v42, %v3373_v42 }
 0xbfd   :  { %3387 = vmatmul.bf16.vlgmr.msra.gmra.mxu2 %v3378_v47  ;;  %3400 = vmatmul.bf16.vlgmr.msra.gmra.mxu0 %v3378_v47 }
 0xbfe   :  { %3413 = vmatmul.bf16.vlgmr.msra.gmra.mxu1 %v3378_v47  ;;  %3426 = vmatmul.bf16.vlgmr.msra.gmra.mxu3 %v3378_v47 }
 0xc7a   :  { %v3401_v13 = vpop.f32.mrf.mxu0 }
 0xc7b   :  { %v3432_v7 = vadd.f32 %v3401_v13, %v963_v46  ;;  %v3414_v55 = vpop.f32.mrf.mxu1 }
 0xc7c   :  { %v3433_v43 = vadd.f32 %v3414_v55, %v1110_v48 }
 0xc7d   :  { %v4122_v40 = vmul.f32 -1.442695, %v3432_v7 }
 0xc7e   :  { %v4123_v39 = vmul.f32 -1.442695, %v3433_v43 }
 0xc7f   :  { %4498 = vpow2.f32 %v4122_v40 }
 0xc80   :  { %4500 = vpow2.f32 %v4123_v39  ;;  %v3388_v45 = vpop.f32.mrf.mxu2 }
 0xc81   :  { %v3431_v30 = vadd.f32 %v3388_v45, %v6795_v28  ;;  %v3427_v3 = vpop.f32.mrf.mxu3 }
 0xc82   :  { %v3403_v24 = vpop.f32.mrf.mxu0  ;;  %v3434_v16 = vadd.f32 %v3427_v3, %v1257_v54 }
 0xc83   :  { %v4121_v25 = vmul.f32 -1.442695, %v3431_v30  ;;  %v3416_v62 = vpop.f32.mrf.mxu1 }
 0xc85   :  { %v4499_v29 = vpop.eup %4498  ;;  %4502 = vpow2.f32 %v4121_v25 }
 0xc86   :  { %v4501_v14 = vpop.eup %4500  ;;  %v3445_v34 = vadd.f32 1.0, %v4499_v29 }
 0xc87   :  { %v3446_v0 = vadd.f32 1.0, %v4501_v14 }
 0xc88   :  { %4504 = vrcp.f32 %v3445_v34  ;;  %v3390_v49 = vpop.f32.mrf.mxu2  ;;  %v3473_v60 = vand.u32 2147483648, %v3445_v34  ;;  %vm3467_vm7 = vweird.f32 %v3445_v34  ;;  %v3471_v31 = vand.u32 2147483647, %v3445_v34 }
 0xc89   :  { %v3429_v6 = vpop.f32.mrf.mxu3  ;;  %4506 = vrcp.f32 %v3446_v0  ;;  %v3488_v41 = vand.u32 2147483648, %v3446_v0  ;;  %vm3482_vm15 = vweird.f32 %v3446_v0  ;;  %v3486_v58 = vand.u32 2147483647, %v3446_v0 }
 0xc8a   :  { %v3474_v63 = vor.u32 1.1754944e-38, %v3473_v60  ;;  %vm3472_vm11 = vcmp.eq.f32.partialorder %v3471_v31, 8.507059e+37 }
 0xc8b   :  { %v4503_v19 = vpop.eup %4502  ;;  %v3489_v46 = vor.u32 1.1754944e-38, %v3488_v41  ;;  %vm3487_vm1 = vcmp.eq.f32.partialorder %v3486_v58, 8.507059e+37 }
 0xc8c   :  { %v3444_v35 = vadd.f32 1.0, %v4503_v19 }
 0xc8e   :  { %v4505_v20 = vpop.eup %4504  ;;  %4508 = vrcp.f32 %v3444_v35  ;;  %v3458_v50 = vand.u32 2147483648, %v3444_v35  ;;  %v3456_v22 = vand.u32 2147483647, %v3444_v35  ;;  %vm3452_vm10 = vweird.f32 %v3444_v35 }
 0xc8f   :  { %v3463_v57 = vmul.f32 %v4505_v20, %v3445_v34  ;;  %v4507_v2 = vpop.eup %4506  ;;  %vm3468_vm6 = vweird.f32 %v4505_v20  ;;  %4510 = vtanh.f32 %v3434_v16 }
 0xc90   :  { %v3478_v23 = vmul.f32 %v4507_v2, %v3446_v0  ;;  %vm3469_vm8 = vmor %vm3467_vm7, %vm3468_vm6  ;;  %v3459_v52 = vor.u32 1.1754944e-38, %v3458_v50  ;;  %vm3457_vm13 = vcmp.eq.f32.partialorder %v3456_v22, 8.507059e+37  ;;  %vm3483_vm14 = vweird.f32 %v4507_v2 }
 0xc91   :  { %v3464_v18 = vsub.f32 1.0, %v3463_v57  ;;  %vm3484_vm0 = vmor %vm3482_vm15, %vm3483_vm14 }
 0xc92   :  { %v3479_v11 = vsub.f32 1.0, %v3478_v23 }
 0xc93   :  { %v3465_v51 = vmul.f32 %v4505_v20, %v3464_v18 }
 0xc94   :  { %v4509_v10 = vpop.eup %4508  ;;  %v3480_v8 = vmul.f32 %v4507_v2, %v3479_v11 }
 0xc95   :  { %v3448_v32 = vmul.f32 %v4509_v10, %v3444_v35  ;;  %v3466_v33 = vadd.f32 %v4505_v20, %v3465_v51  ;;  %vm3453_vm9 = vweird.f32 %v4509_v10  ;;  %v4511_v47 = vpop.eup %4510 }
 0xc96   :  { %vm3454_vm12 = vmor %vm3452_vm10, %vm3453_vm9  ;;  %v3481_v26 = vadd.f32 %v4507_v2, %v3480_v8 }
 0xc97   :  { %v3449_v53 = vsub.f32 1.0, %v3448_v32  ;;  %v3470_v59 = vsel %vm3469_vm8, %v4505_v20, %v3466_v33 }
 0xc98   :  { %v3475_v38 = vsel %vm3472_vm11, %v3474_v63, %v3470_v59  ;;  %v3485_v27 = vsel %vm3484_vm0, %v4507_v2, %v3481_v26 }
 0xc99   :  { %v3450_v21 = vmul.f32 %v4509_v10, %v3449_v53  ;;  %v3493_v61 = vmul.f32 %v3475_v38, %v6596_v56  ;;  %v3490_v56 = vsel %vm3487_vm1, %v3489_v46, %v3485_v27 }
 0xc9b   :  { %v3451_v44 = vadd.f32 %v4509_v10, %v3450_v21 }
 0xc9d   :  { %v3455_v42 = vsel %vm3454_vm12, %v4509_v10, %v3451_v44 }
 0xc9e   :  { %v3460_v12 = vsel %vm3457_vm13, %v3459_v52, %v3455_v42 }
 0xc9f   :  { %v3494_v17 = vmul.f32 %v4511_v47, %v3460_v12 }
 0xca1   :  { %v3495_v9 = vadd.f32 %v3494_v17, %v3493_v61 }
 0xca3   :  { %4512 = vtanh.f32 %v3495_v9 }
 0xca9   :  { %v4513_v1 = vpop.eup %4512 }
 0xcaa   :  { %v3497_v48 = vmul.f32 %v4513_v1, %v3490_v56 }
 0xcac   :  { %3499 = vst.msk [vmem:[#allocation3] sm:$0xff] %vm3498_vm2, %v3497_v48 }
 0xcad   :  { %3510 = dma.vmem_to_hbm [thread:$0]  %s3506_s13, 128, %s3508_s16, [#allocation4]  }
 0xcae   :  { %4539 = dma.done.wait [#allocation4], 128  }
 0xcaf   :  { %4540 = vsyncadd [#allocation4], 4294967168 }
 0xcb0   :  { %3515 = vsyncpa [#allocation4], 1 }

</bundles_post_ra>
